<compile_context>
chip_gen: v7x
topology: tpu7x:2x2x1
jax: 0.10.0
libtpu: 0.0.40
codegen_flags: <defaults>
</compile_context>

<pallas_src>
import functools

import jax
import jax.numpy as jnp
from jax.experimental import pallas as pl
from jax.experimental.pallas import tpu as pltpu

LN_EPS = 1e-5  # PyTorch nn.LayerNorm default


# ------------------------------ in-kernel math ------------------------------ #

def _erf(x):
    # Abramowitz & Stegun 7.1.26 polynomial (|err| < 1.5e-7): float32-accurate
    # stand-in for lax.erf so PyTorch's exact-erf GELU fuses in-kernel.
    # TODO(synk): switch to lax.erf once Mosaic erf lowering is guaranteed.
    p = 0.3275911
    a1, a2, a3, a4, a5 = (0.254829592, -0.284496736, 1.421413741,
                          -1.453152027, 1.061405429)
    sgn = jnp.where(x < 0.0, -1.0, 1.0)
    ax = jnp.abs(x)
    t = 1.0 / (1.0 + p * ax)
    poly = ((((a5 * t + a4) * t + a3) * t + a2) * t + a1) * t
    return sgn * (1.0 - poly * jnp.exp(-ax * ax))


def _gelu_exact(x):
    """PyTorch F.gelu default (exact erf form)."""
    return 0.5 * x * (1.0 + _erf(x * 0.7071067811865476))


def _mha(q2d, k2d, v2d, wo, lane, groups, lq, lk, n_head, dh):
    """Multi-head attention + out-projection on lane-padded (.., 128) activations.

    Heads are separated with lane masks (VPU multiplies on full 128-lane values)
    instead of 8-lane slices / concats, so there is no cross-lane relayout traffic
    and every matmul is a full-width MXU op.  Per-head contexts occupy disjoint
    lanes, so their running sum equals the usual head concat and a single
    out-projection matmul finishes the job.  1/sqrt(dh) is pre-folded into Wq/bq.
    Rows of q2d/k2d/v2d are group-major, sequence-minor.
    """
    ep = q2d.shape[-1]
    q3 = q2d.reshape(groups, lq, ep)
    k3 = k2d.reshape(groups, lk, ep)
    v3 = v2d.reshape(groups, lk, ep)
    ctx = jnp.zeros((groups, lq, ep), jnp.float32)
    for h in range(n_head):                                     # static unroll
        hm = jnp.logical_and(lane >= h * dh, lane < (h + 1) * dh)
        hm = hm.astype(jnp.float32).reshape(1, 1, ep)
        s = jnp.einsum('gqd,gkd->gqk', q3, k3 * hm,
                       preferred_element_type=jnp.float32)
        m = jnp.max(s, axis=-1, keepdims=True)
        pexp = jnp.exp(s - m)
        pexp = pexp * pl.reciprocal(jnp.sum(pexp, axis=-1, keepdims=True),
                                    approx=True)                # EUP slot (free)
        ctx = ctx + jnp.einsum('gqk,gkd->gqd', pexp, v3 * hm,
                               preferred_element_type=jnp.float32)
    return jnp.dot(ctx.reshape(groups * lq, ep), wo,
                   preferred_element_type=jnp.float32)


# ----------------------------- fused Pallas kernel --------------------------- #

def _fused_kernel(tgt_ref, srca_ref, srcb_ref,
                  uwqkv_ref, ubqkv_ref, uwo_ref, ubo_ref,
                  uwla_ref, uwlb_ref, ublin_ref,
                  twqkv_ref, tbqkv_ref, two_ref, tbo_ref,
                  g1_ref, b1_ref, w1_ref, bb1_ref, w2_ref, bb2_ref,
                  g2_ref, b2_ref, gf_ref, bf_ref,
                  pfwd_ref, pbwd_ref,
                  out_ref, *, n_head, e_true):
    """One grid step = one utility: UtilityBlock + shared encoder pass, in VMEM."""
    _, n, l, ep = tgt_ref.shape
    nl = n * l
    dh = e_true // n_head
    inv_e = 1.0 / float(e_true)

    lane = jax.lax.broadcasted_iota(jnp.int32, (1, ep), 1)
    lane_mask = (lane < e_true).astype(jnp.float32)

    def ln(x):
        # LayerNorm over the true E lanes only (padding is zero and stays zero).
        mu = jnp.sum(x, axis=-1, keepdims=True) * inv_e
        xc = (x - mu) * lane_mask
        var = jnp.sum(xc * xc, axis=-1, keepdims=True) * inv_e
        return xc * jax.lax.rsqrt(var + LN_EPS)

    tgt2d = tgt_ref[0].reshape(nl, ep)
    sa2d = srca_ref[0].reshape(nl, ep)
    sb2d = srcb_ref[0].reshape(nl, ep)

    # -------------------- UtilityBlock (attention batch = N, seq = L) --------- #
    # Packed QKV projection for target + both sources in one aligned MXU matmul.
    x_all = jnp.concatenate([tgt2d, sa2d, sb2d], axis=0)              # (3NL, Ep)
    proj = jnp.dot(x_all, uwqkv_ref[0],
                   preferred_element_type=jnp.float32) + ubqkv_ref[0]
    q = proj[0:nl, 0:ep]                                              # target Q
    ka = proj[nl:2 * nl, ep:2 * ep]                                   # source_a K
    va = proj[nl:2 * nl, 2 * ep:3 * ep]                               # source_a V
    kb = proj[2 * nl:3 * nl, ep:2 * ep]                               # source_b K
    vb = proj[2 * nl:3 * nl, 2 * ep:3 * ep]                           # source_b V

    # Both source attentions stacked along the group axis -> one attention pass
    # and ONE out-projection matmul for att_a and att_b together.
    qq = jnp.concatenate([q, q], axis=0)
    kk = jnp.concatenate([ka, kb], axis=0)
    vv = jnp.concatenate([va, vb], axis=0)
    att = _mha(qq, kk, vv, uwo_ref[0], lane, 2 * n, l, l, n_head, dh) + ubo_ref[0]
    att_a = att[0:nl]
    att_b = att[nl:2 * nl]

    norm_a = ln(att_a + tgt2d)        # nn.LayerNorm(elementwise_affine=False)
    norm_b = ln(att_b + tgt2d)
    # linear(cat([a, b], -1)) split into two matmuls -> no lane-axis concat.
    u = (jnp.dot(norm_a, uwla_ref[0], preferred_element_type=jnp.float32)
         + jnp.dot(norm_b, uwlb_ref[0], preferred_element_type=jnp.float32)
         + ublin_ref[0])
    u = jnp.maximum(u, 0.0)           # ReLU; dropout = identity (inference)
    u = ln(u + tgt2d)                 # rows (n-major, l-minor), padding lanes = 0

    # ------------- shared TransformerEncoder pass (seq axis = N) -------------- #
    # Re-layout rows (n-major,l-minor) -> (l-major,n-minor) with a tiny in-VMEM
    # permutation matmul (idle MXU) instead of an XLA transpose / HBM round trip.
    x = jnp.dot(pfwd_ref[...], u, preferred_element_type=jnp.float32)

    eproj = jnp.dot(x, twqkv_ref[...],
                    preferred_element_type=jnp.float32) + tbqkv_ref[...]
    attn = _mha(eproj[:, 0:ep], eproj[:, ep:2 * ep], eproj[:, 2 * ep:3 * ep],
                two_ref[...], lane, l, n, n, n_head, dh) + tbo_ref[...]

    src = ln(attn + x) * g1_ref[...] + b1_ref[...]                    # norm1
    hmid = jnp.dot(src, w1_ref[...],
                   preferred_element_type=jnp.float32) + bb1_ref[...]
    hmid = _gelu_exact(hmid)                                          # exact-erf GELU
    ff = jnp.dot(hmid, w2_ref[...],
                 preferred_element_type=jnp.float32) + bb2_ref[...]
    src = ln(ff + src) * g2_ref[...] + b2_ref[...]                    # norm2
    src = ln(src) * gf_ref[...] + bf_ref[...]                         # shared final norm

    out2d = jnp.dot(pbwd_ref[...], src, preferred_element_type=jnp.float32)
    out_ref[0] = out2d.reshape(n, l, ep)                              # unmasked vst (128 lanes)


# --------------------------------- wrapper ----------------------------------- #

def utility_layer(T, V, A, pp, n_head):
    N, L, E = T.shape
    Ep = pp["ut_wqkv"].shape[1]           # lane-padded hidden (multiple of 128)
    FF = pp["trm_w1"].shape[1]
    nl = N * L

    # utility_t(T, V, A), utility_v(V, T, A), utility_a(A, T, V)
    targets = jnp.stack([T, V, A], axis=0)
    srcs_a = jnp.stack([V, T, T], axis=0)
    srcs_b = jnp.stack([A, A, V], axis=0)
    pad = ((0, 0), (0, 0), (0, 0), (0, Ep - E))
    targets = jnp.pad(targets, pad)
    srcs_a = jnp.pad(srcs_a, pad)
    srcs_b = jnp.pad(srcs_b, pad)

    # Row-permutation matrices for the in-kernel (n,l)<->(l,n) re-layout
    # (constants under jit; applied on the MXU inside the kernel).
    rows = jnp.arange(nl)
    src_rows = (rows % N) * L + (rows // N)
    perm_fwd = (src_rows[:, None] == rows[None, :]).astype(jnp.float32)  # (nl, nl)
    perm_bwd = perm_fwd.T

    def per_util(shape):
        nd = len(shape)
        return pl.BlockSpec((1,) + shape, lambda i, nd=nd: (i,) + (0,) * nd)

    def shared(shape):
        nd = len(shape)
        return pl.BlockSpec(shape, lambda i, nd=nd: (0,) * nd)

    out = pl.pallas_call(
        functools.partial(_fused_kernel, n_head=n_head, e_true=E),
        out_shape=jax.ShapeDtypeStruct((3, N, L, Ep), jnp.float32),
        grid=(3,),
        in_specs=[
            per_util((N, L, Ep)), per_util((N, L, Ep)), per_util((N, L, Ep)),
            per_util((Ep, 3 * Ep)), per_util((1, 3 * Ep)),
            per_util((Ep, Ep)), per_util((1, Ep)),
            per_util((Ep, Ep)), per_util((Ep, Ep)), per_util((1, Ep)),
            shared((Ep, 3 * Ep)), shared((1, 3 * Ep)),
            shared((Ep, Ep)), shared((1, Ep)),
            shared((1, Ep)), shared((1, Ep)),
            shared((Ep, FF)), shared((1, FF)), shared((FF, Ep)), shared((1, Ep)),
            shared((1, Ep)), shared((1, Ep)), shared((1, Ep)), shared((1, Ep)),
            shared((nl, nl)), shared((nl, nl)),
        ],
        out_specs=per_util((N, L, Ep)),
        compiler_params=pltpu.CompilerParams(dimension_semantics=("parallel",)),
    )(targets, srcs_a, srcs_b,
      pp["ut_wqkv"], pp["ut_bqkv"], pp["ut_wo"], pp["ut_bo"],
      pp["ut_wla"], pp["ut_wlb"], pp["ut_blin"],
      pp["trm_wqkv"], pp["trm_bqkv"], pp["trm_wo"], pp["trm_bo"],
      pp["trm_g1"], pp["trm_b1"],
      pp["trm_w1"], pp["trm_bb1"], pp["trm_w2"], pp["trm_bb2"],
      pp["trm_g2"], pp["trm_b2"], pp["trm_gf"], pp["trm_bf"],
      perm_fwd, perm_bwd)

    out = out[..., :E]
    return out[0], out[1], out[2]


# ------------------------------ parameter init ------------------------------- #

def init_params(key, E, FF):
    keys = iter(jax.random.split(key, 64))

    def w(shape, scale=0.05):
        return scale * jax.random.normal(next(keys), shape, jnp.float32)

    def mha_params():
        return dict(wq=w((E, E)), bq=w((E,)), wk=w((E, E)), bk=w((E,)),
                    wv=w((E, E)), bv=w((E,)), wo=w((E, E)), bo=w((E,)))

    def util_params():
        return dict(mha=mha_params(), w_lin=w((2 * E, E)), b_lin=w((E,)))

    # trm_t / trm_v / trm_a are deepcopies of one layer (identical initial
    # weights) sharing the final affine norm -> a single parameter set.
    trm = dict(mha=mha_params(),
               w1=w((E, FF)), bb1=w((FF,)),
               w2=w((FF, E)), bb2=w((E,)),
               g1=jnp.ones((E,), jnp.float32), b1=jnp.zeros((E,), jnp.float32),
               g2=jnp.ones((E,), jnp.float32), b2=jnp.zeros((E,), jnp.float32),
               gf=jnp.ones((E,), jnp.float32), bf=jnp.zeros((E,), jnp.float32))

    return dict(ut=util_params(), uv=util_params(), ua=util_params(), trm=trm)


def pack_params(params, n_head, e_pad=128):
    """Kernel-ready packing (done once, outside jit):
       * every E-sized axis zero-padded to e_pad=128 lanes (lane-dense layouts),
       * QKV concatenated to (Ep, 3Ep) with 1/sqrt(Dh) folded into the Q columns,
       * the 2E->E fusion linear split into two (Ep, Ep) halves (no lane concat),
       * the three utilities' weights stacked along a leading axis of 3."""
    E = params["trm"]["w1"].shape[0]
    FF = params["trm"]["w1"].shape[1]
    scale = float(E // n_head) ** -0.5

    def pad2(x, r, c):
        return jnp.pad(x, ((0, r - x.shape[0]), (0, c - x.shape[1])))

    def row(v, c):
        return pad2(v.reshape(1, -1), 1, c)

    def pack_mha(p):
        wqkv = jnp.concatenate([pad2(p["wq"] * scale, e_pad, e_pad),
                                pad2(p["wk"], e_pad, e_pad),
                                pad2(p["wv"], e_pad, e_pad)], axis=1)
        bqkv = jnp.concatenate([row(p["bq"] * scale, e_pad),
                                row(p["bk"], e_pad), row(p["bv"], e_pad)], axis=1)
        return wqkv, bqkv, pad2(p["wo"], e_pad, e_pad), row(p["bo"], e_pad)

    uks = ("ut", "uv", "ua")
    wqkv, bqkv, wo, bo = zip(*(pack_mha(params[k]["mha"]) for k in uks))
    wla = [pad2(params[k]["w_lin"][:E], e_pad, e_pad) for k in uks]
    wlb = [pad2(params[k]["w_lin"][E:], e_pad, e_pad) for k in uks]
    blin = [row(params[k]["b_lin"], e_pad) for k in uks]

    t = params["trm"]
    t_wqkv, t_bqkv, t_wo, t_bo = pack_mha(t["mha"])
    return dict(
        ut_wqkv=jnp.stack(wqkv), ut_bqkv=jnp.stack(bqkv),
        ut_wo=jnp.stack(wo), ut_bo=jnp.stack(bo),
        ut_wla=jnp.stack(wla), ut_wlb=jnp.stack(wlb), ut_blin=jnp.stack(blin),
        trm_wqkv=t_wqkv, trm_bqkv=t_bqkv, trm_wo=t_wo, trm_bo=t_bo,
        trm_w1=pad2(t["w1"], e_pad, FF), trm_bb1=t["bb1"].reshape(1, -1),
        trm_w2=pad2(t["w2"], FF, e_pad), trm_bb2=row(t["bb2"], e_pad),
        trm_g1=row(t["g1"], e_pad), trm_b1=row(t["b1"], e_pad),
        trm_g2=row(t["g2"], e_pad), trm_b2=row(t["b2"], e_pad),
        trm_gf=row(t["gf"], e_pad), trm_bf=row(t["bf"], e_pad),
    )


# ----------------------------------- main ------------------------------------ #

if __name__ == "__main__":
    E, FF, N_HEAD = 40, 128, 5          # hidden divisible by n_head=5 (module default)
    N, L = 2, 8                         # batch, seq
    assert E % N_HEAD == 0 and FF % 128 == 0

    key = jax.random.PRNGKey(0)
    k1, k2, k3, kp = jax.random.split(key, 4)
    T = jax.random.normal(k1, (N, L, E), jnp.float32)
    V = jax.random.normal(k2, (N, L, E), jnp.float32)
    A = jax.random.normal(k3, (N, L, E), jnp.float32)
    packed = pack_params(init_params(kp, E, FF), N_HEAD, e_pad=128)

    fn = jax.jit(functools.partial(utility_layer, n_head=N_HEAD))
    T_out, V_out, A_out = fn(T, V, A, packed)
    jax.block_until_ready((T_out, V_out, A_out))

    assert T_out.shape == (N, L, E) and V_out.shape == (N, L, E) and A_out.shape == (N, L, E)
    assert bool(jnp.all(jnp.isfinite(T_out))) and bool(jnp.all(jnp.isfinite(V_out))) \
        and bool(jnp.all(jnp.isfinite(A_out)))
    print("KERNEL_OK")
</pallas_src>

<mosaic_0001>
module attributes {stable_mosaic.version = 11 : i64} {
  func.func @_fused_kernel(%arg0: i32, %arg1: memref<1x2x8x128xf32, #tpu.memory_space<vmem>>, %arg2: memref<1x2x8x128xf32, #tpu.memory_space<vmem>>, %arg3: memref<1x2x8x128xf32, #tpu.memory_space<vmem>>, %arg4: memref<1x128x384xf32, #tpu.memory_space<vmem>>, %arg5: memref<1x1x384xf32, #tpu.memory_space<vmem>>, %arg6: memref<1x128x128xf32, #tpu.memory_space<vmem>>, %arg7: memref<1x1x128xf32, #tpu.memory_space<vmem>>, %arg8: memref<1x128x128xf32, #tpu.memory_space<vmem>>, %arg9: memref<1x128x128xf32, #tpu.memory_space<vmem>>, %arg10: memref<1x1x128xf32, #tpu.memory_space<vmem>>, %arg11: memref<128x384xf32, #tpu.memory_space<vmem>>, %arg12: memref<1x384xf32, #tpu.memory_space<vmem>>, %arg13: memref<128x128xf32, #tpu.memory_space<vmem>>, %arg14: memref<1x128xf32, #tpu.memory_space<vmem>>, %arg15: memref<1x128xf32, #tpu.memory_space<vmem>>, %arg16: memref<1x128xf32, #tpu.memory_space<vmem>>, %arg17: memref<128x128xf32, #tpu.memory_space<vmem>>, %arg18: memref<1x128xf32, #tpu.memory_space<vmem>>, %arg19: memref<128x128xf32, #tpu.memory_space<vmem>>, %arg20: memref<1x128xf32, #tpu.memory_space<vmem>>, %arg21: memref<1x128xf32, #tpu.memory_space<vmem>>, %arg22: memref<1x128xf32, #tpu.memory_space<vmem>>, %arg23: memref<1x128xf32, #tpu.memory_space<vmem>>, %arg24: memref<1x128xf32, #tpu.memory_space<vmem>>, %arg25: memref<16x16xf32, #tpu.memory_space<vmem>>, %arg26: memref<16x16xf32, #tpu.memory_space<vmem>>, %arg27: memref<1x2x8x128xf32, #tpu.memory_space<vmem>>) attributes {dimension_semantics = [#tpu.dimension_semantics<parallel>], iteration_bounds = array<i64: 3>, scalar_prefetch = 0 : i64, scratch_operands = 0 : i64, tpu.core_type = #tpu.core_type<tc>, window_params = [{transform_indices = @transform_0, window_bounds = array<i64: 1, 2, 8, 128>}, {transform_indices = @transform_1, window_bounds = array<i64: 1, 2, 8, 128>}, {transform_indices = @transform_2, window_bounds = array<i64: 1, 2, 8, 128>}, {transform_indices = @transform_3, window_bounds = array<i64: 1, 128, 384>}, {transform_indices = @transform_4, window_bounds = array<i64: 1, 1, 384>}, {transform_indices = @transform_5, window_bounds = array<i64: 1, 128, 128>}, {transform_indices = @transform_6, window_bounds = array<i64: 1, 1, 128>}, {transform_indices = @transform_7, window_bounds = array<i64: 1, 128, 128>}, {transform_indices = @transform_8, window_bounds = array<i64: 1, 128, 128>}, {transform_indices = @transform_9, window_bounds = array<i64: 1, 1, 128>}, {pipeline_mode = #tpu.pipeline_mode<synchronous>, transform_indices = @transform_10, window_bounds = array<i64: 128, 384>}, {pipeline_mode = #tpu.pipeline_mode<synchronous>, transform_indices = @transform_11, window_bounds = array<i64: 1, 384>}, {pipeline_mode = #tpu.pipeline_mode<synchronous>, transform_indices = @transform_12, window_bounds = array<i64: 128, 128>}, {pipeline_mode = #tpu.pipeline_mode<synchronous>, transform_indices = @transform_13, window_bounds = array<i64: 1, 128>}, {pipeline_mode = #tpu.pipeline_mode<synchronous>, transform_indices = @transform_14, window_bounds = array<i64: 1, 128>}, {pipeline_mode = #tpu.pipeline_mode<synchronous>, transform_indices = @transform_15, window_bounds = array<i64: 1, 128>}, {pipeline_mode = #tpu.pipeline_mode<synchronous>, transform_indices = @transform_16, window_bounds = array<i64: 128, 128>}, {pipeline_mode = #tpu.pipeline_mode<synchronous>, transform_indices = @transform_17, window_bounds = array<i64: 1, 128>}, {pipeline_mode = #tpu.pipeline_mode<synchronous>, transform_indices = @transform_18, window_bounds = array<i64: 128, 128>}, {pipeline_mode = #tpu.pipeline_mode<synchronous>, transform_indices = @transform_19, window_bounds = array<i64: 1, 128>}, {pipeline_mode = #tpu.pipeline_mode<synchronous>, transform_indices = @transform_20, window_bounds = array<i64: 1, 128>}, {pipeline_mode = #tpu.pipeline_mode<synchronous>, transform_indices = @transform_21, window_bounds = array<i64: 1, 128>}, {pipeline_mode = #tpu.pipeline_mode<synchronous>, transform_indices = @transform_22, window_bounds = array<i64: 1, 128>}, {pipeline_mode = #tpu.pipeline_mode<synchronous>, transform_indices = @transform_23, window_bounds = array<i64: 1, 128>}, {pipeline_mode = #tpu.pipeline_mode<synchronous>, transform_indices = @transform_24, window_bounds = array<i64: 16, 16>}, {pipeline_mode = #tpu.pipeline_mode<synchronous>, transform_indices = @transform_25, window_bounds = array<i64: 16, 16>}, {transform_indices = @transform_26, window_bounds = array<i64: 1, 2, 8, 128>}]} {
    %0 = tpu.iota {dimensions = array<i32: 1>} : vector<1x128xi32>
    %c40_i32 = arith.constant 40 : i32
    %1 = vector.broadcast %c40_i32 : i32 to vector<1x128xi32>
    %2 = arith.cmpi slt, %0, %1 : vector<1x128xi32>
    %3 = arith.extui %2 : vector<1x128xi1> to vector<1x128xi32>
    %4 = arith.sitofp %3 : vector<1x128xi32> to vector<1x128xf32>
    %c0 = arith.constant 0 : index
    %c0_0 = arith.constant 0 : index
    %c0_1 = arith.constant 0 : index
    %c0_2 = arith.constant 0 : index
    %5 = vector.load %arg1[%c0, %c0_0, %c0_1, %c0_2] : memref<1x2x8x128xf32, #tpu.memory_space<vmem>>, vector<1x2x8x128xf32>
    %6 = vector.shape_cast %5 : vector<1x2x8x128xf32> to vector<2x8x128xf32>
    %7 = vector.shape_cast %6 : vector<2x8x128xf32> to vector<16x128xf32>
    %c0_3 = arith.constant 0 : index
    %c0_4 = arith.constant 0 : index
    %c0_5 = arith.constant 0 : index
    %c0_6 = arith.constant 0 : index
    %8 = vector.load %arg2[%c0_3, %c0_4, %c0_5, %c0_6] : memref<1x2x8x128xf32, #tpu.memory_space<vmem>>, vector<1x2x8x128xf32>
    %9 = vector.shape_cast %8 : vector<1x2x8x128xf32> to vector<2x8x128xf32>
    %10 = vector.shape_cast %9 : vector<2x8x128xf32> to vector<16x128xf32>
    %c0_7 = arith.constant 0 : index
    %c0_8 = arith.constant 0 : index
    %c0_9 = arith.constant 0 : index
    %c0_10 = arith.constant 0 : index
    %11 = vector.load %arg3[%c0_7, %c0_8, %c0_9, %c0_10] : memref<1x2x8x128xf32, #tpu.memory_space<vmem>>, vector<1x2x8x128xf32>
    %12 = vector.shape_cast %11 : vector<1x2x8x128xf32> to vector<2x8x128xf32>
    %13 = vector.shape_cast %12 : vector<2x8x128xf32> to vector<16x128xf32>
    %14 = tpu.concatenate %7, %10, %13 in 0 : vector<16x128xf32>, vector<16x128xf32>, vector<16x128xf32> -> vector<48x128xf32>
    %c0_11 = arith.constant 0 : index
    %c0_12 = arith.constant 0 : index
    %c0_13 = arith.constant 0 : index
    %15 = vector.load %arg4[%c0_11, %c0_12, %c0_13] : memref<1x128x384xf32, #tpu.memory_space<vmem>>, vector<1x128x384xf32>
    %16 = vector.shape_cast %15 : vector<1x128x384xf32> to vector<128x384xf32>
    %cst = arith.constant dense<0.000000e+00> : vector<48x384xf32>
    %17 = tpu.matmul %14, %16, %cst {dimension_numbers = #tpu.dot_dimension_numbers<[1], [0], [0], [1], [0, 0, 1, 1], [], []>} : vector<48x128xf32>, vector<128x384xf32>, vector<48x384xf32> -> vector<48x384xf32>
    %c0_14 = arith.constant 0 : index
    %c0_15 = arith.constant 0 : index
    %c0_16 = arith.constant 0 : index
    %18 = vector.load %arg5[%c0_14, %c0_15, %c0_16] : memref<1x1x384xf32, #tpu.memory_space<vmem>>, vector<1x1x384xf32>
    %19 = vector.shape_cast %18 : vector<1x1x384xf32> to vector<1x384xf32>
    %20 = vector.broadcast %19 : vector<1x384xf32> to vector<48x384xf32>
    %21 = arith.addf %17, %20 : vector<48x384xf32>
    %22 = vector.extract_strided_slice %21 {offsets = [0, 0], sizes = [16, 128], strides = [1, 1]} : vector<48x384xf32> to vector<16x128xf32>
    %23 = vector.extract_strided_slice %21 {offsets = [16, 128], sizes = [16, 128], strides = [1, 1]} : vector<48x384xf32> to vector<16x128xf32>
    %24 = vector.extract_strided_slice %21 {offsets = [16, 256], sizes = [16, 128], strides = [1, 1]} : vector<48x384xf32> to vector<16x128xf32>
    %25 = vector.extract_strided_slice %21 {offsets = [32, 128], sizes = [16, 128], strides = [1, 1]} : vector<48x384xf32> to vector<16x128xf32>
    %26 = vector.extract_strided_slice %21 {offsets = [32, 256], sizes = [16, 128], strides = [1, 1]} : vector<48x384xf32> to vector<16x128xf32>
    %27 = tpu.concatenate %22, %22 in 0 : vector<16x128xf32>, vector<16x128xf32> -> vector<32x128xf32>
    %28 = tpu.concatenate %23, %25 in 0 : vector<16x128xf32>, vector<16x128xf32> -> vector<32x128xf32>
    %29 = tpu.concatenate %24, %26 in 0 : vector<16x128xf32>, vector<16x128xf32> -> vector<32x128xf32>
    %c0_17 = arith.constant 0 : index
    %c0_18 = arith.constant 0 : index
    %c0_19 = arith.constant 0 : index
    %30 = vector.load %arg6[%c0_17, %c0_18, %c0_19] : memref<1x128x128xf32, #tpu.memory_space<vmem>>, vector<1x128x128xf32>
    %31 = vector.shape_cast %30 : vector<1x128x128xf32> to vector<128x128xf32>
    %32 = vector.shape_cast %27 : vector<32x128xf32> to vector<4x8x128xf32>
    %33 = vector.shape_cast %28 : vector<32x128xf32> to vector<4x8x128xf32>
    %34 = vector.shape_cast %29 : vector<32x128xf32> to vector<4x8x128xf32>
    %cst_20 = arith.constant 0.000000e+00 : f32
    %35 = vector.broadcast %cst_20 : f32 to vector<4x8x128xf32>
    %c0_i32 = arith.constant 0 : i32
    %36 = vector.broadcast %c0_i32 : i32 to vector<1x128xi32>
    %37 = arith.cmpi sge, %0, %36 : vector<1x128xi32>
    %c8_i32 = arith.constant 8 : i32
    %38 = vector.broadcast %c8_i32 : i32 to vector<1x128xi32>
    %39 = arith.cmpi slt, %0, %38 : vector<1x128xi32>
    %40 = arith.andi %37, %39 : vector<1x128xi1>
    %41 = arith.extui %40 : vector<1x128xi1> to vector<1x128xi32>
    %42 = arith.sitofp %41 : vector<1x128xi32> to vector<1x128xf32>
    %43 = vector.shape_cast %42 : vector<1x128xf32> to vector<1x1x128xf32>
    %44 = vector.broadcast %43 : vector<1x1x128xf32> to vector<4x8x128xf32>
    %45 = arith.mulf %33, %44 : vector<4x8x128xf32>
    "tpu.trace_start"() <{level = 10 : i32, message = "gqd,gkd->gqk"}> : () -> ()
    %cst_21 = arith.constant dense<0.000000e+00> : vector<4x8x8xf32>
    %46 = tpu.matmul %32, %45, %cst_21 {dimension_numbers = #tpu.dot_dimension_numbers<[2], [2], [1], [1], [0, 0, 0, 1, 1, 1], [0], [0]>} : vector<4x8x128xf32>, vector<4x8x128xf32>, vector<4x8x8xf32> -> vector<4x8x8xf32>
    "tpu.trace_stop"() : () -> ()
    %cst_22 = arith.constant dense<0xFF800000> : vector<4x8xf32>
    %47 = vector.multi_reduction <maximumf>, %46, %cst_22 [2] : vector<4x8x8xf32> to vector<4x8xf32>
    %48 = vector.shape_cast %47 : vector<4x8xf32> to vector<4x8x1xf32>
    %49 = vector.broadcast %48 : vector<4x8x1xf32> to vector<4x8x8xf32>
    %50 = arith.subf %46, %49 : vector<4x8x8xf32>
    %51 = math.exp %50 : vector<4x8x8xf32>
    %cst_23 = arith.constant dense<0.000000e+00> : vector<4x8xf32>
    %52 = vector.multi_reduction <add>, %51, %cst_23 [2] : vector<4x8x8xf32> to vector<4x8xf32>
    %53 = vector.shape_cast %52 : vector<4x8xf32> to vector<4x8x1xf32>
    %54 = tpu.reciprocal %53 {approx = true} : vector<4x8x1xf32> -> vector<4x8x1xf32>
    %55 = vector.broadcast %54 : vector<4x8x1xf32> to vector<4x8x8xf32>
    %56 = arith.mulf %51, %55 : vector<4x8x8xf32>
    %57 = vector.broadcast %43 : vector<1x1x128xf32> to vector<4x8x128xf32>
    %58 = arith.mulf %34, %57 : vector<4x8x128xf32>
    "tpu.trace_start"() <{level = 10 : i32, message = "gqk,gkd->gqd"}> : () -> ()
    %cst_24 = arith.constant dense<0.000000e+00> : vector<4x8x128xf32>
    %59 = tpu.matmul %56, %58, %cst_24 {dimension_numbers = #tpu.dot_dimension_numbers<[2], [1], [1], [2], [0, 0, 0, 1, 1, 2], [0], [0]>} : vector<4x8x8xf32>, vector<4x8x128xf32>, vector<4x8x128xf32> -> vector<4x8x128xf32>
    "tpu.trace_stop"() : () -> ()
    %60 = arith.addf %35, %59 : vector<4x8x128xf32>
    %c8_i32_25 = arith.constant 8 : i32
    %61 = vector.broadcast %c8_i32_25 : i32 to vector<1x128xi32>
    %62 = arith.cmpi sge, %0, %61 : vector<1x128xi32>
    %c16_i32 = arith.constant 16 : i32
    %63 = vector.broadcast %c16_i32 : i32 to vector<1x128xi32>
    %64 = arith.cmpi slt, %0, %63 : vector<1x128xi32>
    %65 = arith.andi %62, %64 : vector<1x128xi1>
    %66 = arith.extui %65 : vector<1x128xi1> to vector<1x128xi32>
    %67 = arith.sitofp %66 : vector<1x128xi32> to vector<1x128xf32>
    %68 = vector.shape_cast %67 : vector<1x128xf32> to vector<1x1x128xf32>
    %69 = vector.broadcast %68 : vector<1x1x128xf32> to vector<4x8x128xf32>
    %70 = arith.mulf %33, %69 : vector<4x8x128xf32>
    "tpu.trace_start"() <{level = 10 : i32, message = "gqd,gkd->gqk"}> : () -> ()
    %cst_26 = arith.constant dense<0.000000e+00> : vector<4x8x8xf32>
    %71 = tpu.matmul %32, %70, %cst_26 {dimension_numbers = #tpu.dot_dimension_numbers<[2], [2], [1], [1], [0, 0, 0, 1, 1, 1], [0], [0]>} : vector<4x8x128xf32>, vector<4x8x128xf32>, vector<4x8x8xf32> -> vector<4x8x8xf32>
    "tpu.trace_stop"() : () -> ()
    %cst_27 = arith.constant dense<0xFF800000> : vector<4x8xf32>
    %72 = vector.multi_reduction <maximumf>, %71, %cst_27 [2] : vector<4x8x8xf32> to vector<4x8xf32>
    %73 = vector.shape_cast %72 : vector<4x8xf32> to vector<4x8x1xf32>
    %74 = vector.broadcast %73 : vector<4x8x1xf32> to vector<4x8x8xf32>
    %75 = arith.subf %71, %74 : vector<4x8x8xf32>
    %76 = math.exp %75 : vector<4x8x8xf32>
    %cst_28 = arith.constant dense<0.000000e+00> : vector<4x8xf32>
    %77 = vector.multi_reduction <add>, %76, %cst_28 [2] : vector<4x8x8xf32> to vector<4x8xf32>
    %78 = vector.shape_cast %77 : vector<4x8xf32> to vector<4x8x1xf32>
    %79 = tpu.reciprocal %78 {approx = true} : vector<4x8x1xf32> -> vector<4x8x1xf32>
    %80 = vector.broadcast %79 : vector<4x8x1xf32> to vector<4x8x8xf32>
    %81 = arith.mulf %76, %80 : vector<4x8x8xf32>
    %82 = vector.broadcast %68 : vector<1x1x128xf32> to vector<4x8x128xf32>
    %83 = arith.mulf %34, %82 : vector<4x8x128xf32>
    "tpu.trace_start"() <{level = 10 : i32, message = "gqk,gkd->gqd"}> : () -> ()
    %cst_29 = arith.constant dense<0.000000e+00> : vector<4x8x128xf32>
    %84 = tpu.matmul %81, %83, %cst_29 {dimension_numbers = #tpu.dot_dimension_numbers<[2], [1], [1], [2], [0, 0, 0, 1, 1, 2], [0], [0]>} : vector<4x8x8xf32>, vector<4x8x128xf32>, vector<4x8x128xf32> -> vector<4x8x128xf32>
    "tpu.trace_stop"() : () -> ()
    %85 = arith.addf %60, %84 : vector<4x8x128xf32>
    %c16_i32_30 = arith.constant 16 : i32
    %86 = vector.broadcast %c16_i32_30 : i32 to vector<1x128xi32>
    %87 = arith.cmpi sge, %0, %86 : vector<1x128xi32>
    %c24_i32 = arith.constant 24 : i32
    %88 = vector.broadcast %c24_i32 : i32 to vector<1x128xi32>
    %89 = arith.cmpi slt, %0, %88 : vector<1x128xi32>
    %90 = arith.andi %87, %89 : vector<1x128xi1>
    %91 = arith.extui %90 : vector<1x128xi1> to vector<1x128xi32>
    %92 = arith.sitofp %91 : vector<1x128xi32> to vector<1x128xf32>
    %93 = vector.shape_cast %92 : vector<1x128xf32> to vector<1x1x128xf32>
    %94 = vector.broadcast %93 : vector<1x1x128xf32> to vector<4x8x128xf32>
    %95 = arith.mulf %33, %94 : vector<4x8x128xf32>
    "tpu.trace_start"() <{level = 10 : i32, message = "gqd,gkd->gqk"}> : () -> ()
    %cst_31 = arith.constant dense<0.000000e+00> : vector<4x8x8xf32>
    %96 = tpu.matmul %32, %95, %cst_31 {dimension_numbers = #tpu.dot_dimension_numbers<[2], [2], [1], [1], [0, 0, 0, 1, 1, 1], [0], [0]>} : vector<4x8x128xf32>, vector<4x8x128xf32>, vector<4x8x8xf32> -> vector<4x8x8xf32>
    "tpu.trace_stop"() : () -> ()
    %cst_32 = arith.constant dense<0xFF800000> : vector<4x8xf32>
    %97 = vector.multi_reduction <maximumf>, %96, %cst_32 [2] : vector<4x8x8xf32> to vector<4x8xf32>
    %98 = vector.shape_cast %97 : vector<4x8xf32> to vector<4x8x1xf32>
    %99 = vector.broadcast %98 : vector<4x8x1xf32> to vector<4x8x8xf32>
    %100 = arith.subf %96, %99 : vector<4x8x8xf32>
    %101 = math.exp %100 : vector<4x8x8xf32>
    %cst_33 = arith.constant dense<0.000000e+00> : vector<4x8xf32>
    %102 = vector.multi_reduction <add>, %101, %cst_33 [2] : vector<4x8x8xf32> to vector<4x8xf32>
    %103 = vector.shape_cast %102 : vector<4x8xf32> to vector<4x8x1xf32>
    %104 = tpu.reciprocal %103 {approx = true} : vector<4x8x1xf32> -> vector<4x8x1xf32>
    %105 = vector.broadcast %104 : vector<4x8x1xf32> to vector<4x8x8xf32>
    %106 = arith.mulf %101, %105 : vector<4x8x8xf32>
    %107 = vector.broadcast %93 : vector<1x1x128xf32> to vector<4x8x128xf32>
    %108 = arith.mulf %34, %107 : vector<4x8x128xf32>
    "tpu.trace_start"() <{level = 10 : i32, message = "gqk,gkd->gqd"}> : () -> ()
    %cst_34 = arith.constant dense<0.000000e+00> : vector<4x8x128xf32>
    %109 = tpu.matmul %106, %108, %cst_34 {dimension_numbers = #tpu.dot_dimension_numbers<[2], [1], [1], [2], [0, 0, 0, 1, 1, 2], [0], [0]>} : vector<4x8x8xf32>, vector<4x8x128xf32>, vector<4x8x128xf32> -> vector<4x8x128xf32>
    "tpu.trace_stop"() : () -> ()
    %110 = arith.addf %85, %109 : vector<4x8x128xf32>
    %c24_i32_35 = arith.constant 24 : i32
    %111 = vector.broadcast %c24_i32_35 : i32 to vector<1x128xi32>
    %112 = arith.cmpi sge, %0, %111 : vector<1x128xi32>
    %c32_i32 = arith.constant 32 : i32
    %113 = vector.broadcast %c32_i32 : i32 to vector<1x128xi32>
    %114 = arith.cmpi slt, %0, %113 : vector<1x128xi32>
    %115 = arith.andi %112, %114 : vector<1x128xi1>
    %116 = arith.extui %115 : vector<1x128xi1> to vector<1x128xi32>
    %117 = arith.sitofp %116 : vector<1x128xi32> to vector<1x128xf32>
    %118 = vector.shape_cast %117 : vector<1x128xf32> to vector<1x1x128xf32>
    %119 = vector.broadcast %118 : vector<1x1x128xf32> to vector<4x8x128xf32>
    %120 = arith.mulf %33, %119 : vector<4x8x128xf32>
    "tpu.trace_start"() <{level = 10 : i32, message = "gqd,gkd->gqk"}> : () -> ()
    %cst_36 = arith.constant dense<0.000000e+00> : vector<4x8x8xf32>
    %121 = tpu.matmul %32, %120, %cst_36 {dimension_numbers = #tpu.dot_dimension_numbers<[2], [2], [1], [1], [0, 0, 0, 1, 1, 1], [0], [0]>} : vector<4x8x128xf32>, vector<4x8x128xf32>, vector<4x8x8xf32> -> vector<4x8x8xf32>
    "tpu.trace_stop"() : () -> ()
    %cst_37 = arith.constant dense<0xFF800000> : vector<4x8xf32>
    %122 = vector.multi_reduction <maximumf>, %121, %cst_37 [2] : vector<4x8x8xf32> to vector<4x8xf32>
    %123 = vector.shape_cast %122 : vector<4x8xf32> to vector<4x8x1xf32>
    %124 = vector.broadcast %123 : vector<4x8x1xf32> to vector<4x8x8xf32>
    %125 = arith.subf %121, %124 : vector<4x8x8xf32>
    %126 = math.exp %125 : vector<4x8x8xf32>
    %cst_38 = arith.constant dense<0.000000e+00> : vector<4x8xf32>
    %127 = vector.multi_reduction <add>, %126, %cst_38 [2] : vector<4x8x8xf32> to vector<4x8xf32>
    %128 = vector.shape_cast %127 : vector<4x8xf32> to vector<4x8x1xf32>
    %129 = tpu.reciprocal %128 {approx = true} : vector<4x8x1xf32> -> vector<4x8x1xf32>
    %130 = vector.broadcast %129 : vector<4x8x1xf32> to vector<4x8x8xf32>
    %131 = arith.mulf %126, %130 : vector<4x8x8xf32>
    %132 = vector.broadcast %118 : vector<1x1x128xf32> to vector<4x8x128xf32>
    %133 = arith.mulf %34, %132 : vector<4x8x128xf32>
    "tpu.trace_start"() <{level = 10 : i32, message = "gqk,gkd->gqd"}> : () -> ()
    %cst_39 = arith.constant dense<0.000000e+00> : vector<4x8x128xf32>
    %134 = tpu.matmul %131, %133, %cst_39 {dimension_numbers = #tpu.dot_dimension_numbers<[2], [1], [1], [2], [0, 0, 0, 1, 1, 2], [0], [0]>} : vector<4x8x8xf32>, vector<4x8x128xf32>, vector<4x8x128xf32> -> vector<4x8x128xf32>
    "tpu.trace_stop"() : () -> ()
    %135 = arith.addf %110, %134 : vector<4x8x128xf32>
    %c32_i32_40 = arith.constant 32 : i32
    %136 = vector.broadcast %c32_i32_40 : i32 to vector<1x128xi32>
    %137 = arith.cmpi sge, %0, %136 : vector<1x128xi32>
    %c40_i32_41 = arith.constant 40 : i32
    %138 = vector.broadcast %c40_i32_41 : i32 to vector<1x128xi32>
    %139 = arith.cmpi slt, %0, %138 : vector<1x128xi32>
    %140 = arith.andi %137, %139 : vector<1x128xi1>
    %141 = arith.extui %140 : vector<1x128xi1> to vector<1x128xi32>
    %142 = arith.sitofp %141 : vector<1x128xi32> to vector<1x128xf32>
    %143 = vector.shape_cast %142 : vector<1x128xf32> to vector<1x1x128xf32>
    %144 = vector.broadcast %143 : vector<1x1x128xf32> to vector<4x8x128xf32>
    %145 = arith.mulf %33, %144 : vector<4x8x128xf32>
    "tpu.trace_start"() <{level = 10 : i32, message = "gqd,gkd->gqk"}> : () -> ()
    %cst_42 = arith.constant dense<0.000000e+00> : vector<4x8x8xf32>
    %146 = tpu.matmul %32, %145, %cst_42 {dimension_numbers = #tpu.dot_dimension_numbers<[2], [2], [1], [1], [0, 0, 0, 1, 1, 1], [0], [0]>} : vector<4x8x128xf32>, vector<4x8x128xf32>, vector<4x8x8xf32> -> vector<4x8x8xf32>
    "tpu.trace_stop"() : () -> ()
    %cst_43 = arith.constant dense<0xFF800000> : vector<4x8xf32>
    %147 = vector.multi_reduction <maximumf>, %146, %cst_43 [2] : vector<4x8x8xf32> to vector<4x8xf32>
    %148 = vector.shape_cast %147 : vector<4x8xf32> to vector<4x8x1xf32>
    %149 = vector.broadcast %148 : vector<4x8x1xf32> to vector<4x8x8xf32>
    %150 = arith.subf %146, %149 : vector<4x8x8xf32>
    %151 = math.exp %150 : vector<4x8x8xf32>
    %cst_44 = arith.constant dense<0.000000e+00> : vector<4x8xf32>
    %152 = vector.multi_reduction <add>, %151, %cst_44 [2] : vector<4x8x8xf32> to vector<4x8xf32>
    %153 = vector.shape_cast %152 : vector<4x8xf32> to vector<4x8x1xf32>
    %154 = tpu.reciprocal %153 {approx = true} : vector<4x8x1xf32> -> vector<4x8x1xf32>
    %155 = vector.broadcast %154 : vector<4x8x1xf32> to vector<4x8x8xf32>
    %156 = arith.mulf %151, %155 : vector<4x8x8xf32>
    %157 = vector.broadcast %143 : vector<1x1x128xf32> to vector<4x8x128xf32>
    %158 = arith.mulf %34, %157 : vector<4x8x128xf32>
    "tpu.trace_start"() <{level = 10 : i32, message = "gqk,gkd->gqd"}> : () -> ()
    %cst_45 = arith.constant dense<0.000000e+00> : vector<4x8x128xf32>
    %159 = tpu.matmul %156, %158, %cst_45 {dimension_numbers = #tpu.dot_dimension_numbers<[2], [1], [1], [2], [0, 0, 0, 1, 1, 2], [0], [0]>} : vector<4x8x8xf32>, vector<4x8x128xf32>, vector<4x8x128xf32> -> vector<4x8x128xf32>
    "tpu.trace_stop"() : () -> ()
    %160 = arith.addf %135, %159 : vector<4x8x128xf32>
    %161 = vector.shape_cast %160 : vector<4x8x128xf32> to vector<32x128xf32>
    %cst_46 = arith.constant dense<0.000000e+00> : vector<32x128xf32>
    %162 = tpu.matmul %161, %31, %cst_46 {dimension_numbers = #tpu.dot_dimension_numbers<[1], [0], [0], [1], [0, 0, 1, 1], [], []>} : vector<32x128xf32>, vector<128x128xf32>, vector<32x128xf32> -> vector<32x128xf32>
    %c0_47 = arith.constant 0 : index
    %c0_48 = arith.constant 0 : index
    %c0_49 = arith.constant 0 : index
    %163 = vector.load %arg7[%c0_47, %c0_48, %c0_49] : memref<1x1x128xf32, #tpu.memory_space<vmem>>, vector<1x1x128xf32>
    %164 = vector.shape_cast %163 : vector<1x1x128xf32> to vector<1x128xf32>
    %165 = vector.broadcast %164 : vector<1x128xf32> to vector<32x128xf32>
    %166 = arith.addf %162, %165 : vector<32x128xf32>
    %167 = vector.extract_strided_slice %166 {offsets = [0, 0], sizes = [16, 128], strides = [1, 1]} : vector<32x128xf32> to vector<16x128xf32>
    %168 = vector.extract_strided_slice %166 {offsets = [16, 0], sizes = [16, 128], strides = [1, 1]} : vector<32x128xf32> to vector<16x128xf32>
    %169 = arith.addf %167, %7 : vector<16x128xf32>
    %cst_50 = arith.constant dense<0.000000e+00> : vector<16xf32>
    %170 = vector.multi_reduction <add>, %169, %cst_50 [1] : vector<16x128xf32> to vector<16xf32>
    %171 = vector.shape_cast %170 : vector<16xf32> to vector<16x1xf32>
    %cst_51 = arith.constant 2.500000e-02 : f32
    %172 = vector.broadcast %cst_51 : f32 to vector<16x1xf32>
    %173 = arith.mulf %171, %172 : vector<16x1xf32>
    %174 = vector.broadcast %173 : vector<16x1xf32> to vector<16x128xf32>
    %175 = arith.subf %169, %174 : vector<16x128xf32>
    %176 = vector.broadcast %4 : vector<1x128xf32> to vector<16x128xf32>
    %177 = arith.mulf %175, %176 : vector<16x128xf32>
    %178 = arith.mulf %177, %177 : vector<16x128xf32>
    %cst_52 = arith.constant dense<0.000000e+00> : vector<16xf32>
    %179 = vector.multi_reduction <add>, %178, %cst_52 [1] : vector<16x128xf32> to vector<16xf32>
    %180 = vector.shape_cast %179 : vector<16xf32> to vector<16x1xf32>
    %cst_53 = arith.constant 2.500000e-02 : f32
    %181 = vector.broadcast %cst_53 : f32 to vector<16x1xf32>
    %182 = arith.mulf %180, %181 : vector<16x1xf32>
    %cst_54 = arith.constant 9.99999974E-6 : f32
    %183 = vector.broadcast %cst_54 : f32 to vector<16x1xf32>
    %184 = arith.addf %182, %183 : vector<16x1xf32>
    %185 = math.rsqrt %184 : vector<16x1xf32>
    %186 = vector.broadcast %185 : vector<16x1xf32> to vector<16x128xf32>
    %187 = arith.mulf %177, %186 : vector<16x128xf32>
    %188 = arith.addf %168, %7 : vector<16x128xf32>
    %cst_55 = arith.constant dense<0.000000e+00> : vector<16xf32>
    %189 = vector.multi_reduction <add>, %188, %cst_55 [1] : vector<16x128xf32> to vector<16xf32>
    %190 = vector.shape_cast %189 : vector<16xf32> to vector<16x1xf32>
    %cst_56 = arith.constant 2.500000e-02 : f32
    %191 = vector.broadcast %cst_56 : f32 to vector<16x1xf32>
    %192 = arith.mulf %190, %191 : vector<16x1xf32>
    %193 = vector.broadcast %192 : vector<16x1xf32> to vector<16x128xf32>
    %194 = arith.subf %188, %193 : vector<16x128xf32>
    %195 = vector.broadcast %4 : vector<1x128xf32> to vector<16x128xf32>
    %196 = arith.mulf %194, %195 : vector<16x128xf32>
    %197 = arith.mulf %196, %196 : vector<16x128xf32>
    %cst_57 = arith.constant dense<0.000000e+00> : vector<16xf32>
    %198 = vector.multi_reduction <add>, %197, %cst_57 [1] : vector<16x128xf32> to vector<16xf32>
    %199 = vector.shape_cast %198 : vector<16xf32> to vector<16x1xf32>
    %cst_58 = arith.constant 2.500000e-02 : f32
    %200 = vector.broadcast %cst_58 : f32 to vector<16x1xf32>
    %201 = arith.mulf %199, %200 : vector<16x1xf32>
    %cst_59 = arith.constant 9.99999974E-6 : f32
    %202 = vector.broadcast %cst_59 : f32 to vector<16x1xf32>
    %203 = arith.addf %201, %202 : vector<16x1xf32>
    %204 = math.rsqrt %203 : vector<16x1xf32>
    %205 = vector.broadcast %204 : vector<16x1xf32> to vector<16x128xf32>
    %206 = arith.mulf %196, %205 : vector<16x128xf32>
    %c0_60 = arith.constant 0 : index
    %c0_61 = arith.constant 0 : index
    %c0_62 = arith.constant 0 : index
    %207 = vector.load %arg8[%c0_60, %c0_61, %c0_62] : memref<1x128x128xf32, #tpu.memory_space<vmem>>, vector<1x128x128xf32>
    %208 = vector.shape_cast %207 : vector<1x128x128xf32> to vector<128x128xf32>
    %cst_63 = arith.constant dense<0.000000e+00> : vector<16x128xf32>
    %209 = tpu.matmul %187, %208, %cst_63 {dimension_numbers = #tpu.dot_dimension_numbers<[1], [0], [0], [1], [0, 0, 1, 1], [], []>} : vector<16x128xf32>, vector<128x128xf32>, vector<16x128xf32> -> vector<16x128xf32>
    %c0_64 = arith.constant 0 : index
    %c0_65 = arith.constant 0 : index
    %c0_66 = arith.constant 0 : index
    %210 = vector.load %arg9[%c0_64, %c0_65, %c0_66] : memref<1x128x128xf32, #tpu.memory_space<vmem>>, vector<1x128x128xf32>
    %211 = vector.shape_cast %210 : vector<1x128x128xf32> to vector<128x128xf32>
    %cst_67 = arith.constant dense<0.000000e+00> : vector<16x128xf32>
    %212 = tpu.matmul %206, %211, %cst_67 {dimension_numbers = #tpu.dot_dimension_numbers<[1], [0], [0], [1], [0, 0, 1, 1], [], []>} : vector<16x128xf32>, vector<128x128xf32>, vector<16x128xf32> -> vector<16x128xf32>
    %213 = arith.addf %209, %212 : vector<16x128xf32>
    %c0_68 = arith.constant 0 : index
    %c0_69 = arith.constant 0 : index
    %c0_70 = arith.constant 0 : index
    %214 = vector.load %arg10[%c0_68, %c0_69, %c0_70] : memref<1x1x128xf32, #tpu.memory_space<vmem>>, vector<1x1x128xf32>
    %215 = vector.shape_cast %214 : vector<1x1x128xf32> to vector<1x128xf32>
    %216 = vector.broadcast %215 : vector<1x128xf32> to vector<16x128xf32>
    %217 = arith.addf %213, %216 : vector<16x128xf32>
    %cst_71 = arith.constant 0.000000e+00 : f32
    %218 = vector.broadcast %cst_71 : f32 to vector<16x128xf32>
    %219 = arith.maximumf %217, %218 : vector<16x128xf32>
    %220 = arith.addf %219, %7 : vector<16x128xf32>
    %cst_72 = arith.constant dense<0.000000e+00> : vector<16xf32>
    %221 = vector.multi_reduction <add>, %220, %cst_72 [1] : vector<16x128xf32> to vector<16xf32>
    %222 = vector.shape_cast %221 : vector<16xf32> to vector<16x1xf32>
    %cst_73 = arith.constant 2.500000e-02 : f32
    %223 = vector.broadcast %cst_73 : f32 to vector<16x1xf32>
    %224 = arith.mulf %222, %223 : vector<16x1xf32>
    %225 = vector.broadcast %224 : vector<16x1xf32> to vector<16x128xf32>
    %226 = arith.subf %220, %225 : vector<16x128xf32>
    %227 = vector.broadcast %4 : vector<1x128xf32> to vector<16x128xf32>
    %228 = arith.mulf %226, %227 : vector<16x128xf32>
    %229 = arith.mulf %228, %228 : vector<16x128xf32>
    %cst_74 = arith.constant dense<0.000000e+00> : vector<16xf32>
    %230 = vector.multi_reduction <add>, %229, %cst_74 [1] : vector<16x128xf32> to vector<16xf32>
    %231 = vector.shape_cast %230 : vector<16xf32> to vector<16x1xf32>
    %cst_75 = arith.constant 2.500000e-02 : f32
    %232 = vector.broadcast %cst_75 : f32 to vector<16x1xf32>
    %233 = arith.mulf %231, %232 : vector<16x1xf32>
    %cst_76 = arith.constant 9.99999974E-6 : f32
    %234 = vector.broadcast %cst_76 : f32 to vector<16x1xf32>
    %235 = arith.addf %233, %234 : vector<16x1xf32>
    %236 = math.rsqrt %235 : vector<16x1xf32>
    %237 = vector.broadcast %236 : vector<16x1xf32> to vector<16x128xf32>
    %238 = arith.mulf %228, %237 : vector<16x128xf32>
    %c0_77 = arith.constant 0 : index
    %c0_78 = arith.constant 0 : index
    %239 = vector.load %arg25[%c0_77, %c0_78] : memref<16x16xf32, #tpu.memory_space<vmem>>, vector<16x16xf32>
    %cst_79 = arith.constant dense<0.000000e+00> : vector<16x128xf32>
    %240 = tpu.matmul %239, %238, %cst_79 {dimension_numbers = #tpu.dot_dimension_numbers<[1], [0], [0], [1], [0, 0, 1, 1], [], []>} : vector<16x16xf32>, vector<16x128xf32>, vector<16x128xf32> -> vector<16x128xf32>
    %c0_80 = arith.constant 0 : index
    %c0_81 = arith.constant 0 : index
    %241 = vector.load %arg11[%c0_80, %c0_81] : memref<128x384xf32, #tpu.memory_space<vmem>>, vector<128x384xf32>
    %cst_82 = arith.constant dense<0.000000e+00> : vector<16x384xf32>
    %242 = tpu.matmul %240, %241, %cst_82 {dimension_numbers = #tpu.dot_dimension_numbers<[1], [0], [0], [1], [0, 0, 1, 1], [], []>} : vector<16x128xf32>, vector<128x384xf32>, vector<16x384xf32> -> vector<16x384xf32>
    %c0_83 = arith.constant 0 : index
    %c0_84 = arith.constant 0 : index
    %243 = vector.load %arg12[%c0_83, %c0_84] : memref<1x384xf32, #tpu.memory_space<vmem>>, vector<1x384xf32>
    %244 = vector.broadcast %243 : vector<1x384xf32> to vector<16x384xf32>
    %245 = arith.addf %242, %244 : vector<16x384xf32>
    %246 = vector.extract_strided_slice %245 {offsets = [0, 0], sizes = [16, 128], strides = [1, 1]} : vector<16x384xf32> to vector<16x128xf32>
    %247 = vector.extract_strided_slice %245 {offsets = [0, 128], sizes = [16, 128], strides = [1, 1]} : vector<16x384xf32> to vector<16x128xf32>
    %248 = vector.extract_strided_slice %245 {offsets = [0, 256], sizes = [16, 128], strides = [1, 1]} : vector<16x384xf32> to vector<16x128xf32>
    %c0_85 = arith.constant 0 : index
    %c0_86 = arith.constant 0 : index
    %249 = vector.load %arg13[%c0_85, %c0_86] : memref<128x128xf32, #tpu.memory_space<vmem>>, vector<128x128xf32>
    %250 = vector.shape_cast %246 : vector<16x128xf32> to vector<8x2x128xf32>
    %251 = vector.shape_cast %247 : vector<16x128xf32> to vector<8x2x128xf32>
    %252 = vector.shape_cast %248 : vector<16x128xf32> to vector<8x2x128xf32>
    %cst_87 = arith.constant 0.000000e+00 : f32
    %253 = vector.broadcast %cst_87 : f32 to vector<8x2x128xf32>
    %c0_i32_88 = arith.constant 0 : i32
    %254 = vector.broadcast %c0_i32_88 : i32 to vector<1x128xi32>
    %255 = arith.cmpi sge, %0, %254 : vector<1x128xi32>
    %c8_i32_89 = arith.constant 8 : i32
    %256 = vector.broadcast %c8_i32_89 : i32 to vector<1x128xi32>
    %257 = arith.cmpi slt, %0, %256 : vector<1x128xi32>
    %258 = arith.andi %255, %257 : vector<1x128xi1>
    %259 = arith.extui %258 : vector<1x128xi1> to vector<1x128xi32>
    %260 = arith.sitofp %259 : vector<1x128xi32> to vector<1x128xf32>
    %261 = vector.shape_cast %260 : vector<1x128xf32> to vector<1x1x128xf32>
    %262 = vector.broadcast %261 : vector<1x1x128xf32> to vector<8x2x128xf32>
    %263 = arith.mulf %251, %262 : vector<8x2x128xf32>
    "tpu.trace_start"() <{level = 10 : i32, message = "gqd,gkd->gqk"}> : () -> ()
    %cst_90 = arith.constant dense<0.000000e+00> : vector<8x2x2xf32>
    %264 = tpu.matmul %250, %263, %cst_90 {dimension_numbers = #tpu.dot_dimension_numbers<[2], [2], [1], [1], [0, 0, 0, 1, 1, 1], [0], [0]>} : vector<8x2x128xf32>, vector<8x2x128xf32>, vector<8x2x2xf32> -> vector<8x2x2xf32>
    "tpu.trace_stop"() : () -> ()
    %cst_91 = arith.constant dense<0xFF800000> : vector<8x2xf32>
    %265 = vector.multi_reduction <maximumf>, %264, %cst_91 [2] : vector<8x2x2xf32> to vector<8x2xf32>
    %266 = vector.shape_cast %265 : vector<8x2xf32> to vector<8x2x1xf32>
    %267 = vector.broadcast %266 : vector<8x2x1xf32> to vector<8x2x2xf32>
    %268 = arith.subf %264, %267 : vector<8x2x2xf32>
    %269 = math.exp %268 : vector<8x2x2xf32>
    %cst_92 = arith.constant dense<0.000000e+00> : vector<8x2xf32>
    %270 = vector.multi_reduction <add>, %269, %cst_92 [2] : vector<8x2x2xf32> to vector<8x2xf32>
    %271 = vector.shape_cast %270 : vector<8x2xf32> to vector<8x2x1xf32>
    %272 = tpu.reciprocal %271 {approx = true} : vector<8x2x1xf32> -> vector<8x2x1xf32>
    %273 = vector.broadcast %272 : vector<8x2x1xf32> to vector<8x2x2xf32>
    %274 = arith.mulf %269, %273 : vector<8x2x2xf32>
    %275 = vector.broadcast %261 : vector<1x1x128xf32> to vector<8x2x128xf32>
    %276 = arith.mulf %252, %275 : vector<8x2x128xf32>
    "tpu.trace_start"() <{level = 10 : i32, message = "gqk,gkd->gqd"}> : () -> ()
    %cst_93 = arith.constant dense<0.000000e+00> : vector<8x2x128xf32>
    %277 = tpu.matmul %274, %276, %cst_93 {dimension_numbers = #tpu.dot_dimension_numbers<[2], [1], [1], [2], [0, 0, 0, 1, 1, 2], [0], [0]>} : vector<8x2x2xf32>, vector<8x2x128xf32>, vector<8x2x128xf32> -> vector<8x2x128xf32>
    "tpu.trace_stop"() : () -> ()
    %278 = arith.addf %253, %277 : vector<8x2x128xf32>
    %c8_i32_94 = arith.constant 8 : i32
    %279 = vector.broadcast %c8_i32_94 : i32 to vector<1x128xi32>
    %280 = arith.cmpi sge, %0, %279 : vector<1x128xi32>
    %c16_i32_95 = arith.constant 16 : i32
    %281 = vector.broadcast %c16_i32_95 : i32 to vector<1x128xi32>
    %282 = arith.cmpi slt, %0, %281 : vector<1x128xi32>
    %283 = arith.andi %280, %282 : vector<1x128xi1>
    %284 = arith.extui %283 : vector<1x128xi1> to vector<1x128xi32>
    %285 = arith.sitofp %284 : vector<1x128xi32> to vector<1x128xf32>
    %286 = vector.shape_cast %285 : vector<1x128xf32> to vector<1x1x128xf32>
    %287 = vector.broadcast %286 : vector<1x1x128xf32> to vector<8x2x128xf32>
    %288 = arith.mulf %251, %287 : vector<8x2x128xf32>
    "tpu.trace_start"() <{level = 10 : i32, message = "gqd,gkd->gqk"}> : () -> ()
    %cst_96 = arith.constant dense<0.000000e+00> : vector<8x2x2xf32>
    %289 = tpu.matmul %250, %288, %cst_96 {dimension_numbers = #tpu.dot_dimension_numbers<[2], [2], [1], [1], [0, 0, 0, 1, 1, 1], [0], [0]>} : vector<8x2x128xf32>, vector<8x2x128xf32>, vector<8x2x2xf32> -> vector<8x2x2xf32>
    "tpu.trace_stop"() : () -> ()
    %cst_97 = arith.constant dense<0xFF800000> : vector<8x2xf32>
    %290 = vector.multi_reduction <maximumf>, %289, %cst_97 [2] : vector<8x2x2xf32> to vector<8x2xf32>
    %291 = vector.shape_cast %290 : vector<8x2xf32> to vector<8x2x1xf32>
    %292 = vector.broadcast %291 : vector<8x2x1xf32> to vector<8x2x2xf32>
    %293 = arith.subf %289, %292 : vector<8x2x2xf32>
    %294 = math.exp %293 : vector<8x2x2xf32>
    %cst_98 = arith.constant dense<0.000000e+00> : vector<8x2xf32>
    %295 = vector.multi_reduction <add>, %294, %cst_98 [2] : vector<8x2x2xf32> to vector<8x2xf32>
    %296 = vector.shape_cast %295 : vector<8x2xf32> to vector<8x2x1xf32>
    %297 = tpu.reciprocal %296 {approx = true} : vector<8x2x1xf32> -> vector<8x2x1xf32>
    %298 = vector.broadcast %297 : vector<8x2x1xf32> to vector<8x2x2xf32>
    %299 = arith.mulf %294, %298 : vector<8x2x2xf32>
    %300 = vector.broadcast %286 : vector<1x1x128xf32> to vector<8x2x128xf32>
    %301 = arith.mulf %252, %300 : vector<8x2x128xf32>
    "tpu.trace_start"() <{level = 10 : i32, message = "gqk,gkd->gqd"}> : () -> ()
    %cst_99 = arith.constant dense<0.000000e+00> : vector<8x2x128xf32>
    %302 = tpu.matmul %299, %301, %cst_99 {dimension_numbers = #tpu.dot_dimension_numbers<[2], [1], [1], [2], [0, 0, 0, 1, 1, 2], [0], [0]>} : vector<8x2x2xf32>, vector<8x2x128xf32>, vector<8x2x128xf32> -> vector<8x2x128xf32>
    "tpu.trace_stop"() : () -> ()
    %303 = arith.addf %278, %302 : vector<8x2x128xf32>
    %c16_i32_100 = arith.constant 16 : i32
    %304 = vector.broadcast %c16_i32_100 : i32 to vector<1x128xi32>
    %305 = arith.cmpi sge, %0, %304 : vector<1x128xi32>
    %c24_i32_101 = arith.constant 24 : i32
    %306 = vector.broadcast %c24_i32_101 : i32 to vector<1x128xi32>
    %307 = arith.cmpi slt, %0, %306 : vector<1x128xi32>
    %308 = arith.andi %305, %307 : vector<1x128xi1>
    %309 = arith.extui %308 : vector<1x128xi1> to vector<1x128xi32>
    %310 = arith.sitofp %309 : vector<1x128xi32> to vector<1x128xf32>
    %311 = vector.shape_cast %310 : vector<1x128xf32> to vector<1x1x128xf32>
    %312 = vector.broadcast %311 : vector<1x1x128xf32> to vector<8x2x128xf32>
    %313 = arith.mulf %251, %312 : vector<8x2x128xf32>
    "tpu.trace_start"() <{level = 10 : i32, message = "gqd,gkd->gqk"}> : () -> ()
    %cst_102 = arith.constant dense<0.000000e+00> : vector<8x2x2xf32>
    %314 = tpu.matmul %250, %313, %cst_102 {dimension_numbers = #tpu.dot_dimension_numbers<[2], [2], [1], [1], [0, 0, 0, 1, 1, 1], [0], [0]>} : vector<8x2x128xf32>, vector<8x2x128xf32>, vector<8x2x2xf32> -> vector<8x2x2xf32>
    "tpu.trace_stop"() : () -> ()
    %cst_103 = arith.constant dense<0xFF800000> : vector<8x2xf32>
    %315 = vector.multi_reduction <maximumf>, %314, %cst_103 [2] : vector<8x2x2xf32> to vector<8x2xf32>
    %316 = vector.shape_cast %315 : vector<8x2xf32> to vector<8x2x1xf32>
    %317 = vector.broadcast %316 : vector<8x2x1xf32> to vector<8x2x2xf32>
    %318 = arith.subf %314, %317 : vector<8x2x2xf32>
    %319 = math.exp %318 : vector<8x2x2xf32>
    %cst_104 = arith.constant dense<0.000000e+00> : vector<8x2xf32>
    %320 = vector.multi_reduction <add>, %319, %cst_104 [2] : vector<8x2x2xf32> to vector<8x2xf32>
    %321 = vector.shape_cast %320 : vector<8x2xf32> to vector<8x2x1xf32>
    %322 = tpu.reciprocal %321 {approx = true} : vector<8x2x1xf32> -> vector<8x2x1xf32>
    %323 = vector.broadcast %322 : vector<8x2x1xf32> to vector<8x2x2xf32>
    %324 = arith.mulf %319, %323 : vector<8x2x2xf32>
    %325 = vector.broadcast %311 : vector<1x1x128xf32> to vector<8x2x128xf32>
    %326 = arith.mulf %252, %325 : vector<8x2x128xf32>
    "tpu.trace_start"() <{level = 10 : i32, message = "gqk,gkd->gqd"}> : () -> ()
    %cst_105 = arith.constant dense<0.000000e+00> : vector<8x2x128xf32>
    %327 = tpu.matmul %324, %326, %cst_105 {dimension_numbers = #tpu.dot_dimension_numbers<[2], [1], [1], [2], [0, 0, 0, 1, 1, 2], [0], [0]>} : vector<8x2x2xf32>, vector<8x2x128xf32>, vector<8x2x128xf32> -> vector<8x2x128xf32>
    "tpu.trace_stop"() : () -> ()
    %328 = arith.addf %303, %327 : vector<8x2x128xf32>
    %c24_i32_106 = arith.constant 24 : i32
    %329 = vector.broadcast %c24_i32_106 : i32 to vector<1x128xi32>
    %330 = arith.cmpi sge, %0, %329 : vector<1x128xi32>
    %c32_i32_107 = arith.constant 32 : i32
    %331 = vector.broadcast %c32_i32_107 : i32 to vector<1x128xi32>
    %332 = arith.cmpi slt, %0, %331 : vector<1x128xi32>
    %333 = arith.andi %330, %332 : vector<1x128xi1>
    %334 = arith.extui %333 : vector<1x128xi1> to vector<1x128xi32>
    %335 = arith.sitofp %334 : vector<1x128xi32> to vector<1x128xf32>
    %336 = vector.shape_cast %335 : vector<1x128xf32> to vector<1x1x128xf32>
    %337 = vector.broadcast %336 : vector<1x1x128xf32> to vector<8x2x128xf32>
    %338 = arith.mulf %251, %337 : vector<8x2x128xf32>
    "tpu.trace_start"() <{level = 10 : i32, message = "gqd,gkd->gqk"}> : () -> ()
    %cst_108 = arith.constant dense<0.000000e+00> : vector<8x2x2xf32>
    %339 = tpu.matmul %250, %338, %cst_108 {dimension_numbers = #tpu.dot_dimension_numbers<[2], [2], [1], [1], [0, 0, 0, 1, 1, 1], [0], [0]>} : vector<8x2x128xf32>, vector<8x2x128xf32>, vector<8x2x2xf32> -> vector<8x2x2xf32>
    "tpu.trace_stop"() : () -> ()
    %cst_109 = arith.constant dense<0xFF800000> : vector<8x2xf32>
    %340 = vector.multi_reduction <maximumf>, %339, %cst_109 [2] : vector<8x2x2xf32> to vector<8x2xf32>
    %341 = vector.shape_cast %340 : vector<8x2xf32> to vector<8x2x1xf32>
    %342 = vector.broadcast %341 : vector<8x2x1xf32> to vector<8x2x2xf32>
    %343 = arith.subf %339, %342 : vector<8x2x2xf32>
    %344 = math.exp %343 : vector<8x2x2xf32>
    %cst_110 = arith.constant dense<0.000000e+00> : vector<8x2xf32>
    %345 = vector.multi_reduction <add>, %344, %cst_110 [2] : vector<8x2x2xf32> to vector<8x2xf32>
    %346 = vector.shape_cast %345 : vector<8x2xf32> to vector<8x2x1xf32>
    %347 = tpu.reciprocal %346 {approx = true} : vector<8x2x1xf32> -> vector<8x2x1xf32>
    %348 = vector.broadcast %347 : vector<8x2x1xf32> to vector<8x2x2xf32>
    %349 = arith.mulf %344, %348 : vector<8x2x2xf32>
    %350 = vector.broadcast %336 : vector<1x1x128xf32> to vector<8x2x128xf32>
    %351 = arith.mulf %252, %350 : vector<8x2x128xf32>
    "tpu.trace_start"() <{level = 10 : i32, message = "gqk,gkd->gqd"}> : () -> ()
    %cst_111 = arith.constant dense<0.000000e+00> : vector<8x2x128xf32>
    %352 = tpu.matmul %349, %351, %cst_111 {dimension_numbers = #tpu.dot_dimension_numbers<[2], [1], [1], [2], [0, 0, 0, 1, 1, 2], [0], [0]>} : vector<8x2x2xf32>, vector<8x2x128xf32>, vector<8x2x128xf32> -> vector<8x2x128xf32>
    "tpu.trace_stop"() : () -> ()
    %353 = arith.addf %328, %352 : vector<8x2x128xf32>
    %c32_i32_112 = arith.constant 32 : i32
    %354 = vector.broadcast %c32_i32_112 : i32 to vector<1x128xi32>
    %355 = arith.cmpi sge, %0, %354 : vector<1x128xi32>
    %c40_i32_113 = arith.constant 40 : i32
    %356 = vector.broadcast %c40_i32_113 : i32 to vector<1x128xi32>
    %357 = arith.cmpi slt, %0, %356 : vector<1x128xi32>
    %358 = arith.andi %355, %357 : vector<1x128xi1>
    %359 = arith.extui %358 : vector<1x128xi1> to vector<1x128xi32>
    %360 = arith.sitofp %359 : vector<1x128xi32> to vector<1x128xf32>
    %361 = vector.shape_cast %360 : vector<1x128xf32> to vector<1x1x128xf32>
    %362 = vector.broadcast %361 : vector<1x1x128xf32> to vector<8x2x128xf32>
    %363 = arith.mulf %251, %362 : vector<8x2x128xf32>
    "tpu.trace_start"() <{level = 10 : i32, message = "gqd,gkd->gqk"}> : () -> ()
    %cst_114 = arith.constant dense<0.000000e+00> : vector<8x2x2xf32>
    %364 = tpu.matmul %250, %363, %cst_114 {dimension_numbers = #tpu.dot_dimension_numbers<[2], [2], [1], [1], [0, 0, 0, 1, 1, 1], [0], [0]>} : vector<8x2x128xf32>, vector<8x2x128xf32>, vector<8x2x2xf32> -> vector<8x2x2xf32>
    "tpu.trace_stop"() : () -> ()
    %cst_115 = arith.constant dense<0xFF800000> : vector<8x2xf32>
    %365 = vector.multi_reduction <maximumf>, %364, %cst_115 [2] : vector<8x2x2xf32> to vector<8x2xf32>
    %366 = vector.shape_cast %365 : vector<8x2xf32> to vector<8x2x1xf32>
    %367 = vector.broadcast %366 : vector<8x2x1xf32> to vector<8x2x2xf32>
    %368 = arith.subf %364, %367 : vector<8x2x2xf32>
    %369 = math.exp %368 : vector<8x2x2xf32>
    %cst_116 = arith.constant dense<0.000000e+00> : vector<8x2xf32>
    %370 = vector.multi_reduction <add>, %369, %cst_116 [2] : vector<8x2x2xf32> to vector<8x2xf32>
    %371 = vector.shape_cast %370 : vector<8x2xf32> to vector<8x2x1xf32>
    %372 = tpu.reciprocal %371 {approx = true} : vector<8x2x1xf32> -> vector<8x2x1xf32>
    %373 = vector.broadcast %372 : vector<8x2x1xf32> to vector<8x2x2xf32>
    %374 = arith.mulf %369, %373 : vector<8x2x2xf32>
    %375 = vector.broadcast %361 : vector<1x1x128xf32> to vector<8x2x128xf32>
    %376 = arith.mulf %252, %375 : vector<8x2x128xf32>
    "tpu.trace_start"() <{level = 10 : i32, message = "gqk,gkd->gqd"}> : () -> ()
    %cst_117 = arith.constant dense<0.000000e+00> : vector<8x2x128xf32>
    %377 = tpu.matmul %374, %376, %cst_117 {dimension_numbers = #tpu.dot_dimension_numbers<[2], [1], [1], [2], [0, 0, 0, 1, 1, 2], [0], [0]>} : vector<8x2x2xf32>, vector<8x2x128xf32>, vector<8x2x128xf32> -> vector<8x2x128xf32>
    "tpu.trace_stop"() : () -> ()
    %378 = arith.addf %353, %377 : vector<8x2x128xf32>
    %379 = vector.shape_cast %378 : vector<8x2x128xf32> to vector<16x128xf32>
    %cst_118 = arith.constant dense<0.000000e+00> : vector<16x128xf32>
    %380 = tpu.matmul %379, %249, %cst_118 {dimension_numbers = #tpu.dot_dimension_numbers<[1], [0], [0], [1], [0, 0, 1, 1], [], []>} : vector<16x128xf32>, vector<128x128xf32>, vector<16x128xf32> -> vector<16x128xf32>
    %c0_119 = arith.constant 0 : index
    %c0_120 = arith.constant 0 : index
    %381 = vector.load %arg14[%c0_119, %c0_120] : memref<1x128xf32, #tpu.memory_space<vmem>>, vector<1x128xf32>
    %382 = vector.broadcast %381 : vector<1x128xf32> to vector<16x128xf32>
    %383 = arith.addf %380, %382 : vector<16x128xf32>
    %384 = arith.addf %383, %240 : vector<16x128xf32>
    %cst_121 = arith.constant dense<0.000000e+00> : vector<16xf32>
    %385 = vector.multi_reduction <add>, %384, %cst_121 [1] : vector<16x128xf32> to vector<16xf32>
    %386 = vector.shape_cast %385 : vector<16xf32> to vector<16x1xf32>
    %cst_122 = arith.constant 2.500000e-02 : f32
    %387 = vector.broadcast %cst_122 : f32 to vector<16x1xf32>
    %388 = arith.mulf %386, %387 : vector<16x1xf32>
    %389 = vector.broadcast %388 : vector<16x1xf32> to vector<16x128xf32>
    %390 = arith.subf %384, %389 : vector<16x128xf32>
    %391 = vector.broadcast %4 : vector<1x128xf32> to vector<16x128xf32>
    %392 = arith.mulf %390, %391 : vector<16x128xf32>
    %393 = arith.mulf %392, %392 : vector<16x128xf32>
    %cst_123 = arith.constant dense<0.000000e+00> : vector<16xf32>
    %394 = vector.multi_reduction <add>, %393, %cst_123 [1] : vector<16x128xf32> to vector<16xf32>
    %395 = vector.shape_cast %394 : vector<16xf32> to vector<16x1xf32>
    %cst_124 = arith.constant 2.500000e-02 : f32
    %396 = vector.broadcast %cst_124 : f32 to vector<16x1xf32>
    %397 = arith.mulf %395, %396 : vector<16x1xf32>
    %cst_125 = arith.constant 9.99999974E-6 : f32
    %398 = vector.broadcast %cst_125 : f32 to vector<16x1xf32>
    %399 = arith.addf %397, %398 : vector<16x1xf32>
    %400 = math.rsqrt %399 : vector<16x1xf32>
    %401 = vector.broadcast %400 : vector<16x1xf32> to vector<16x128xf32>
    %402 = arith.mulf %392, %401 : vector<16x128xf32>
    %c0_126 = arith.constant 0 : index
    %c0_127 = arith.constant 0 : index
    %403 = vector.load %arg15[%c0_126, %c0_127] : memref<1x128xf32, #tpu.memory_space<vmem>>, vector<1x128xf32>
    %404 = vector.broadcast %403 : vector<1x128xf32> to vector<16x128xf32>
    %405 = arith.mulf %402, %404 : vector<16x128xf32>
    %c0_128 = arith.constant 0 : index
    %c0_129 = arith.constant 0 : index
    %406 = vector.load %arg16[%c0_128, %c0_129] : memref<1x128xf32, #tpu.memory_space<vmem>>, vector<1x128xf32>
    %407 = vector.broadcast %406 : vector<1x128xf32> to vector<16x128xf32>
    %408 = arith.addf %405, %407 : vector<16x128xf32>
    %c0_130 = arith.constant 0 : index
    %c0_131 = arith.constant 0 : index
    %409 = vector.load %arg17[%c0_130, %c0_131] : memref<128x128xf32, #tpu.memory_space<vmem>>, vector<128x128xf32>
    %cst_132 = arith.constant dense<0.000000e+00> : vector<16x128xf32>
    %410 = tpu.matmul %408, %409, %cst_132 {dimension_numbers = #tpu.dot_dimension_numbers<[1], [0], [0], [1], [0, 0, 1, 1], [], []>} : vector<16x128xf32>, vector<128x128xf32>, vector<16x128xf32> -> vector<16x128xf32>
    %c0_133 = arith.constant 0 : index
    %c0_134 = arith.constant 0 : index
    %411 = vector.load %arg18[%c0_133, %c0_134] : memref<1x128xf32, #tpu.memory_space<vmem>>, vector<1x128xf32>
    %412 = vector.broadcast %411 : vector<1x128xf32> to vector<16x128xf32>
    %413 = arith.addf %410, %412 : vector<16x128xf32>
    %cst_135 = arith.constant 5.000000e-01 : f32
    %414 = vector.broadcast %cst_135 : f32 to vector<16x128xf32>
    %415 = arith.mulf %414, %413 : vector<16x128xf32>
    %cst_136 = arith.constant 0.707106769 : f32
    %416 = vector.broadcast %cst_136 : f32 to vector<16x128xf32>
    %417 = arith.mulf %413, %416 : vector<16x128xf32>
    %cst_137 = arith.constant 0.000000e+00 : f32
    %418 = vector.broadcast %cst_137 : f32 to vector<16x128xf32>
    %419 = arith.cmpf olt, %417, %418 : vector<16x128xf32>
    %cst_138 = arith.constant -1.000000e+00 : f32
    %cst_139 = arith.constant 1.000000e+00 : f32
    %420 = vector.broadcast %cst_138 : f32 to vector<16x128xf32>
    %421 = vector.broadcast %cst_139 : f32 to vector<16x128xf32>
    %422 = arith.select %419, %420, %421 : vector<16x128xi1>, vector<16x128xf32>
    %423 = math.absf %417 : vector<16x128xf32>
    %cst_140 = arith.constant 0.327591091 : f32
    %424 = vector.broadcast %cst_140 : f32 to vector<16x128xf32>
    %425 = arith.mulf %424, %423 : vector<16x128xf32>
    %cst_141 = arith.constant 1.000000e+00 : f32
    %426 = vector.broadcast %cst_141 : f32 to vector<16x128xf32>
    %427 = arith.addf %426, %425 : vector<16x128xf32>
    %cst_142 = arith.constant 1.000000e+00 : f32
    %428 = vector.broadcast %cst_142 : f32 to vector<16x128xf32>
    %429 = arith.divf %428, %427 : vector<16x128xf32>
    %cst_143 = arith.constant 1.06140542 : f32
    %430 = vector.broadcast %cst_143 : f32 to vector<16x128xf32>
    %431 = arith.mulf %430, %429 : vector<16x128xf32>
    %cst_144 = arith.constant -1.45315206 : f32
    %432 = vector.broadcast %cst_144 : f32 to vector<16x128xf32>
    %433 = arith.addf %431, %432 : vector<16x128xf32>
    %434 = arith.mulf %433, %429 : vector<16x128xf32>
    %cst_145 = arith.constant 1.42141378 : f32
    %435 = vector.broadcast %cst_145 : f32 to vector<16x128xf32>
    %436 = arith.addf %434, %435 : vector<16x128xf32>
    %437 = arith.mulf %436, %429 : vector<16x128xf32>
    %cst_146 = arith.constant -0.284496725 : f32
    %438 = vector.broadcast %cst_146 : f32 to vector<16x128xf32>
    %439 = arith.addf %437, %438 : vector<16x128xf32>
    %440 = arith.mulf %439, %429 : vector<16x128xf32>
    %cst_147 = arith.constant 0.254829586 : f32
    %441 = vector.broadcast %cst_147 : f32 to vector<16x128xf32>
    %442 = arith.addf %440, %441 : vector<16x128xf32>
    %443 = arith.mulf %442, %429 : vector<16x128xf32>
    %cst_148 = arith.constant 0.000000e+00 : f32
    %444 = vector.broadcast %cst_148 : f32 to vector<16x128xf32>
    %445 = arith.subf %444, %423 : vector<16x128xf32>
    %446 = arith.mulf %445, %423 : vector<16x128xf32>
    %447 = math.exp %446 : vector<16x128xf32>
    %448 = arith.mulf %443, %447 : vector<16x128xf32>
    %cst_149 = arith.constant 1.000000e+00 : f32
    %449 = vector.broadcast %cst_149 : f32 to vector<16x128xf32>
    %450 = arith.subf %449, %448 : vector<16x128xf32>
    %451 = arith.mulf %422, %450 : vector<16x128xf32>
    %cst_150 = arith.constant 1.000000e+00 : f32
    %452 = vector.broadcast %cst_150 : f32 to vector<16x128xf32>
    %453 = arith.addf %452, %451 : vector<16x128xf32>
    %454 = arith.mulf %415, %453 : vector<16x128xf32>
    %c0_151 = arith.constant 0 : index
    %c0_152 = arith.constant 0 : index
    %455 = vector.load %arg19[%c0_151, %c0_152] : memref<128x128xf32, #tpu.memory_space<vmem>>, vector<128x128xf32>
    %cst_153 = arith.constant dense<0.000000e+00> : vector<16x128xf32>
    %456 = tpu.matmul %454, %455, %cst_153 {dimension_numbers = #tpu.dot_dimension_numbers<[1], [0], [0], [1], [0, 0, 1, 1], [], []>} : vector<16x128xf32>, vector<128x128xf32>, vector<16x128xf32> -> vector<16x128xf32>
    %c0_154 = arith.constant 0 : index
    %c0_155 = arith.constant 0 : index
    %457 = vector.load %arg20[%c0_154, %c0_155] : memref<1x128xf32, #tpu.memory_space<vmem>>, vector<1x128xf32>
    %458 = vector.broadcast %457 : vector<1x128xf32> to vector<16x128xf32>
    %459 = arith.addf %456, %458 : vector<16x128xf32>
    %460 = arith.addf %459, %408 : vector<16x128xf32>
    %cst_156 = arith.constant dense<0.000000e+00> : vector<16xf32>
    %461 = vector.multi_reduction <add>, %460, %cst_156 [1] : vector<16x128xf32> to vector<16xf32>
    %462 = vector.shape_cast %461 : vector<16xf32> to vector<16x1xf32>
    %cst_157 = arith.constant 2.500000e-02 : f32
    %463 = vector.broadcast %cst_157 : f32 to vector<16x1xf32>
    %464 = arith.mulf %462, %463 : vector<16x1xf32>
    %465 = vector.broadcast %464 : vector<16x1xf32> to vector<16x128xf32>
    %466 = arith.subf %460, %465 : vector<16x128xf32>
    %467 = vector.broadcast %4 : vector<1x128xf32> to vector<16x128xf32>
    %468 = arith.mulf %466, %467 : vector<16x128xf32>
    %469 = arith.mulf %468, %468 : vector<16x128xf32>
    %cst_158 = arith.constant dense<0.000000e+00> : vector<16xf32>
    %470 = vector.multi_reduction <add>, %469, %cst_158 [1] : vector<16x128xf32> to vector<16xf32>
    %471 = vector.shape_cast %470 : vector<16xf32> to vector<16x1xf32>
    %cst_159 = arith.constant 2.500000e-02 : f32
    %472 = vector.broadcast %cst_159 : f32 to vector<16x1xf32>
    %473 = arith.mulf %471, %472 : vector<16x1xf32>
    %cst_160 = arith.constant 9.99999974E-6 : f32
    %474 = vector.broadcast %cst_160 : f32 to vector<16x1xf32>
    %475 = arith.addf %473, %474 : vector<16x1xf32>
    %476 = math.rsqrt %475 : vector<16x1xf32>
    %477 = vector.broadcast %476 : vector<16x1xf32> to vector<16x128xf32>
    %478 = arith.mulf %468, %477 : vector<16x128xf32>
    %c0_161 = arith.constant 0 : index
    %c0_162 = arith.constant 0 : index
    %479 = vector.load %arg21[%c0_161, %c0_162] : memref<1x128xf32, #tpu.memory_space<vmem>>, vector<1x128xf32>
    %480 = vector.broadcast %479 : vector<1x128xf32> to vector<16x128xf32>
    %481 = arith.mulf %478, %480 : vector<16x128xf32>
    %c0_163 = arith.constant 0 : index
    %c0_164 = arith.constant 0 : index
    %482 = vector.load %arg22[%c0_163, %c0_164] : memref<1x128xf32, #tpu.memory_space<vmem>>, vector<1x128xf32>
    %483 = vector.broadcast %482 : vector<1x128xf32> to vector<16x128xf32>
    %484 = arith.addf %481, %483 : vector<16x128xf32>
    %cst_165 = arith.constant dense<0.000000e+00> : vector<16xf32>
    %485 = vector.multi_reduction <add>, %484, %cst_165 [1] : vector<16x128xf32> to vector<16xf32>
    %486 = vector.shape_cast %485 : vector<16xf32> to vector<16x1xf32>
    %cst_166 = arith.constant 2.500000e-02 : f32
    %487 = vector.broadcast %cst_166 : f32 to vector<16x1xf32>
    %488 = arith.mulf %486, %487 : vector<16x1xf32>
    %489 = vector.broadcast %488 : vector<16x1xf32> to vector<16x128xf32>
    %490 = arith.subf %484, %489 : vector<16x128xf32>
    %491 = vector.broadcast %4 : vector<1x128xf32> to vector<16x128xf32>
    %492 = arith.mulf %490, %491 : vector<16x128xf32>
    %493 = arith.mulf %492, %492 : vector<16x128xf32>
    %cst_167 = arith.constant dense<0.000000e+00> : vector<16xf32>
    %494 = vector.multi_reduction <add>, %493, %cst_167 [1] : vector<16x128xf32> to vector<16xf32>
    %495 = vector.shape_cast %494 : vector<16xf32> to vector<16x1xf32>
    %cst_168 = arith.constant 2.500000e-02 : f32
    %496 = vector.broadcast %cst_168 : f32 to vector<16x1xf32>
    %497 = arith.mulf %495, %496 : vector<16x1xf32>
    %cst_169 = arith.constant 9.99999974E-6 : f32
    %498 = vector.broadcast %cst_169 : f32 to vector<16x1xf32>
    %499 = arith.addf %497, %498 : vector<16x1xf32>
    %500 = math.rsqrt %499 : vector<16x1xf32>
    %501 = vector.broadcast %500 : vector<16x1xf32> to vector<16x128xf32>
    %502 = arith.mulf %492, %501 : vector<16x128xf32>
    %c0_170 = arith.constant 0 : index
    %c0_171 = arith.constant 0 : index
    %503 = vector.load %arg23[%c0_170, %c0_171] : memref<1x128xf32, #tpu.memory_space<vmem>>, vector<1x128xf32>
    %504 = vector.broadcast %503 : vector<1x128xf32> to vector<16x128xf32>
    %505 = arith.mulf %502, %504 : vector<16x128xf32>
    %c0_172 = arith.constant 0 : index
    %c0_173 = arith.constant 0 : index
    %506 = vector.load %arg24[%c0_172, %c0_173] : memref<1x128xf32, #tpu.memory_space<vmem>>, vector<1x128xf32>
    %507 = vector.broadcast %506 : vector<1x128xf32> to vector<16x128xf32>
    %508 = arith.addf %505, %507 : vector<16x128xf32>
    %c0_174 = arith.constant 0 : index
    %c0_175 = arith.constant 0 : index
    %509 = vector.load %arg26[%c0_174, %c0_175] : memref<16x16xf32, #tpu.memory_space<vmem>>, vector<16x16xf32>
    %cst_176 = arith.constant dense<0.000000e+00> : vector<16x128xf32>
    %510 = tpu.matmul %509, %508, %cst_176 {dimension_numbers = #tpu.dot_dimension_numbers<[1], [0], [0], [1], [0, 0, 1, 1], [], []>} : vector<16x16xf32>, vector<16x128xf32>, vector<16x128xf32> -> vector<16x128xf32>
    %511 = vector.shape_cast %510 : vector<16x128xf32> to vector<2x8x128xf32>
    %c0_177 = arith.constant 0 : index
    %c0_178 = arith.constant 0 : index
    %c0_179 = arith.constant 0 : index
    %c0_180 = arith.constant 0 : index
    %512 = vector.load %arg27[%c0_177, %c0_178, %c0_179, %c0_180] : memref<1x2x8x128xf32, #tpu.memory_space<vmem>>, vector<1x2x8x128xf32>
    %513 = vector.shape_cast %512 : vector<1x2x8x128xf32> to vector<2x8x128xf32>
    %514 = vector.shape_cast %511 : vector<2x8x128xf32> to vector<1x2x8x128xf32>
    tpu.vector_store %arg27[%c0_177, %c0_178, %c0_179, %c0_180], %514 {strides = array<i32>} : memref<1x2x8x128xf32, #tpu.memory_space<vmem>>, vector<1x2x8x128xf32>,
    return
  }
  func.func @transform_0(%arg0: i32) -> (i32, i32, i32, i32) {
    %c0_i32 = arith.constant 0 : i32
    %c0_i32_0 = arith.constant 0 : i32
    %c0_i32_1 = arith.constant 0 : i32
    %c0_i32_2 = arith.constant 0 : i32
    return %arg0, %c0_i32, %c0_i32_0, %c0_i32_1 : i32, i32, i32, i32
  }
  func.func @transform_1(%arg0: i32) -> (i32, i32, i32, i32) {
    %c0_i32 = arith.constant 0 : i32
    %c0_i32_0 = arith.constant 0 : i32
    %c0_i32_1 = arith.constant 0 : i32
    %c0_i32_2 = arith.constant 0 : i32
    return %arg0, %c0_i32, %c0_i32_0, %c0_i32_1 : i32, i32, i32, i32
  }
  func.func @transform_2(%arg0: i32) -> (i32, i32, i32, i32) {
    %c0_i32 = arith.constant 0 : i32
    %c0_i32_0 = arith.constant 0 : i32
    %c0_i32_1 = arith.constant 0 : i32
    %c0_i32_2 = arith.constant 0 : i32
    return %arg0, %c0_i32, %c0_i32_0, %c0_i32_1 : i32, i32, i32, i32
  }
  func.func @transform_3(%arg0: i32) -> (i32, i32, i32) {
    %c0_i32 = arith.constant 0 : i32
    %c0_i32_0 = arith.constant 0 : i32
    %c0_i32_1 = arith.constant 0 : i32
    return %arg0, %c0_i32, %c0_i32_0 : i32, i32, i32
  }
  func.func @transform_4(%arg0: i32) -> (i32, i32, i32) {
    %c0_i32 = arith.constant 0 : i32
    %c0_i32_0 = arith.constant 0 : i32
    %c0_i32_1 = arith.constant 0 : i32
    return %arg0, %c0_i32, %c0_i32_0 : i32, i32, i32
  }
  func.func @transform_5(%arg0: i32) -> (i32, i32, i32) {
    %c0_i32 = arith.constant 0 : i32
    %c0_i32_0 = arith.constant 0 : i32
    %c0_i32_1 = arith.constant 0 : i32
    return %arg0, %c0_i32, %c0_i32_0 : i32, i32, i32
  }
  func.func @transform_6(%arg0: i32) -> (i32, i32, i32) {
    %c0_i32 = arith.constant 0 : i32
    %c0_i32_0 = arith.constant 0 : i32
    %c0_i32_1 = arith.constant 0 : i32
    return %arg0, %c0_i32, %c0_i32_0 : i32, i32, i32
  }
  func.func @transform_7(%arg0: i32) -> (i32, i32, i32) {
    %c0_i32 = arith.constant 0 : i32
    %c0_i32_0 = arith.constant 0 : i32
    %c0_i32_1 = arith.constant 0 : i32
    return %arg0, %c0_i32, %c0_i32_0 : i32, i32, i32
  }
  func.func @transform_8(%arg0: i32) -> (i32, i32, i32) {
    %c0_i32 = arith.constant 0 : i32
    %c0_i32_0 = arith.constant 0 : i32
    %c0_i32_1 = arith.constant 0 : i32
    return %arg0, %c0_i32, %c0_i32_0 : i32, i32, i32
  }
  func.func @transform_9(%arg0: i32) -> (i32, i32, i32) {
    %c0_i32 = arith.constant 0 : i32
    %c0_i32_0 = arith.constant 0 : i32
    %c0_i32_1 = arith.constant 0 : i32
    return %arg0, %c0_i32, %c0_i32_0 : i32, i32, i32
  }
  func.func @transform_10(%arg0: i32) -> (i32, i32) {
    %c0_i32 = arith.constant 0 : i32
    %c0_i32_0 = arith.constant 0 : i32
    %c0_i32_1 = arith.constant 0 : i32
    return %c0_i32, %c0_i32_0 : i32, i32
  }
  func.func @transform_11(%arg0: i32) -> (i32, i32) {
    %c0_i32 = arith.constant 0 : i32
    %c0_i32_0 = arith.constant 0 : i32
    %c0_i32_1 = arith.constant 0 : i32
    return %c0_i32, %c0_i32_0 : i32, i32
  }
  func.func @transform_12(%arg0: i32) -> (i32, i32) {
    %c0_i32 = arith.constant 0 : i32
    %c0_i32_0 = arith.constant 0 : i32
    %c0_i32_1 = arith.constant 0 : i32
    return %c0_i32, %c0_i32_0 : i32, i32
  }
  func.func @transform_13(%arg0: i32) -> (i32, i32) {
    %c0_i32 = arith.constant 0 : i32
    %c0_i32_0 = arith.constant 0 : i32
    %c0_i32_1 = arith.constant 0 : i32
    return %c0_i32, %c0_i32_0 : i32, i32
  }
  func.func @transform_14(%arg0: i32) -> (i32, i32) {
    %c0_i32 = arith.constant 0 : i32
    %c0_i32_0 = arith.constant 0 : i32
    %c0_i32_1 = arith.constant 0 : i32
    return %c0_i32, %c0_i32_0 : i32, i32
  }
  func.func @transform_15(%arg0: i32) -> (i32, i32) {
    %c0_i32 = arith.constant 0 : i32
    %c0_i32_0 = arith.constant 0 : i32
    %c0_i32_1 = arith.constant 0 : i32
    return %c0_i32, %c0_i32_0 : i32, i32
  }
  func.func @transform_16(%arg0: i32) -> (i32, i32) {
    %c0_i32 = arith.constant 0 : i32
    %c0_i32_0 = arith.constant 0 : i32
    %c0_i32_1 = arith.constant 0 : i32
    return %c0_i32, %c0_i32_0 : i32, i32
  }
  func.func @transform_17(%arg0: i32) -> (i32, i32) {
    %c0_i32 = arith.constant 0 : i32
    %c0_i32_0 = arith.constant 0 : i32
    %c0_i32_1 = arith.constant 0 : i32
    return %c0_i32, %c0_i32_0 : i32, i32
  }
  func.func @transform_18(%arg0: i32) -> (i32, i32) {
    %c0_i32 = arith.constant 0 : i32
    %c0_i32_0 = arith.constant 0 : i32
    %c0_i32_1 = arith.constant 0 : i32
    return %c0_i32, %c0_i32_0 : i32, i32
  }
  func.func @transform_19(%arg0: i32) -> (i32, i32) {
    %c0_i32 = arith.constant 0 : i32
    %c0_i32_0 = arith.constant 0 : i32
    %c0_i32_1 = arith.constant 0 : i32
    return %c0_i32, %c0_i32_0 : i32, i32
  }
  func.func @transform_20(%arg0: i32) -> (i32, i32) {
    %c0_i32 = arith.constant 0 : i32
    %c0_i32_0 = arith.constant 0 : i32
    %c0_i32_1 = arith.constant 0 : i32
    return %c0_i32, %c0_i32_0 : i32, i32
  }
  func.func @transform_21(%arg0: i32) -> (i32, i32) {
    %c0_i32 = arith.constant 0 : i32
    %c0_i32_0 = arith.constant 0 : i32
    %c0_i32_1 = arith.constant 0 : i32
    return %c0_i32, %c0_i32_0 : i32, i32
  }
  func.func @transform_22(%arg0: i32) -> (i32, i32) {
    %c0_i32 = arith.constant 0 : i32
    %c0_i32_0 = arith.constant 0 : i32
    %c0_i32_1 = arith.constant 0 : i32
    return %c0_i32, %c0_i32_0 : i32, i32
  }
  func.func @transform_23(%arg0: i32) -> (i32, i32) {
    %c0_i32 = arith.constant 0 : i32
    %c0_i32_0 = arith.constant 0 : i32
    %c0_i32_1 = arith.constant 0 : i32
    return %c0_i32, %c0_i32_0 : i32, i32
  }
  func.func @transform_24(%arg0: i32) -> (i32, i32) {
    %c0_i32 = arith.constant 0 : i32
    %c0_i32_0 = arith.constant 0 : i32
    %c0_i32_1 = arith.constant 0 : i32
    return %c0_i32, %c0_i32_0 : i32, i32
  }
  func.func @transform_25(%arg0: i32) -> (i32, i32) {
    %c0_i32 = arith.constant 0 : i32
    %c0_i32_0 = arith.constant 0 : i32
    %c0_i32_1 = arith.constant 0 : i32
    return %c0_i32, %c0_i32_0 : i32, i32
  }
  func.func @transform_26(%arg0: i32) -> (i32, i32, i32, i32) {
    %c0_i32 = arith.constant 0 : i32
    %c0_i32_0 = arith.constant 0 : i32
    %c0_i32_1 = arith.constant 0 : i32
    %c0_i32_2 = arith.constant 0 : i32
    return %arg0, %c0_i32, %c0_i32_0, %c0_i32_1 : i32, i32, i32, i32
  }
}

</mosaic_0001>

<bundles_post_ra>
// kernel: utility_layer.1
= control target key start
LH: loop header
LB: loop body
LE: loop exit
PB: predicated region body
PF: predicated region fallthrough
CT: control target
= control target key end

     0   :  { %s17166_s0 = inlined_call_operand.vmem [shape: f32[3,2,8,128], index: 0, kind: input, shape index: {}]   ;;  %s17167_s1 = inlined_call_operand.vmem [shape: f32[3,2,8,128], index: 1, kind: input, shape index: {}]   ;;  %s17168_s2 = inlined_call_operand.vmem [shape: f32[3,2,8,128], index: 2, kind: input, shape index: {}]   ;;  %s17169_s3 = inlined_call_operand.hbm [shape: f32[3,128,384], index: 3, kind: input, shape index: {}]   ;;  %s17170_s4 = inlined_call_operand.vmem [shape: f32[3,1,384], index: 4, kind: input, shape index: {}]   ;;  %s17171_s5 = inlined_call_operand.hbm [shape: f32[3,128,128], index: 5, kind: input, shape index: {}]   ;;  %s17172_s6 = inlined_call_operand.vmem [shape: f32[3,1,128], index: 6, kind: input, shape index: {}]   ;;  %s17173_s7 = inlined_call_operand.hbm [shape: f32[3,128,128], index: 7, kind: input, shape index: {}]   ;;  %s17174_s8 = inlined_call_operand.hbm [shape: f32[3,128,128], index: 8, kind: input, shape index: {}]   ;;  %s17175_s9 = inlined_call_operand.vmem [shape: f32[3,1,128], index: 9, kind: input, shape index: {}]   ;;  %s17176_s10 = inlined_call_operand.hbm [shape: f32[128,384], index: 10, kind: input, shape index: {}]   ;;  %s17177_s11 = inlined_call_operand.vmem [shape: f32[1,384], index: 11, kind: input, shape index: {}]   ;;  %s17178_s12 = inlined_call_operand.vmem [shape: f32[128,128], index: 12, kind: input, shape index: {}]   ;;  %s17179_s13 = inlined_call_operand.vmem [shape: f32[1,128], index: 13, kind: input, shape index: {}]   ;;  %s17180_s14 = inlined_call_operand.vmem [shape: f32[1,128], index: 14, kind: input, shape index: {}]   ;;  %s17181_s15 = inlined_call_operand.hbm [shape: f32[1,128], index: 15, kind: input, shape index: {}]   ;;  %s17182_s16 = inlined_call_operand.vmem [shape: f32[128,128], index: 16, kind: input, shape index: {}]   ;;  %s17183_s17 = inlined_call_operand.vmem [shape: f32[1,128], index: 17, kind: input, shape index: {}]   ;;  %s17184_s18 = inlined_call_operand.hbm [shape: f32[128,128], index: 18, kind: input, shape index: {}]   ;;  %s17185_s19 = inlined_call_operand.vmem [shape: f32[1,128], index: 19, kind: input, shape index: {}]   ;;  %s17186_s20 = inlined_call_operand.vmem [shape: f32[1,128], index: 20, kind: input, shape index: {}]   ;;  %s17187_s21 = inlined_call_operand.hbm [shape: f32[1,128], index: 21, kind: input, shape index: {}]   ;;  %s17188_s22 = inlined_call_operand.vmem [shape: f32[1,128], index: 22, kind: input, shape index: {}]   ;;  %s17189_s23 = inlined_call_operand.vmem [shape: f32[1,128], index: 23, kind: input, shape index: {}]   ;;  %s17190_s24 = inlined_call_operand.vmem [shape: f32[16,16], index: 24, kind: input, shape index: {}]   ;;  %s17191_s25 = inlined_call_operand.vmem [shape: f32[16,16], index: 25, kind: input, shape index: {}]   ;;  %s17192_s26 = inlined_call_operand.vmem [shape: f32[3,2,8,128], index: 26, kind: output, shape index: {}]  }
   0x1   :  { %17222 = sst [smem:[#allocation24_spill]] %s17166_s0 }
   0x2   :  { %17223 = sst [smem:[#allocation25_spill]] %s17167_s1 }
   0x3   :  { %17224 = sst [smem:[#allocation26_spill]] %s17168_s2 }
   0x4   :  { %17225 = sst [smem:[#allocation27_spill]] %s17169_s3 }
   0x5   :  { %17226 = sst [smem:[#allocation28_spill]] %s17170_s4 }
   0x6   :  { %17227 = sst [smem:[#allocation29_spill]] %s17171_s5 }
   0x7   :  { %17228 = sst [smem:[#allocation30_spill]] %s17172_s6 }
   0x8   :  { %17229 = sst [smem:[#allocation31_spill]] %s17173_s7 }
   0x9   :  { %17230 = sst [smem:[#allocation32_spill]] %s17174_s8 }
   0xa   :  { %17231 = sst [smem:[#allocation33_spill]] %s17175_s9 }
   0xb   :  { %17232 = sst [smem:[#allocation34_spill]] %s17176_s10 }
   0xc   :  { %17233 = sst [smem:[#allocation35_spill]] %s17178_s12 }
   0xd   :  { %17234 = sst [smem:[#allocation36_spill]] %s17179_s13 }
   0xe   :  { %17235 = sst [smem:[#allocation37_spill]] %s17180_s14 }
   0xf   :  { %17236 = sst [smem:[#allocation38_spill]] %s17181_s15 }
  0x10   :  { %17237 = sst [smem:[#allocation39_spill]] %s17182_s16 }
  0x11   :  { %17238 = sst [smem:[#allocation40_spill]] %s17183_s17 }
  0x12   :  { %17239 = sst [smem:[#allocation41_spill]] %s17185_s19 }
  0x13   :  { %17240 = sst [smem:[#allocation42_spill]] %s17186_s20 }
  0x14   :  { %17241 = sst [smem:[#allocation43_spill]] %s17188_s22 }
  0x15   :  { %17242 = sst [smem:[#allocation44_spill]] %s17189_s23 }
  0x16   :  { %17243 = sst [smem:[#allocation45_spill]] %s17191_s25 }
  0x17   :  { %17244 = sst [smem:[#allocation46_spill]] %s17192_s26 }
  0x18   :  { %31 = vsyncpa [#allocation3], 0 }
  0x19   :  { %33 = vsyncpa [#allocation3 + $0x1], 0 }
  0x1a   :  { %34 = vsyncpa [#allocation5], 0 }
  0x1b   :  { %36 = vsyncpa [#allocation5 + $0x1], 0 }
  0x1c   :  { %37 = vsyncpa [#allocation8], 0 }
  0x1d   :  { %39 = vsyncpa [#allocation8 + $0x1], 0 }
  0x1e   :  { %40 = vsyncpa [#allocation11], 0 }
  0x1f   :  { %41 = vsyncpa [#allocation14], 0  ;;  %s15262_s27 = smov 0   ;;  %s15264_s3 = smov 0  }
  0x20   :  { %s15266_s7 = smov 0   ;;  %s15268_s28 = smov 0  }
  0x21 LB: > { %17245 = sst [smem:[#allocation21_spill]] %s15105_s7  ;;  %s15281_s8 = sadd.s32 4294967295, %s15109_s28   ;;  %s15109_s28 = sphi %s15268_s28, %s17296_s28   ;;  %s15105_s7 = sphi %s15266_s7, %s17298_s7   ;;  %s15101_s3 = sphi %s15264_s3, %s17300_s3   ;;  %s15097_s27 = sphi %s15262_s27, %s17299_s27  }
  0x22   : > { %p145_p0 = scmp.ne.s32.totalorder %s15101_s3, %s15097_s27  ;;  %p17198_p1 = scmp.eq.s32.totalorder %s15281_s8, 0 }
  0x23   : > { %p12553_p2 = scmp.ge.s32.totalorder %s15109_s28, 1  ;;  %p674_p3 = scmp.lt.s32.totalorder %s15109_s28, 4 }
  0x24   : > { %p15289_p4 = por %p17198_p1, %p145_p0  ;;  %s15111_s0 = smov [#allocation9]  }
  0x25   : > { %p15293_p5 = pnand %p12553_p2, %p674_p3  ;;  %s686_s9 = sshll.u32 %s15111_s0, 4  ;;  %s687_s9 = int_to_ptr.vmem [resolvable:$true] %s686_s9 }
  0x26   : > { %s17246_s4 = scalar_select %p15289_p4, 1, 0 }
  0x27   : > { %s17247_s29 = scalar_select %p15293_p5, 1, 0 }
  0x28   : > { %p14470_p6 = pneg %p15293_p5  ;;  %s15112_s2 = smov [#allocation10]  }
  0x29   : > { %s712_s5 = sshll.u32 %s15112_s2, 4  ;;  %s17249_s1 = sld [smem:[#allocation34_spill]]  ;;  %s15305_s5 = int_to_ptr.vmem [resolvable:$true] %s712_s5 }
  0x2a   : > { %p15301_p7 = pnand %p14470_p6, %p17198_p1 }
  0x2c   : > { %s17248_s30 = scalar_select %p15301_p7, 1, 0 }
  0x2d   : > { %p15315_p9 = pneg %p15301_p7 }
  0x2f   : > { %s14823_s27 = scalar_lea.hbm %s17249_s1, 6144 }
  0x30   : > { %p14824_p8 = scmp.ne.s32.totalorder %s17249_s1, %s14823_s27  ;;  %p14830_p12 = scmp.lt.u32.totalorder %s14823_s27, %s17249_s1 }
  0x31   : > { %s17250_s0 = scalar_select %p15315_p9, 1, 0 }
  0x32   : > { %p14826_p10 = pnand %p15315_p9, %p14824_p8 }
  0x34   : > { %p14827_p11 = pneg %p14826_p10 }
  0x36   : > { %p14832_p13 = pnand %p14830_p12, %p14827_p11 }
  0x38   : > { %14835 = shalt.err (!%p14832_p13)
}
  0x39   : > { %s14836_s10 = scalar_lea.vmem %s687_s9, 6144  ;;  %p14844_p6 = scmp.lt.s32.totalorder %s687_s9, %s687_s9 }
  0x3a   : > { %p14837_p0 = scmp.ne.s32.totalorder %s687_s9, %s14836_s10  ;;  %p14845_p1 = scmp.lt.s32.totalorder %s14836_s10, %s14836_s10 }
  0x3c   : > { %p14839_p2 = pnand %p14837_p0, %p15315_p9  ;;  %p14846_p4 = por %p14845_p1, %p14844_p6 }
  0x3e   : > { %p14840_p3 = pneg %p14839_p2 }
  0x40   : > { %p14847_p5 = pnand %p14846_p4, %p14840_p3 }
  0x42   : > { %14850 = shalt.err (!%p14847_p5)
}
  0x43   : > { %s17202_s23 = smov 384   ;;  %s17203_s26 = smov 24  }
  0x44   : > { %14473 = dma.hbm_to_vmem [thread:$0]  (!%p15301_p7), %s17249_s1, 6144, %s687_s9, [#allocation8], %s17202_s23, %s17202_s23, %s17203_s26  }
  0x45   : > { %s17251_s15 = sld [smem:[#allocation38_spill]] }
  0x4b   : > { %s14851_s25 = scalar_lea.hbm %s17251_s15, 16 }
  0x4c   : > { %p14852_p1 = scmp.ne.s32.totalorder %s17251_s15, %s14851_s25  ;;  %p14858_p8 = scmp.lt.u32.totalorder %s14851_s25, %s17251_s15 }
  0x4e   : > { %p14854_p4 = pnand %p14852_p1, %p15315_p9 }
  0x50   : > { %p14855_p5 = pneg %p14854_p4 }
  0x52   : > { %p14860_p10 = pnand %p14858_p8, %p14855_p5 }
  0x54   : > { %14863 = shalt.err (!%p14860_p10)
}
  0x55   : > { %s14864_s9 = scalar_lea.vmem %s15305_s5, 16  ;;  %s14871_s20 = scalar_lea.vmem %s15305_s5, 32 }
  0x56   : > { %p14865_p11 = scmp.ne.s32.totalorder %s15305_s5, %s14864_s9  ;;  %p14872_p0 = scmp.lt.s32.totalorder %s15305_s5, %s15305_s5 }
  0x57   : > { %p14873_p2 = scmp.lt.s32.totalorder %s14871_s20, %s14864_s9 }
  0x58   : > { %p14867_p12 = pnand %p14865_p11, %p15315_p9 }
  0x59   : > { %p14874_p3 = por %p14873_p2, %p14872_p0 }
  0x5a   : > { %p14868_p13 = pneg %p14867_p12 }
  0x5c   : > { %p14875_p6 = pnand %p14874_p3, %p14868_p13 }
  0x5e   : > { %14878 = shalt.err (!%p14875_p6)
}
  0x5f   : > { %14476 = dma.hbm_to_vmem [thread:$0]  (!%p15301_p7), %s17251_s15, 16, %s15305_s5, [#allocation11]  }
  0x60   : > { %s15359_s25 = sadd.s32 1, %s15109_s28   ;;  %s132_s22 = sadd.s32 1, %s15105_s7 }
  0x61   : > { %17252 = sst [smem:[#allocation22_spill]] %s15359_s25  ;;  %s129_s6 = ssub.s32 %s15109_s28, %s15359_s25 }
  0x62   : > { %p139_p1 = scmp.ne.s32.totalorder %s15105_s7, %s15101_s3  ;;  %p130_p4 = scmp.eq.s32.totalorder %s129_s6, 0 }
  0x63   : > { %p140_p5 = scmp.eq.s32.totalorder %s15109_s28, 0  ;;  %p14500_p10 = scmp.lt.s32.totalorder %s15109_s28, 3 }
  0x64   : > { %s15368_s27 = scalar_select %p130_p4, %s15105_s7, %s132_s22  }
  0x65   : > { %p141_p8 = por %p140_p5, %p139_p1  ;;  %s15372_s2 = sand.u32 1, %s15105_s7  }
  0x66   : > { %17253 = sst [smem:[#allocation23_spill]] %s15368_s27  ;;  %s17208_s10 = sand.u32 1, %s15109_s28  }
  0x67   : > { %p15375_p11 = pnand %p14500_p10, %p141_p8  ;;  %s15380_s5 = sshll.u32 %s15372_s2, 7 }
  0x68   : > { %s15383_s20 = sshll.u32 %s15109_s28, 11  ;;  %s17255_s22 = sld [smem:[#allocation29_spill]] }
  0x69   : > { %s17254_s9 = scalar_select %p15375_p11, 1, 0 }
  0x6a   : > { %s827_s23 = scalar_lea.vmem [#allocation4], %s15380_s5  ;;  %s15396_s1 = scalar_lea.sflag [#allocation5], %s17208_s10 }
  0x6b   : > { %s834_s26 = sshll.u32 %s827_s23, 4  ;;  %p15402_p13 = pneg %p15375_p11  ;;  %s15392_s26 = int_to_ptr.vmem [resolvable:$true] %s834_s26 }
  0x6e   : > { %s15389_s6 = scalar_lea.hbm %s17255_s22, %s15383_s20  ;;  %s14884_s23 = scalar_lea.hbm %s17255_s22, 6144 }
  0x6f   : > { %s14879_s15 = scalar_lea.hbm %s15389_s6, 2048  ;;  %p14885_p3 = scmp.lt.u32.totalorder %s15389_s6, %s17255_s22 }
  0x70   : > { %p14880_p12 = scmp.ne.s32.totalorder %s15389_s6, %s14879_s15  ;;  %p14886_p6 = scmp.lt.u32.totalorder %s14884_s23, %s14879_s15 }
  0x71   : > { %p14888_p4 = scmp.lt.u32.totalorder %s14879_s15, %s15389_s6 }
  0x72   : > { %p14882_p0 = pnand %p15402_p13, %p14880_p12  ;;  %p14887_p1 = por %p14886_p6, %p14885_p3 }
  0x74   : > { %p14883_p2 = pneg %p14882_p0  ;;  %p14889_p5 = por %p14888_p4, %p14887_p1 }
  0x76   : > { %p14890_p8 = pnand %p14889_p5, %p14883_p2 }
  0x78   : > { %14893 = shalt.err (!%p14890_p8)
}
  0x79   : > { %s14894_s10 = scalar_lea.vmem %s15392_s26, 2048  ;;  %s15115_s17 = smov [#allocation4]  }
  0x7a   : > { %p14895_p10 = scmp.ne.s32.totalorder %s15392_s26, %s14894_s10  ;;  %s14899_s19 = sshll.u32 %s15115_s17, 4  ;;  %s14900_s19 = int_to_ptr.vmem [resolvable:$false] %s14899_s19 }
  0x7b   : > { %s14901_s7 = scalar_lea.vmem %s14900_s19, 4096  ;;  %p14902_p7 = scmp.lt.s32.totalorder %s15392_s26, %s14900_s19 }
  0x7c   : > { %p14897_p12 = pnand %p14895_p10, %p15402_p13  ;;  %p14903_p9 = scmp.lt.s32.totalorder %s14901_s7, %s14894_s10 }
  0x7e   : > { %p14898_p0 = pneg %p14897_p12  ;;  %p14904_p3 = por %p14903_p9, %p14902_p7 }
  0x80   : > { %p14905_p6 = pnand %p14904_p3, %p14898_p0 }
  0x82   : > { %14908 = shalt.err (!%p14905_p6)
}
  0x83   : > { %s17218_s15 = smov 128   ;;  %s17220_s25 = smov 8  }
  0x84   : > { %14489 = dma.hbm_to_vmem [thread:$0]  (!%p15375_p11), %s15389_s6, 2048, %s15392_s26, %s15396_s1, %s17218_s15, %s17218_s15, %s17220_s25  }
  0x85   : > { %s15118_s23 = smov [#allocation12]   ;;  %s15119_s22 = smov [#allocation13]  }
  0x86   : > { %s728_s17 = sshll.u32 %s15118_s23, 4  ;;  %s748_s19 = sshll.u32 %s15119_s22, 4  ;;  %s729_s17 = int_to_ptr.vmem [resolvable:$true] %s728_s17  ;;  %s15429_s19 = int_to_ptr.vmem [resolvable:$true] %s748_s19 }
  0x87   : > { %s14909_s14 = scalar_lea.hbm %s17184_s18, 2048  ;;  %p17257_p9 = scmp.ne.s32.totalorder %s17250_s0, 0 }
  0x88   : > { %p14910_p7 = scmp.ne.s32.totalorder %s17184_s18, %s14909_s14  ;;  %p14916_p4 = scmp.lt.u32.totalorder %s14909_s14, %s17184_s18 }
  0x8a   : > { %p14912_p2 = pnand %p14910_p7, %p17257_p9 }
  0x8c   : > { %p14913_p1 = pneg %p14912_p2 }
  0x8e   : > { %p14918_p5 = pnand %p14916_p4, %p14913_p1 }
  0x90   : > { %14921 = shalt.err (!%p14918_p5)
}
  0x91   : > { %s14922_s22 = scalar_lea.vmem %s729_s17, 2048  ;;  %p14930_p0 = scmp.lt.s32.totalorder %s729_s17, %s729_s17 }
  0x92   : > { %p14923_p8 = scmp.ne.s32.totalorder %s729_s17, %s14922_s22  ;;  %p14931_p3 = scmp.lt.s32.totalorder %s14922_s22, %s14922_s22 }
  0x94   : > { %p14925_p10 = pnand %p14923_p8, %p17257_p9  ;;  %p14932_p6 = por %p14931_p3, %p14930_p0 }
  0x96   : > { %p14926_p12 = pneg %p14925_p10 }
  0x98   : > { %p14933_p11 = pnand %p14932_p6, %p14926_p12 }
  0x9a   : > { %14936 = shalt.err (!%p14933_p11)
}
  0x9b   : > { %p17258_p7 = scmp.ne.s32.totalorder %s17248_s30, 0  ;;  %s14937_s6 = scalar_lea.hbm %s17187_s21, 16 }
  0x9c   : > { %p14938_p2 = scmp.ne.s32.totalorder %s17187_s21, %s14937_s6  ;;  %p14944_p4 = scmp.lt.u32.totalorder %s14937_s6, %s17187_s21 }
  0x9d   : > { %14479 = dma.hbm_to_vmem [thread:$0]  (!%p17258_p7), %s17184_s18, 2048, %s729_s17, [#allocation11], %s17218_s15, %s17218_s15, %s17220_s25  }
  0x9e   : > { %p14940_p11 = pnand %p14938_p2, %p17257_p9 }
  0xa0   : > { %p14941_p1 = pneg %p14940_p11 }
  0xa2   : > { %p14946_p5 = pnand %p14944_p4, %p14941_p1 }
  0xa4   : > { %14949 = shalt.err (!%p14946_p5)
}
  0xa5   : > { %s14950_s17 = scalar_lea.vmem %s15429_s19, 16  ;;  %s14957_s22 = scalar_lea.vmem %s15429_s19, 32 }
  0xa6   : > { %p14951_p8 = scmp.ne.s32.totalorder %s15429_s19, %s14950_s17  ;;  %p14958_p0 = scmp.lt.s32.totalorder %s15429_s19, %s15429_s19 }
  0xa7   : > { %p14959_p3 = scmp.lt.s32.totalorder %s14957_s22, %s14950_s17 }
  0xa8   : > { %p14953_p10 = pnand %p14951_p8, %p17257_p9 }
  0xa9   : > { %p14960_p6 = por %p14959_p3, %p14958_p0 }
  0xaa   : > { %p14954_p12 = pneg %p14953_p10 }
  0xac   : > { %p14961_p2 = pnand %p14960_p6, %p14954_p12 }
  0xae   : > { %14964 = shalt.err (!%p14961_p2)
}
  0xaf   : > { %14482 = dma.hbm_to_vmem [thread:$0]  (!%p17258_p7), %s17187_s21, 16, %s15429_s19, [#allocation14]  }
  0xb0   : > { %s14442_s0 = smul.u32 384, %s15372_s2  ;;  %s17259_s23 = sld [smem:[#allocation31_spill]] }
  0xb1   : > { %s14443_s14 = smul.u32 6144, %s15109_s28  ;;  %s17260_s26 = sld [smem:[#allocation27_spill]] }
  0xb2   : > { %s799_s22 = scalar_lea.vmem [#allocation2], %s14442_s0  ;;  %s854_s19 = scalar_lea.vmem [#allocation6], %s15380_s5 }
  0xb3   : > { %s806_s12 = sshll.u32 %s799_s22, 4  ;;  %s15492_s13 = sshll.u32 %s854_s19, 4  ;;  %s15489_s12 = int_to_ptr.vmem [resolvable:$true] %s806_s12  ;;  %s15522_s13 = int_to_ptr.vmem [resolvable:$true] %s15492_s13 }
  0xb4   : > { %s796_s15 = scalar_lea.sflag [#allocation3], %s15372_s2 }
  0xb6   : > { %s15482_s10 = scalar_lea.hbm %s17259_s23, %s15383_s20 }
  0xb7   : > { %s15487_s17 = scalar_lea.hbm %s17260_s26, %s14443_s14  ;;  %s14970_s7 = scalar_lea.hbm %s17260_s26, 18432 }
  0xb8   : > { %s14965_s16 = scalar_lea.hbm %s15487_s17, 6144  ;;  %p14971_p1 = scmp.lt.u32.totalorder %s15487_s17, %s17260_s26 }
  0xb9   : > { %p14966_p9 = scmp.ne.s32.totalorder %s15487_s17, %s14965_s16  ;;  %p14972_p4 = scmp.lt.u32.totalorder %s14970_s7, %s14965_s16 }
  0xba   : > { %p14974_p8 = scmp.lt.u32.totalorder %s14965_s16, %s15487_s17 }
  0xbb   : > { %p14968_p7 = pnand %p14966_p9, %p15402_p13  ;;  %p14973_p5 = por %p14972_p4, %p14971_p1 }
  0xbd   : > { %p14969_p11 = pneg %p14968_p7  ;;  %p14975_p10 = por %p14974_p8, %p14973_p5 }
  0xbf   : > { %p14976_p12 = pnand %p14975_p10, %p14969_p11 }
  0xc1   : > { %14979 = shalt.err (!%p14976_p12)
}
  0xc2   : > { %s14980_s0 = scalar_lea.vmem %s15489_s12, 6144  ;;  %s15120_s22 = smov [#allocation2]  }
  0xc3   : > { %p14981_p0 = scmp.ne.s32.totalorder %s15489_s12, %s14980_s0  ;;  %s14985_s19 = sshll.u32 %s15120_s22, 4  ;;  %s14986_s19 = int_to_ptr.vmem [resolvable:$false] %s14985_s19 }
  0xc4   : > { %s14987_s25 = scalar_lea.vmem %s14986_s19, 12288  ;;  %p14988_p2 = scmp.lt.s32.totalorder %s15489_s12, %s14986_s19 }
  0xc5   : > { %p14983_p3 = pnand %p14981_p0, %p15402_p13  ;;  %p14989_p9 = scmp.lt.s32.totalorder %s14987_s25, %s14980_s0 }
  0xc7   : > { %p14984_p6 = pneg %p14983_p3  ;;  %p14990_p7 = por %p14989_p9, %p14988_p2 }
  0xc9   : > { %p14991_p1 = pnand %p14990_p7, %p14984_p6 }
  0xcb   : > { %14994 = shalt.err (!%p14991_p1)
}
  0xcc   : > { %p17261_p11 = scmp.ne.s32.totalorder %s17254_s9, 0  ;;  %s17262_s16 = smov 24  }
  0xcd   : > { %s17263_s6 = smov 384   ;;  %s14995_s14 = scalar_lea.hbm %s15482_s10, 2048 }
  0xce   : > { %14486 = dma.hbm_to_vmem [thread:$0]  (!%p17261_p11), %s15487_s17, 6144, %s15489_s12, %s796_s15, %s17263_s6, %s17263_s6, %s17262_s16  }
  0xcf   : > { %p14996_p4 = scmp.ne.s32.totalorder %s15482_s10, %s14995_s14  ;;  %s15000_s2 = scalar_lea.hbm %s17259_s23, 6144 }
  0xd0   : > { %p15001_p10 = scmp.lt.u32.totalorder %s15482_s10, %s17259_s23  ;;  %p15002_p12 = scmp.lt.u32.totalorder %s15000_s2, %s14995_s14 }
  0xd1   : > { %p14998_p5 = pnand %p14996_p4, %p15402_p13  ;;  %p15004_p3 = scmp.lt.u32.totalorder %s14995_s14, %s15482_s10 }
  0xd2   : > { %p15003_p0 = por %p15002_p12, %p15001_p10 }
  0xd3   : > { %p14999_p8 = pneg %p14998_p5 }
  0xd4   : > { %p15005_p6 = por %p15004_p3, %p15003_p0 }
  0xd6   : > { %p15006_p2 = pnand %p15005_p6, %p14999_p8 }
  0xd8   : > { %15009 = shalt.err (!%p15006_p2)
}
  0xd9   : > { %s15010_s15 = scalar_lea.vmem %s15522_s13, 2048  ;;  %s15121_s17 = smov [#allocation6]  }
  0xda   : > { %p15011_p9 = scmp.ne.s32.totalorder %s15522_s13, %s15010_s15  ;;  %s15015_s12 = sshll.u32 %s15121_s17, 4  ;;  %s15016_s12 = int_to_ptr.vmem [resolvable:$false] %s15015_s12 }
  0xdb   : > { %s15017_s19 = scalar_lea.vmem %s15016_s12, 4096  ;;  %p15018_p4 = scmp.lt.s32.totalorder %s15522_s13, %s15016_s12 }
  0xdc   : > { %p15013_p7 = pnand %p15011_p9, %p15402_p13  ;;  %p15019_p5 = scmp.lt.s32.totalorder %s15017_s19, %s15010_s15 }
  0xde   : > { %p15014_p1 = pneg %p15013_p7  ;;  %p15020_p10 = por %p15019_p5, %p15018_p4 }
  0xe0   : > { %p15021_p12 = pnand %p15020_p10, %p15014_p1 }
  0xe2   : > { %15024 = shalt.err (!%p15021_p12)
}
  0xe3   : > { %s17264_s25 = smov 8   ;;  %s17265_s16 = smov 128  }
  0xe4   : > { %14492 = dma.hbm_to_vmem [thread:$0]  (!%p17261_p11), %s15482_s10, 2048, %s15522_s13, %s15396_s1, %s17265_s16, %s17265_s16, %s17264_s25  }
  0xe5   : > { %s17266_s7 = sld [smem:[#allocation32_spill]]  ;;  %s875_s0 = scalar_lea.vmem [#allocation7], %s15380_s5 }
  0xe6   : > { %s882_s22 = sshll.u32 %s875_s0, 4  ;;  %s17268_s15 = sand.u32 1, %s15109_s28   ;;  %s15556_s22 = int_to_ptr.vmem [resolvable:$true] %s882_s22 }
  0xe7   : > { %s15560_s17 = scalar_lea.sflag [#allocation8], %s17268_s15 }
  0xeb   : > { %s17267_s30 = smov %s17266_s7  ;;  %s15553_s2 = scalar_lea.hbm %s17266_s7, %s15383_s20 }
  0xec   : > { %s15025_s12 = scalar_lea.hbm %s15553_s2, 2048  ;;  %s15030_s20 = scalar_lea.hbm %s17267_s30, 6144 }
  0xed   : > { %p15026_p8 = scmp.ne.s32.totalorder %s15553_s2, %s15025_s12  ;;  %p15031_p6 = scmp.lt.u32.totalorder %s15553_s2, %s17267_s30 }
  0xee   : > { %p15032_p2 = scmp.lt.u32.totalorder %s15030_s20, %s15025_s12  ;;  %p15034_p7 = scmp.lt.u32.totalorder %s15025_s12, %s15553_s2 }
  0xef   : > { %p15028_p0 = pnand %p15026_p8, %p15402_p13 }
  0xf0   : > { %p15033_p9 = por %p15032_p2, %p15031_p6 }
  0xf1   : > { %p15029_p3 = pneg %p15028_p0 }
  0xf2   : > { %p15035_p1 = por %p15034_p7, %p15033_p9 }
  0xf4   : > { %p15036_p4 = pnand %p15035_p1, %p15029_p3 }
  0xf6   : > { %15039 = shalt.err (!%p15036_p4)
}
  0xf7   : > { %s15040_s28 = scalar_lea.vmem %s15556_s22, 2048  ;;  %s15122_s5 = smov [#allocation7]  }
  0xf8   : > { %p15041_p5 = scmp.ne.s32.totalorder %s15556_s22, %s15040_s28  ;;  %s15045_s6 = sshll.u32 %s15122_s5, 4  ;;  %s15046_s6 = int_to_ptr.vmem [resolvable:$false] %s15045_s6 }
  0xf9   : > { %s15047_s14 = scalar_lea.vmem %s15046_s6, 4096  ;;  %p15048_p8 = scmp.lt.s32.totalorder %s15556_s22, %s15046_s6 }
  0xfa   : > { %p15043_p10 = pnand %p15041_p5, %p15402_p13  ;;  %p15049_p0 = scmp.lt.s32.totalorder %s15047_s14, %s15040_s28 }
  0xfc   : > { %p15044_p12 = pneg %p15043_p10  ;;  %p15050_p6 = por %p15049_p0, %p15048_p8 }
  0xfe   : > { %p15051_p2 = pnand %p15050_p6, %p15044_p12 }
 0x100   : > { %15054 = shalt.err (!%p15051_p2)
}
 0x101   : > { %14495 = dma.hbm_to_vmem [thread:$0]  (!%p17261_p11), %s15553_s2, 2048, %s15556_s22, %s15560_s17, %s17265_s16, %s17265_s16, %s17264_s25  }
 0x102   : > { %p17269_p13 = scmp.ne.s32.totalorder %s17247_s29, 0 }
 0x103   : > { %s902_s27 = sand.u32 (!%p17269_p13), 1, %s15101_s3   ;;  %p17270_p3 = scmp.ne.s32.totalorder (!%p17269_p13), %s17246_s4, 0 }
 0x104   : > { %900 = sbr.rel (%p17269_p13) target bundleno = 8754 (0x2232), region = 124  ;;  %s903_s0 = scalar_lea.sflag (!%p17269_p13), [#allocation3], %s902_s27 }
 0x105   : > { %s14444_s7 = smul.u32 (!%p17269_p13), 384, %s902_s27 }
 0x107   : > { %s15590_s15 = scalar_lea.vmem (!%p17269_p13), [#allocation2], %s14444_s7 }
 0x10b   : > { %15072 = dma.done.wait (%p17270_p3), %s903_s0, 6144  }
 0x10c   : > { %15074 = vsyncadd (%p17270_p3), %s903_s0, 4294961152  ;;  %s911_s9 = sand.u32 1, %s15281_s8   ;;  %s12570_s12 = sshll.u32 %s902_s27, 7 }
 0x10d   : > { %s912_s25 = scalar_lea.sflag [#allocation5], %s911_s9  ;;  %s15597_s16 = scalar_lea.vmem [#allocation4], %s12570_s12 }
 0x10e   : > { %15076 = dma.done.wait (%p17270_p3), %s912_s25, 4096  }
 0x10f   : > { %15078 = vsyncadd (%p17270_p3), %s912_s25, 4294963200  ;;  %s15603_s29 = scalar_lea.vmem [#allocation6], %s12570_s12  ;;  %s930_s2 = scalar_lea.sflag [#allocation8], %s911_s9 }
 0x110   : > { %s15605_s22 = scalar_lea.vmem [#allocation7], %s12570_s12 }
 0x111   : > { %15080 = dma.done.wait (%p17270_p3), %s930_s2, 2048  }
 0x112   : > { %15082 = vsyncadd (%p17270_p3), %s930_s2, 4294965248  ;;  %p17271_p11 = scmp.eq.s32.totalorder %s15281_s8, 0 }
 0x114   : > { %15084 = dma.done.wait (%p17271_p11), [#allocation8], 6144   ;;  %p17272_p9 = pmov %p17271_p11 }
 0x116   : > { %15086 = vsyncadd (%p17272_p9), [#allocation8], 4294961152  ;;  %p17273_p7 = pmov %p17272_p9 }
 0x118   : > { %15088 = dma.done.wait (%p17273_p7), [#allocation11], 2064   ;;  %p17274_p1 = pmov %p17273_p7 }
 0x11a   : > { %15090 = vsyncadd (%p17274_p1), [#allocation11], 4294965232  ;;  %p17275_p4 = pmov %p17274_p1 }
 0x11b   : > { %p17276_p5 = pmov %p17274_p1 }
 0x11c   : > { %15092 = dma.done.wait (%p17275_p4), [#allocation14], 16  }
 0x11d   : > { %15094 = vsyncadd (%p17276_p5), [#allocation14], 4294967280  ;;  %v15123_v0 = vmov 0.0   ;;  %p1058_p10 = scmp.lt.s32.totalorder %s15281_s8, 2  ;;  %v1100_v1 = vld [vmem:[%s15590_s15 + $0x8] sm:$0xff]  ;;  %v1103_v2 = vld [vmem:[%s15590_s15 + $0x20] sm:$0xff] }
 0x11e   : > { %1228 = vmatprep.mubr.f32.mxu0 %v15123_v0  ;;  %v1099_v3 = vld [vmem:[%s15590_s15] sm:$0xff]  ;;  %v14016_v4 = vpack.c.bf16 %v1103_v2, %v1100_v1  ;;  %v1102_v5 = vld [vmem:[%s15590_s15 + $0x18] sm:$0xff]  ;;  %v1109_v7 = vld [vmem:[%s15590_s15 + $0x50] sm:$0xff]  ;;  %s17277_s10 = sld [smem:[#allocation24_spill]]  ;;  %s17278_s28 = sld [smem:[#allocation25_spill]]  ;;  %vm15124_vm0 = vmmov 0  }
 0x11f   : > { %s17302_s8 = smov (!%p1058_p10, %s15281_s8), 2  ;;  %v1106_v6 = vld [vmem:[%s15590_s15 + $0x38] sm:$0xff]  ;;  %v14018_v8 = vpack.c.bf16 %v1102_v5, %v1099_v3  ;;  %v1105_v10 = vld [vmem:[%s15590_s15 + $0x30] sm:$0xff]  ;;  %v1108_v11 = vld [vmem:[%s15590_s15 + $0x48] sm:$0xff]  ;;  %s17279_s27 = sld [smem:[#allocation26_spill]]  ;;  %vm1657_vm5 = vcmask 64512  }
 0x120   : > { %v14020_v9 = vpack.c.bf16 %v1109_v7, %v1106_v6  ;;  %v1112_v12 = vld [vmem:[%s15590_s15 + $0x68] sm:$0xff]  ;;  %14017 = vmatprep.subr.bf16.mxu0 %v14016_v4  ;;  %v1115_v13 = vld [vmem:[%s15590_s15 + $0x80] sm:$0xff]  ;;  %v14022_v14 = vpack.c.bf16 %v1108_v11, %v1105_v10  ;;  %s15639_s4 = sshll.u32 %s17302_s8, 4  ;;  %v1114_v17 = vld [vmem:[%s15590_s15 + $0x78] sm:$0xff]  ;;  %s14445_s0 = smul.u32 3, %s17302_s8  ;;  %vm4890_vm15 = vcmask 130048  }
 0x121   : > { %14019 = vmatpush1.bf16.msra.mxu0 %v14018_v8  ;;  %v14024_v15 = vpack.c.bf16 %v1115_v13, %v1112_v12  ;;  %v1111_v16 = vld [vmem:[%s15590_s15 + $0x60] sm:$0xff]  ;;  %v1118_v18 = vld [vmem:[%s15590_s15 + $0x98] sm:$0xff]  ;;  %v1121_v19 = vld [vmem:[%s15590_s15 + $0xb0] sm:$0xff]  ;;  %s17280_s12 = sld [smem:[#allocation28_spill]]  ;;  %s17281_s17 = sld [smem:[#allocation30_spill]] }
 0x122   : > { %14021 = vmatprep.subr.bf16.mxu0 %v14020_v9  ;;  %v14026_v20 = vpack.c.bf16 %v1114_v17, %v1111_v16  ;;  %v14028_v21 = vpack.c.bf16 %v1121_v19, %v1118_v18  ;;  %v1117_v22 = vld [vmem:[%s15590_s15 + $0x90] sm:$0xff]  ;;  %v1120_v23 = vld [vmem:[%s15590_s15 + $0xa8] sm:$0xff]  ;;  %v1127_v25 = vld [vmem:[%s15590_s15 + $0xe0] sm:$0xff]  ;;  %v1088_v16 = vlaneseq  ;;  %s17286_s19 = sld [smem:[#allocation39_spill]]  ;;  %s17294_s2 = sld [smem:[#allocation44_spill]] }
 0x123   : > { %v1124_v24 = vld [vmem:[%s15590_s15 + $0xc8] sm:$0xff]  ;;  %v14030_v27 = vpack.c.bf16 %v1120_v23, %v1117_v22  ;;  %v1123_v28 = vld [vmem:[%s15590_s15 + $0xc0] sm:$0xff]  ;;  %v1126_v29 = vld [vmem:[%s15590_s15 + $0xd8] sm:$0xff] }
 0x124   : > { %s15649_s20 = scalar_lea.vmem %s17277_s10, %s15639_s4  ;;  %v1101_v30 = vld [vmem:[%s15590_s15 + $0x10] sm:$0xff]  ;;  %v14032_v31 = vpack.c.bf16 %v1127_v25, %v1124_v24  ;;  %v1104_v32 = vld [vmem:[%s15590_s15 + $0x28] sm:$0xff]  ;;  %v1107_v33 = vld [vmem:[%s15590_s15 + $0x40] sm:$0xff]  ;;  %v14034_v41 = vpack.c.bf16 %v1126_v29, %v1123_v28  ;;  %s1067_s5 = scalar_lea.vmem %s17278_s28, %s15639_s4  ;;  %v15711_v17 = vshrl.u32 %v1088_v16, 7 }
 0x125   : > { %14023 = vmatpush1.bf16.msra.mxu0 %v14022_v14  ;;  %v15656_v26 = vld [vmem:[%s15649_s20] sm:$0xff]  ;;  %v1110_v34 = vld [vmem:[%s15590_s15 + $0x58] sm:$0xff]  ;;  %v1133_v36 = vld [vmem:[%s15590_s15 + $0x110] sm:$0xff]  ;;  %v14048_v37 = vpack.c.bf16 %v1104_v32, %v1101_v30  ;;  %s1072_s7 = scalar_lea.vmem %s17279_s27, %s15639_s4  ;;  %s17288_s10 = sld [smem:[#allocation40_spill]] }
 0x126   : > { %14025 = vmatprep.subr.bf16.mxu0 %v14024_v15  ;;  %13145 = vmatprep.mubr.f32.mxu1 %v15656_v26  ;;  %v1130_v35 = vld [vmem:[%s15590_s15 + $0xf8] sm:$0xff]  ;;  %v14052_v38 = vpack.c.bf16 %v1110_v34, %v1107_v33  ;;  %v1113_v39 = vld [vmem:[%s15590_s15 + $0x70] sm:$0xff]  ;;  %v1116_v40 = vld [vmem:[%s15590_s15 + $0x88] sm:$0xff]  ;;  %s17291_s27 = sld [smem:[#allocation45_spill]] }
 0x127   : > { %14049 = vmatprep.subr.bf16.mxu1 %v14048_v37  ;;  %v14036_v42 = vpack.c.bf16 %v1133_v36, %v1130_v35  ;;  %v1129_v43 = vld [vmem:[%s15590_s15 + $0xf0] sm:$0xff]  ;;  %v1132_v44 = vld [vmem:[%s15590_s15 + $0x108] sm:$0xff]  ;;  %v1139_v46 = vld [vmem:[%s15590_s15 + $0x140] sm:$0xff]  ;;  %v14056_v47 = vpack.c.bf16 %v1116_v40, %v1113_v39  ;;  %s1076_s25 = scalar_lea.vmem %s17280_s12, %s14445_s0  ;;  %s1079_s1 = scalar_lea.vmem %s17281_s17, %s17302_s8 }
 0x128   : > { %14051 = vmatpush3.bf16.msra.mxu1 %v14048_v37  ;;  %v1136_v45 = vld [vmem:[%s15590_s15 + $0x128] sm:$0xff]  ;;  %v1119_v48 = vld [vmem:[%s15590_s15 + $0xa0] sm:$0xff]  ;;  %v1122_v49 = vld [vmem:[%s15590_s15 + $0xb8] sm:$0xff]  ;;  %v14038_v50 = vpack.c.bf16 %v1132_v44, %v1129_v43  ;;  %s17287_s17 = sld [smem:[#allocation37_spill]]  ;;  %s17293_s12 = sld [smem:[#allocation43_spill]] }
 0x129   : > { %14027 = vmatpush1.bf16.msra.mxu0 %v14026_v20  ;;  %14053 = vmatprep.subr.bf16.mxu1 %v14052_v38  ;;  %v14040_v51 = vpack.c.bf16 %v1139_v46, %v1136_v45  ;;  %v1135_v52 = vld [vmem:[%s15590_s15 + $0x120] sm:$0xff]  ;;  %v1138_v53 = vld [vmem:[%s15590_s15 + $0x138] sm:$0xff]  ;;  %v1145_v55 = vld [vmem:[%s15590_s15 + $0x170] sm:$0xff]  ;;  %v14060_v56 = vpack.c.bf16 %v1122_v49, %v1119_v48  ;;  %v15716_v20 = vand.u32 127, %v1088_v16 }
 0x12a   : > { %14029 = vmatprep.subr.bf16.mxu0 %v14028_v21  ;;  %v1142_v54 = vld [vmem:[%s15590_s15 + $0x158] sm:$0xff]  ;;  %v1125_v57 = vld [vmem:[%s15590_s15 + $0xd0] sm:$0xff]  ;;  %v1128_v58 = vld [vmem:[%s15590_s15 + $0xe8] sm:$0xff]  ;;  %v14042_v59 = vpack.c.bf16 %v1138_v53, %v1135_v52  ;;  %v1155_v21 = vsub.s32 1, %v15711_v17  ;;  %v1159_v52 = vsub.s32 2, %v15711_v17 }
 0x12b   : > { %v14044_v60 = vpack.c.bf16 %v1145_v55, %v1142_v54  ;;  %v1141_v61 = vld [vmem:[%s15590_s15 + $0x150] sm:$0xff]  ;;  %v1144_v62 = vld [vmem:[%s15590_s15 + $0x168] sm:$0xff]  ;;  %v14064_v63 = vpack.c.bf16 %v1128_v58, %v1125_v57  ;;  %v1131_v1 = vld [vmem:[%s15590_s15 + $0x100] sm:$0xff]  ;;  %vm1369_vm1 = vcmp.lt.s32.totalorder %v15716_v20, 8  ;;  %vm1706_vm2 = vcmp.ge.s32.totalorder %v15716_v20, 8 }
 0x12c   : > { %14055 = vmatpush3.bf16.msra.mxu1 %v14052_v38  ;;  %v1134_v2 = vld [vmem:[%s15590_s15 + $0x118] sm:$0xff]  ;;  %v14046_v3 = vpack.c.bf16 %v1144_v62, %v1141_v61  ;;  %v1137_v5 = vld [vmem:[%s15590_s15 + $0x130] sm:$0xff]  ;;  %v1140_v6 = vld [vmem:[%s15590_s15 + $0x148] sm:$0xff]  ;;  %v15727_v28 = vsel %vm1369_vm1, 1.0, %v15123_v0  ;;  %vm1707_vm3 = vcmp.lt.s32.totalorder %v15716_v20, 16  ;;  %vm2627_vm6 = vcmp.ge.s32.totalorder %v15716_v20, 16 }
 0x12d   : > { %14031 = vmatpush1.bf16.msra.mxu0 %v14030_v27  ;;  %14057 = vmatprep.subr.bf16.mxu1 %v14056_v47  ;;  %v14068_v4 = vpack.c.bf16 %v1134_v2, %v1131_v1  ;;  %v14072_v7 = vpack.c.bf16 %v1140_v6, %v1137_v5  ;;  %v1094_v8 = vld [vmem:[%s15649_s20 + $0x8] sm:$0xff]  ;;  %v1095_v9 = vld [vmem:[%s1067_s5] sm:$0xff]  ;;  %v1146_v14 = vld [vmem:[%s15590_s15 + $0x178] sm:$0xff]  ;;  %vm2628_vm7 = vcmp.lt.s32.totalorder %v15716_v20, 24  ;;  %vm3260_vm9 = vcmp.ge.s32.totalorder %v15716_v20, 24 }
 0x12e   : > { %14033 = vmatprep.subr.bf16.mxu0 %v14032_v31  ;;  %v1096_v10 = vld [vmem:[%s1067_s5 + $0x8] sm:$0xff]  ;;  %v1097_v11 = vld [vmem:[%s1072_s7] sm:$0xff]  ;;  %vm1708_vm4 = vmand %vm1706_vm2, %vm1707_vm3  ;;  %vm3261_vm10 = vcmp.lt.s32.totalorder %v15716_v20, 32  ;;  %vm1090_vm12 = vcmp.lt.s32.totalorder %v15716_v20, 40  ;;  %vm3893_vm13 = vcmp.ge.s32.totalorder %v15716_v20, 32  ;;  %vm6670_vm1 = vcmask 1041408  }
 0x12f   : > { %v1098_v12 = vld [vmem:[%s1072_s7 + $0x8] sm:$0xff]  ;;  %v1143_v13 = vld [vmem:[%s15590_s15 + $0x160] sm:$0xff]  ;;  %vm2629_vm8 = vmand %vm2627_vm6, %vm2628_vm7  ;;  %vm5905_vm2 = vcmask 9216   ;;  %vm6666_vm3 = vcmask 15360   ;;  %s17283_s7 = sld [smem:[#allocation35_spill]]  ;;  %s17290_s5 = sld [smem:[#allocation42_spill]] }
 0x130   : > { %14059 = vmatpush3.bf16.msra.mxu1 %v14056_v47  ;;  %v14076_v15 = vpack.c.bf16 %v1146_v14, %v1143_v13  ;;  %v15719_v23 = vld [vmem:[%s1076_s25] sm:$0x7]  ;;  %v15764_v47 = vsel %vm1708_vm4, 1.0, %v15123_v0  ;;  %vm3262_vm11 = vmand %vm3260_vm9, %vm3261_vm10  ;;  %s17292_s15 = smov %s17291_s27 }
 0x131   : > { %14035 = vmatpush1.bf16.msra.mxu0 %v14034_v41  ;;  %14061 = vmatprep.subr.bf16.mxu1 %v14060_v56  ;;  %v1156_v25 = vrot.slane %v15719_v23, %v1155_v21  ;;  %v1160_v54 = vrot.slane %v15719_v23, %v1159_v52  ;;  %vm3894_vm14 = vmand %vm3893_vm13, %vm1090_vm12 }
 0x132   : > { %14037 = vmatprep.subr.bf16.mxu0 %v14036_v42 }
 0x134   : > { %14063 = vmatpush3.bf16.msra.mxu1 %v14060_v56 }
 0x135   : > { %14039 = vmatpush1.bf16.msra.mxu0 %v14038_v50  ;;  %14065 = vmatprep.subr.bf16.mxu1 %v14064_v63  ;;  %s17284_s0 = smov %s17283_s7 }
 0x136   : > { %14041 = vmatprep.subr.bf16.mxu0 %v14040_v51 }
 0x138   : > { %14067 = vmatpush3.bf16.msra.mxu1 %v14064_v63 }
 0x139   : > { %14043 = vmatpush1.bf16.msra.mxu0 %v14042_v59  ;;  %14069 = vmatprep.subr.bf16.mxu1 %v14068_v4 }
 0x13a   : > { %14045 = vmatprep.subr.bf16.mxu0 %v14044_v60 }
 0x13c   : > { %14071 = vmatpush3.bf16.msra.mxu1 %v14068_v4 }
 0x13d   : > { %14047 = vmatpush1.bf16.msra.mxu0 %v14046_v3  ;;  %14073 = vmatprep.subr.bf16.mxu1 %v14072_v7 }
 0x13e   : > { %13199 = vmatprep.subr.mxu0 %v15123_v0 }
 0x140   : > { %1229 = vmatmul.mubr.f32.vlgmr.msra.gmra.mrb[0].mxu0 %v15656_v26  ;;  %14075 = vmatpush3.bf16.msra.mxu1 %v14072_v7  ;;  %v1151_v26 = vsub.s32 0, %v15711_v17 }
 0x141   : > { %1233 = vmatprep.mubr.f32.mxu0 %v15123_v0  ;;  %14077 = vmatprep.subr.bf16.mxu1 %v14076_v15 }
 0x142   : > { %v1152_v31 = vrot.slane %v15719_v23, %v1151_v26 }
 0x144   : > { %1234 = vmatmul.mubr.f32.gmra.mrb[2].mxu0 %v1094_v8  ;;  %14079 = vmatpush3.bf16.msra.mxu1 %v14076_v15 }
 0x145   : > { %1238 = vmatprep.mubr.f32.mxu0 %v15123_v0  ;;  %13154 = vmatprep.subr.mxu1 %v15123_v0 }
 0x147   : > { %13146 = vmatmul.mubr.f32.vlgmr.msra.gmra.mrb[0].mxu1 %v1094_v8 }
 0x148   : > { %1239 = vmatmul.mubr.f32.gmra.mrb[4].mxu0 %v1095_v9  ;;  %13148 = vmatprep.mubr.f32.mxu1 %v1095_v9 }
 0x149   : > { %1243 = vmatprep.mubr.f32.mxu0 %v15123_v0 }
 0x14b   : > { %13149 = vmatmul.mubr.f32.gmra.mrb[2].mxu1 %v1096_v10 }
 0x14c   : > { %1244 = vmatmul.mubr.f32.gmra.mrb[6].mxu0 %v1096_v10  ;;  %13151 = vmatprep.mubr.f32.mxu1 %v1097_v11 }
 0x14d   : > { %1248 = vmatprep.mubr.f32.mxu0 %v15123_v0 }
 0x14f   : > { %13152 = vmatmul.mubr.f32.gmra.mrb[4].mxu1 %v1098_v12 }
 0x150   : > { %1249 = vmatmul.mubr.f32.gmra.mrb[8].mxu0 %v1097_v11  ;;  %13156 = vmatprep.mubr.msk.f32.mxu1 %vm15124_vm0, %v15123_v0 }
 0x151   : > { %1253 = vmatprep.mubr.f32.mxu0 %v15123_v0 }
 0x154   : > { %1254 = vmatmul.mubr.f32.gmra.mrb[10].mxu0 %v1098_v12 }
 0x155   : > { %13201 = vmatprep.mubr.msk.f32.mxu0 %vm15124_vm0, %v15123_v0 }
 0x213   : > { %v1230_v18 = vpop.f32.mrb[0].mxu0 }
 0x214   : > { %v1232_v19 = vpop.f32.mrb[1].mxu0  ;;  %v15738_v36 = vadd.f32 %v1230_v18, %v1152_v31 }
 0x217   : > { %v1235_v22 = vpop.f32.mrb[2].mxu0 }
 0x218   : > { %v1237_v24 = vpop.f32.mrb[3].mxu0  ;;  %v15750_v41 = vadd.f32 %v1235_v22, %v1152_v31 }
 0x21a   : > { %v13147_v53 = vpop.f32.mrb[0].mxu1 }
 0x21b   : > { %v1240_v27 = vpop.f32.mrb[4].mxu0  ;;  %v1325_v55 = vpop.f32.mrb[1].mxu1 }
 0x21c   : > { %v1241_v29 = vpop.f32.mrb[5].mxu0 }
 0x21d   : > { %v15729_v30 = vadd.f32 %v1241_v29, %v1156_v25 }
 0x21e   : > { %v13150_v56 = vpop.f32.mrb[2].mxu1 }
 0x21f   : > { %v1245_v32 = vpop.f32.mrb[6].mxu0  ;;  %v1373_v33 = vmul.f32 %v15727_v28, %v15729_v30  ;;  %v1711_v48 = vmul.f32 %v15764_v47, %v15729_v30  ;;  %v15801_v57 = vadd.f32 %v13150_v56, %v1160_v54  ;;  %v1333_v58 = vpop.f32.mrb[3].mxu1 }
 0x220   : > { %v1246_v34 = vpop.f32.mrb[7].mxu0  ;;  %v15803_v59 = vadd.f32 %v1333_v58, %v1160_v54 }
 0x221   : > { %v15736_v35 = vadd.f32 %v1246_v34, %v1156_v25  ;;  %13155 = vmatpush3.xpose.msra.mxu1 %v1373_v33  ;;  %v2040_v62 = vmul.f32 %v15764_v47, %v15801_v57 }
 0x222   : > { %13159 = vmatprep.subr.mxu1 %v15123_v0  ;;  %v13153_v60 = vpop.f32.mrb[4].mxu1  ;;  %v2039_v61 = vmul.f32 %v15764_v47, %v15803_v59 }
 0x223   : > { %v1250_v37 = vpop.f32.mrb[8].mxu0  ;;  %v1374_v38 = vmul.f32 %v15727_v28, %v15736_v35  ;;  %v1712_v49 = vmul.f32 %v15764_v47, %v15736_v35  ;;  %v15809_v63 = vadd.f32 %v13153_v60, %v1160_v54  ;;  %v1343_v1 = vpop.f32.mrb[5].mxu1  ;;  %13200 = vmatpush3.msra.mxu0 %v2040_v62 }
 0x224   : > { %v1251_v39 = vpop.f32.mrb[9].mxu0  ;;  %13157 = vmatmul.mubr.f32.vlgmr.msra.gmra.mrb[6].mxu1 %v15738_v36  ;;  %v15811_v2 = vadd.f32 %v1343_v1, %v1160_v54  ;;  %13209 = vmatprep.subr.mxu0 %v15123_v0 }
 0x225   : > { %v15744_v40 = vadd.f32 %v1251_v39, %v1156_v25  ;;  %13160 = vmatpush3.xpose.msra.mxu1 %v1374_v38  ;;  %13161 = vmatprep.mubr.msk.f32.mxu1 %vm15124_vm0, %v15123_v0 }
 0x226   : > { %13164 = vmatprep.subr.mxu1 %v15123_v0 }
 0x227   : > { %v1255_v42 = vpop.f32.mrb[10].mxu0  ;;  %v1375_v43 = vmul.f32 %v15727_v28, %v15744_v40  ;;  %v1713_v50 = vmul.f32 %v15764_v47, %v15744_v40 }
 0x228   : > { %v1256_v44 = vpop.f32.mrb[11].mxu0  ;;  %13162 = vmatmul.mubr.f32.vlgmr.msra.gmra.mrb[8].mxu1 %v15750_v41 }
 0x229   : > { %v15756_v45 = vadd.f32 %v1256_v44, %v1156_v25  ;;  %13165 = vmatpush3.xpose.msra.mxu1 %v1375_v43  ;;  %13166 = vmatprep.mubr.msk.f32.mxu1 %vm15124_vm0, %v15123_v0 }
 0x22a   : > { %13169 = vmatprep.subr.mxu1 %v15123_v0 }
 0x22b   : > { %v1376_v46 = vmul.f32 %v15727_v28, %v15756_v45  ;;  %v1714_v51 = vmul.f32 %v15764_v47, %v15756_v45 }
 0x22c   : > { %13167 = vmatmul.mubr.f32.vlgmr.msra.gmra.mrb[10].mxu1 %v15738_v36 }
 0x22d   : > { %13170 = vmatpush3.xpose.msra.mxu1 %v1376_v46  ;;  %13171 = vmatprep.mubr.msk.f32.mxu1 %vm15124_vm0, %v15123_v0 }
 0x22e   : > { %13174 = vmatprep.subr.mxu1 %v15123_v0 }
 0x230   : > { %13172 = vmatmul.mubr.f32.vlgmr.msra.gmra.mrb[12].mxu1 %v15750_v41 }
 0x231   : > { %13175 = vmatpush3.xpose.msra.mxu1 %v1711_v48  ;;  %13176 = vmatprep.mubr.msk.f32.mxu1 %vm15124_vm0, %v15123_v0 }
 0x232   : > { %13179 = vmatprep.subr.mxu1 %v15123_v0 }
 0x234   : > { %13177 = vmatmul.mubr.f32.vlgmr.msra.gmra.mrb[14].mxu1 %v15738_v36 }
 0x235   : > { %13180 = vmatpush3.xpose.msra.mxu1 %v1712_v49  ;;  %13181 = vmatprep.mubr.msk.f32.mxu1 %vm15124_vm0, %v15123_v0 }
 0x236   : > { %13184 = vmatprep.subr.mxu1 %v15123_v0 }
 0x238   : > { %13182 = vmatmul.mubr.f32.vlgmr.msra.gmra.mrb[16].mxu1 %v15750_v41 }
 0x239   : > { %13185 = vmatpush3.xpose.msra.mxu1 %v1713_v50  ;;  %13186 = vmatprep.mubr.msk.f32.mxu1 %vm15124_vm0, %v15123_v0 }
 0x23a   : > { %13189 = vmatprep.subr.mxu1 %v15123_v0 }
 0x23c   : > { %13187 = vmatmul.mubr.f32.vlgmr.msra.gmra.mrb[18].mxu1 %v15738_v36 }
 0x23d   : > { %13190 = vmatpush3.xpose.msra.mxu1 %v1714_v51  ;;  %13191 = vmatprep.mubr.msk.f32.mxu1 %vm15124_vm0, %v15123_v0 }
 0x23e   : > { %13194 = vmatprep.subr.mxu1 %v15123_v0 }
 0x240   : > { %13192 = vmatmul.mubr.f32.vlgmr.msra.gmra.mrb[20].mxu1 %v15750_v41 }
 0x241   : > { %13196 = vmatprep.mubr.msk.f32.mxu1 %vm15124_vm0, %v15123_v0  ;;  %13195 = vmatpush3.msra.mxu1 %v2039_v61 }
 0x242   : > { %13204 = vmatprep.subr.mxu1 %v15123_v0 }
 0x2f7   : > { %v1443_v3 = vpop.f32.mrb[6].mxu1 }
 0x2f8   : > { %v13158_v4 = vpop.f32.mrb[7].mxu1  ;;  %v1658_v22 = vsel %vm1657_vm5, %v1443_v3, -inf }
 0x2fb   : > { %v1513_v5 = vpop.f32.mrb[8].mxu1 }
 0x2fc   : > { %v13163_v6 = vpop.f32.mrb[9].mxu1  ;;  %v1661_v31 = vsel %vm1657_vm5, %v1513_v5, -inf }
 0x2ff   : > { %v1583_v7 = vpop.f32.mrb[10].mxu1 }
 0x300   : > { %v13168_v8 = vpop.f32.mrb[11].mxu1  ;;  %v1664_v27 = vsel %vm1657_vm5, %v1583_v7, -inf }
 0x303   : > { %v15815_v9 = vpop.f32.mrb[12].mxu1 }
 0x304   : > { %v13173_v10 = vpop.f32.mrb[13].mxu1  ;;  %v1667_v32 = vsel %vm1657_vm5, %v15815_v9, -inf }
 0x307   : > { %v1781_v11 = vpop.f32.mrb[14].mxu1 }
 0x308   : > { %v13178_v12 = vpop.f32.mrb[15].mxu1  ;;  %v1995_v13 = vsel %vm1657_vm5, %v1781_v11, -inf }
 0x309   : > { %1996 = vmax.xlane.f32.xlu0 %v1995_v13 }
 0x30b   : > { %v1851_v14 = vpop.f32.mrb[16].mxu1 }
 0x30c   : > { %v13183_v15 = vpop.f32.mrb[17].mxu1  ;;  %v1998_v16 = vsel %vm1657_vm5, %v1851_v14, -inf }
 0x30d   : > { %1999 = vmax.xlane.f32.xlu0 %v1998_v16 }
 0x30f   : > { %v1921_v18 = vpop.f32.mrb[18].mxu1 }
 0x310   : > { %v13188_v19 = vpop.f32.mrb[19].mxu1  ;;  %v2001_v23 = vsel %vm1657_vm5, %v1921_v18, -inf }
 0x311   : > { %1659 = vmax.xlane.f32.xlu0 %v1658_v22  ;;  %2002 = vmax.xlane.f32.xlu1 %v2001_v23 }
 0x313   : > { %v1991_v24 = vpop.f32.mrb[20].mxu1 }
 0x314   : > { %v13193_v25 = vpop.f32.mrb[21].mxu1  ;;  %v2004_v29 = vsel %vm1657_vm5, %v1991_v24, -inf }
 0x315   : > { %1665 = vmax.xlane.f32.xlu0 %v1664_v27  ;;  %2005 = vmax.xlane.f32.xlu1 %v2004_v29 }
 0x319   : > { %1662 = vmax.xlane.f32.xlu1 %v1661_v31 }
 0x31d   : > { %1668 = vmax.xlane.f32.xlu1 %v1667_v32 }
 0x396   : > { %v1997_v33 = vpop.xlane.xlu0 %1996 }
 0x397   : > { %v2007_v34 = vsub.f32 %v1781_v11, %v1997_v33 }
 0x399   : > { %v2011_v37 = vmul.f32 1.442695, %v2007_v34  ;;  %v2041_v34 = vmul.f32 %v15764_v47, %v15811_v2 }
 0x39a   : > { %v2000_v38 = vpop.xlane.xlu0 %1999 }
 0x39b   : > { %14549 = vpow2.f32 %v2011_v37  ;;  %v2008_v39 = vsub.f32 %v1851_v14, %v2000_v38 }
 0x39d   : > { %v2013_v42 = vmul.f32 1.442695, %v2008_v39 }
 0x39e   : > { %v1660_v43 = vpop.xlane.xlu0 %1659  ;;  %v2003_v44 = vpop.xlane.xlu1 %2002 }
 0x39f   : > { %14551 = vpow2.f32 %v2013_v42  ;;  %v1670_v46 = vsub.f32 %v1443_v3, %v1660_v43  ;;  %v2009_v48 = vsub.f32 %v1921_v18, %v2003_v44  ;;  %v2042_v43 = vmul.f32 %v15764_v47, %v15809_v63 }
 0x3a1   : > { %v2015_v49 = vmul.f32 1.442695, %v2009_v48  ;;  %v1674_v50 = vmul.f32 1.442695, %v1670_v46 }
 0x3a2   : > { %v1666_v51 = vpop.xlane.xlu0 %1665  ;;  %v2006_v53 = vpop.xlane.xlu1 %2005 }
 0x3a3   : > { %v1672_v54 = vsub.f32 %v1583_v7, %v1666_v51  ;;  %v2010_v55 = vsub.f32 %v1991_v24, %v2006_v53  ;;  %14553 = vpow2.f32 %v2015_v49  ;;  %v1702_v49 = vmul.f32 %v15727_v28, %v15803_v59 }
 0x3a4   : > { %14555 = vpow2.f32 %v1674_v50 }
 0x3a5   : > { %v14550_v56 = vpop.eup %14549  ;;  %v2017_v58 = vmul.f32 1.442695, %v2010_v55  ;;  %v1678_v60 = vmul.f32 1.442695, %v1672_v54  ;;  %v1704_v55 = vmul.f32 %v15727_v28, %v15811_v2 }
 0x3a6   : > { %v1663_v61 = vpop.xlane.xlu1 %1662  ;;  %v2019_v62 = vsel %vm1657_vm5, %v14550_v56, 0.0 }
 0x3a7   : > { %v1671_v1 = vsub.f32 %v1513_v5, %v1663_v61  ;;  %2020 = vadd.xlane.f32.xlu0 %v2019_v62  ;;  %14557 = vpow2.f32 %v2017_v58  ;;  %v15874_v62 = vsel %vm2629_vm8, 1.0, %v15123_v0 }
 0x3a8   : > { %14559 = vpow2.f32 %v1678_v60 }
 0x3a9   : > { %v14552_v4 = vpop.eup %14551  ;;  %v1676_v3 = vmul.f32 1.442695, %v1671_v1 }
 0x3aa   : > { %v1669_v6 = vpop.xlane.xlu1 %1668  ;;  %v2022_v8 = vsel %vm1657_vm5, %v14552_v4, 0.0 }
 0x3ab   : > { %14561 = vpow2.f32 %v1676_v3  ;;  %v1673_v7 = vsub.f32 %v15815_v9, %v1669_v6  ;;  %2023 = vadd.xlane.f32.xlu1 %v2022_v8  ;;  %v2632_v6 = vmul.f32 %v15874_v62, %v15729_v30 }
 0x3ad   : > { %v1680_v10 = vmul.f32 1.442695, %v1673_v7  ;;  %v14554_v11 = vpop.eup %14553  ;;  %v2634_v7 = vmul.f32 %v15874_v62, %v15744_v40 }
 0x3ae   : > { %v2025_v12 = vsel %vm1657_vm5, %v14554_v11, 0.0  ;;  %v14556_v13 = vpop.eup %14555 }
 0x3af   : > { %14563 = vpow2.f32 %v1680_v10  ;;  %2026 = vadd.xlane.f32.xlu0 %v2025_v12  ;;  %v1682_v14 = vsel %vm1657_vm5, %v14556_v13, 0.0  ;;  %v2633_v10 = vmul.f32 %v15874_v62, %v15736_v35  ;;  %v2635_v12 = vmul.f32 %v15874_v62, %v15756_v45 }
 0x3b1   : > { %v14558_v5 = vpop.eup %14557 }
 0x3b2   : > { %v2028_v15 = vsel %vm1657_vm5, %v14558_v5, 0.0  ;;  %v15832_v16 = vpop.eup %14559 }
 0x3b3   : > { %1683 = vadd.xlane.f32.xlu0 %v1682_v14  ;;  %2029 = vadd.xlane.f32.xlu1 %v2028_v15  ;;  %v1688_v19 = vsel %vm1657_vm5, %v15832_v16, 0.0 }
 0x3b5   : > { %v15834_v18 = vpop.eup %14561 }
 0x3b6   : > { %v1685_v9 = vsel %vm1657_vm5, %v15834_v18, 0.0 }
 0x3b7   : > { %1689 = vadd.xlane.f32.xlu0 %v1688_v19  ;;  %1686 = vadd.xlane.f32.xlu1 %v1685_v9 }
 0x3b9   : > { %v15840_v22 = vpop.eup %14563 }
 0x3ba   : > { %v1691_v23 = vsel %vm1657_vm5, %v15840_v22, 0.0 }
 0x3bb   : > { %1692 = vadd.xlane.f32.xlu1 %v1691_v23 }
 0x434   : > { %v2021_v24 = vpop.xlane.xlu0 %2020 }
 0x435   : > { %14565 = vrcp.f32 %v2021_v24 }
 0x438   : > { %v2024_v25 = vpop.xlane.xlu1 %2023 }
 0x439   : > { %14567 = vrcp.f32 %v2024_v25 }
 0x43c   : > { %v2027_v27 = vpop.xlane.xlu0 %2026 }
 0x43d   : > { %14569 = vrcp.f32 %v2027_v27 }
 0x43f   : > { %v14566_v29 = vpop.eup %14565 }
 0x440   : > { %v2035_v31 = vmul.f32 %v14566_v29, %v14550_v56  ;;  %v1684_v32 = vpop.xlane.xlu0 %1683  ;;  %v2030_v33 = vpop.xlane.xlu1 %2029  ;;  %v1703_v56 = vmul.f32 %v15727_v28, %v15801_v57 }
 0x441   : > { %14571 = vrcp.f32 %v1684_v32 }
 0x442   : > { %13197 = vmatmul.mubr.msk.f32.vlgmr.msra.gmra.mrb[22].mxu1 %vm1657_vm5, %v2035_v31  ;;  %14573 = vrcp.f32 %v2030_v33 }
 0x443   : > { %v14568_v37 = vpop.eup %14567  ;;  %13205 = vmatpush3.msra.mxu1 %v2041_v34  ;;  %13206 = vmatprep.mubr.msk.f32.mxu1 %vm15124_vm0, %v15123_v0 }
 0x444   : > { %v2036_v38 = vmul.f32 %v14568_v37, %v14552_v4  ;;  %13214 = vmatprep.subr.mxu1 %v15123_v0  ;;  %v1690_v39 = vpop.xlane.xlu0 %1689  ;;  %v1687_v42 = vpop.xlane.xlu1 %1686  ;;  %v1705_v4 = vmul.f32 %v15727_v28, %v15809_v63 }
 0x445   : > { %14575 = vrcp.f32 %v1690_v39 }
 0x446   : > { %13202 = vmatmul.mubr.msk.f32.vlgmr.msra.gmra.mrb[12].mxu0 %vm1657_vm5, %v2036_v38  ;;  %14577 = vrcp.f32 %v1687_v42 }
 0x447   : > { %13210 = vmatpush3.msra.mxu0 %v2042_v43  ;;  %13211 = vmatprep.mubr.msk.f32.mxu0 %vm15124_vm0, %v15123_v0  ;;  %v14570_v44 = vpop.eup %14569 }
 0x448   : > { %13219 = vmatprep.subr.mxu0 %v15123_v0  ;;  %v1693_v46 = vpop.xlane.xlu1 %1692  ;;  %v2037_v48 = vmul.f32 %v14570_v44, %v14554_v11  ;;  %v2960_v11 = vmul.f32 %v15874_v62, %v15803_v59 }
 0x449   : > { %14579 = vrcp.f32 %v1693_v46 }
 0x44a   : > { %13207 = vmatmul.mubr.msk.f32.vlgmr.msra.gmra.mrb[24].mxu1 %vm1657_vm5, %v2037_v48 }
 0x44b   : > { %v14572_v50 = vpop.eup %14571  ;;  %13215 = vmatpush3.msra.mxu1 %v1702_v49  ;;  %13216 = vmatprep.mubr.msk.f32.mxu1 %vm15124_vm0, %v15123_v0 }
 0x44c   : > { %v14574_v51 = vpop.eup %14573  ;;  %13224 = vmatprep.subr.mxu1 %v15123_v0  ;;  %v1698_v53 = vmul.f32 %v14572_v50, %v14556_v13  ;;  %v2961_v13 = vmul.f32 %v15874_v62, %v15801_v57 }
 0x44d   : > { %v2038_v54 = vmul.f32 %v14574_v51, %v14558_v5 }
 0x44e   : > { %13217 = vmatmul.mubr.msk.f32.vlgmr.msra.gmra.mrb[22].mxu1 %vm1657_vm5, %v1698_v53 }
 0x44f   : > { %v14576_v58 = vpop.eup %14575  ;;  %13212 = vmatmul.mubr.msk.f32.vlgmr.msra.gmra.mrb[14].mxu0 %vm1657_vm5, %v2038_v54  ;;  %13225 = vmatpush3.msra.mxu1 %v1704_v55 }
 0x450   : > { %v14578_v60 = vpop.eup %14577  ;;  %13220 = vmatpush3.msra.mxu0 %v1703_v56  ;;  %13221 = vmatprep.mubr.msk.f32.mxu0 %vm15124_vm0, %v15123_v0  ;;  %v1700_v61 = vmul.f32 %v14576_v58, %v15832_v16 }
 0x451   : > { %13226 = vmatprep.mubr.msk.f32.mxu1 %vm15124_vm0, %v15123_v0  ;;  %13229 = vmatprep.subr.mxu0 %v15123_v0  ;;  %v1699_v1 = vmul.f32 %v14578_v60, %v15834_v18 }
 0x452   : > { %13227 = vmatmul.mubr.msk.f32.vlgmr.msra.gmra.mrb[24].mxu1 %vm1657_vm5, %v1700_v61  ;;  %13234 = vmatprep.subr.mxu1 %v15123_v0 }
 0x453   : > { %v14580_v3 = vpop.eup %14579  ;;  %13222 = vmatmul.mubr.msk.f32.vlgmr.msra.gmra.mrb[12].mxu0 %vm1657_vm5, %v1699_v1  ;;  %13236 = vmatprep.mubr.msk.f32.mxu1 %vm15124_vm0, %v15123_v0 }
 0x454   : > { %13230 = vmatpush3.msra.mxu0 %v1705_v4  ;;  %13231 = vmatprep.mubr.msk.f32.mxu0 %vm15124_vm0, %v15123_v0  ;;  %v1701_v8 = vmul.f32 %v14580_v3, %v15840_v22 }
 0x455   : > { %13239 = vmatprep.subr.mxu0 %v15123_v0 }
 0x456   : > { %13235 = vmatpush3.xpose.msra.mxu1 %v2632_v6  ;;  %v2962_v6 = vmul.f32 %v15874_v62, %v15811_v2 }
 0x457   : > { %13232 = vmatmul.mubr.msk.f32.vlgmr.msra.gmra.mrb[14].mxu0 %vm1657_vm5, %v1701_v8  ;;  %13244 = vmatprep.subr.mxu1 %v15123_v0 }
 0x458   : > { %13241 = vmatprep.mubr.msk.f32.mxu0 %vm15124_vm0, %v15123_v0 }
 0x459   : > { %13237 = vmatmul.mubr.f32.vlgmr.msra.gmra.mrb[26].mxu1 %v15738_v36 }
 0x45a   : > { %13245 = vmatpush3.xpose.msra.mxu1 %v2634_v7  ;;  %13246 = vmatprep.mubr.msk.f32.mxu1 %vm15124_vm0, %v15123_v0 }
 0x45b   : > { %13240 = vmatpush3.xpose.msra.mxu0 %v2633_v10  ;;  %13254 = vmatprep.subr.mxu1 %v15123_v0 }
 0x45c   : > { %13249 = vmatprep.subr.mxu0 %v15123_v0 }
 0x45d   : > { %13247 = vmatmul.mubr.f32.vlgmr.msra.gmra.mrb[28].mxu1 %v15738_v36 }
 0x45e   : > { %13242 = vmatmul.mubr.f32.vlgmr.msra.gmra.mrb[16].mxu0 %v15750_v41  ;;  %13255 = vmatpush3.msra.mxu1 %v2960_v11  ;;  %v15941_v11 = vsel %vm3262_vm11, 1.0, %v15123_v0 }
 0x45f   : > { %13250 = vmatpush3.xpose.msra.mxu0 %v2635_v12  ;;  %13251 = vmatprep.mubr.msk.f32.mxu0 %vm15124_vm0, %v15123_v0 }
 0x460   : > { %13259 = vmatprep.subr.mxu0 %v15123_v0  ;;  %13256 = vmatprep.mubr.msk.f32.mxu1 %vm15124_vm0, %v15123_v0 }
 0x461   : > { %13264 = vmatprep.subr.mxu1 %v15123_v0 }
 0x462   : > { %13252 = vmatmul.mubr.f32.vlgmr.msra.gmra.mrb[18].mxu0 %v15750_v41 }
 0x463   : > { %13260 = vmatpush3.msra.mxu0 %v2961_v13  ;;  %13261 = vmatprep.mubr.msk.f32.mxu0 %vm15124_vm0, %v15123_v0  ;;  %v2963_v13 = vmul.f32 %v15874_v62, %v15809_v63 }
 0x464   : > { %13269 = vmatprep.subr.mxu0 %v15123_v0 }
 0x52c   : > { %v2702_v5 = vpop.f32.mrb[26].mxu1 }
 0x52d   : > { %v13238_v14 = vpop.f32.mrb[27].mxu1  ;;  %v2916_v15 = vsel %vm1657_vm5, %v2702_v5, -inf }
 0x52e   : > { %2917 = vmax.xlane.f32.xlu0 %v2916_v15  ;;  %v3265_v14 = vmul.f32 %v15941_v11, %v15729_v30 }
 0x530   : > { %v2842_v16 = vpop.f32.mrb[28].mxu1 }
 0x531   : > { %v2772_v18 = vpop.f32.mrb[16].mxu0  ;;  %v13248_v9 = vpop.f32.mrb[29].mxu1  ;;  %v2922_v19 = vsel %vm1657_vm5, %v2842_v16, -inf }
 0x532   : > { %v13243_v22 = vpop.f32.mrb[17].mxu0  ;;  %v2919_v23 = vsel %vm1657_vm5, %v2772_v18, -inf  ;;  %2923 = vmax.xlane.f32.xlu0 %v2922_v19  ;;  %v3593_v9 = vmul.f32 %v15941_v11, %v15803_v59  ;;  %v3268_v19 = vmul.f32 %v15941_v11, %v15756_v45 }
 0x533   : > { %2920 = vmax.xlane.f32.xlu1 %v2919_v23  ;;  %v3594_v22 = vmul.f32 %v15941_v11, %v15801_v57 }
 0x535   : > { %v2912_v24 = vpop.f32.mrb[18].mxu0 }
 0x536   : > { %v13253_v25 = vpop.f32.mrb[19].mxu0  ;;  %v2925_v27 = vsel %vm1657_vm5, %v2912_v24, -inf }
 0x537   : > { %2926 = vmax.xlane.f32.xlu1 %v2925_v27 }
 0x5bb   : > { %v2918_v29 = vpop.xlane.xlu0 %2917 }
 0x5bc   : > { %v2928_v31 = vsub.f32 %v2702_v5, %v2918_v29 }
 0x5be   : > { %v2932_v32 = vmul.f32 1.442695, %v2928_v31 }
 0x5bf   : > { %v2924_v33 = vpop.xlane.xlu0 %2923 }
 0x5c0   : > { %14581 = vpow2.f32 %v2932_v32  ;;  %v2921_v34 = vpop.xlane.xlu1 %2920  ;;  %v2930_v37 = vsub.f32 %v2842_v16, %v2924_v33  ;;  %v3267_v16 = vmul.f32 %v15941_v11, %v15744_v40 }
 0x5c1   : > { %v2929_v38 = vsub.f32 %v2772_v18, %v2921_v34  ;;  %v3266_v18 = vmul.f32 %v15941_v11, %v15736_v35 }
 0x5c2   : > { %v2936_v39 = vmul.f32 1.442695, %v2930_v37 }
 0x5c3   : > { %v2934_v42 = vmul.f32 1.442695, %v2929_v38 }
 0x5c4   : > { %14583 = vpow2.f32 %v2936_v39  ;;  %v2927_v43 = vpop.xlane.xlu1 %2926 }
 0x5c5   : > { %14585 = vpow2.f32 %v2934_v42  ;;  %v2931_v44 = vsub.f32 %v2912_v24, %v2927_v43 }
 0x5c7   : > { %v2938_v46 = vmul.f32 1.442695, %v2931_v44 }
 0x5c9   : > { %14587 = vpow2.f32 %v2938_v46 }
 0x5ca   : > { %v14582_v48 = vpop.eup %14581 }
 0x5cb   : > { %v2940_v49 = vsel %vm1657_vm5, %v14582_v48, 0.0 }
 0x5cc   : > { %2941 = vadd.xlane.f32.xlu0 %v2940_v49 }
 0x5ce   : > { %v14584_v50 = vpop.eup %14583 }
 0x5cf   : > { %v14586_v51 = vpop.eup %14585  ;;  %v2946_v53 = vsel %vm1657_vm5, %v14584_v50, 0.0 }
 0x5d0   : > { %v2943_v54 = vsel %vm1657_vm5, %v14586_v51, 0.0  ;;  %2947 = vadd.xlane.f32.xlu0 %v2946_v53 }
 0x5d1   : > { %2944 = vadd.xlane.f32.xlu1 %v2943_v54 }
 0x5d3   : > { %v14588_v55 = vpop.eup %14587 }
 0x5d4   : > { %v2949_v56 = vsel %vm1657_vm5, %v14588_v55, 0.0 }
 0x5d5   : > { %2950 = vadd.xlane.f32.xlu1 %v2949_v56 }
 0x659   : > { %v2942_v58 = vpop.xlane.xlu0 %2941 }
 0x65a   : > { %14589 = vrcp.f32 %v2942_v58 }
 0x65d   : > { %v2948_v60 = vpop.xlane.xlu0 %2947 }
 0x65e   : > { %v2945_v61 = vpop.xlane.xlu1 %2944  ;;  %14591 = vrcp.f32 %v2948_v60 }
 0x65f   : > { %14593 = vrcp.f32 %v2945_v61 }
 0x662   : > { %v2951_v1 = vpop.xlane.xlu1 %2950 }
 0x663   : > { %14595 = vrcp.f32 %v2951_v1 }
 0x664   : > { %v14590_v4 = vpop.eup %14589 }
 0x665   : > { %v2956_v3 = vmul.f32 %v14590_v4, %v14582_v48 }
 0x667   : > { %13257 = vmatmul.mubr.msk.f32.vlgmr.msra.gmra.mrb[22].mxu1 %vm1657_vm5, %v2956_v3 }
 0x668   : > { %v14592_v8 = vpop.eup %14591  ;;  %13265 = vmatpush3.msra.mxu1 %v2962_v6  ;;  %13266 = vmatprep.mubr.msk.f32.mxu1 %vm15124_vm0, %v15123_v0 }
 0x669   : > { %v14594_v7 = vpop.eup %14593  ;;  %v2958_v10 = vmul.f32 %v14592_v8, %v14584_v50  ;;  %13274 = vmatprep.subr.mxu1 %v15123_v0 }
 0x66a   : > { %v2957_v12 = vmul.f32 %v14594_v7, %v14586_v51 }
 0x66b   : > { %13267 = vmatmul.mubr.msk.f32.vlgmr.msra.gmra.mrb[24].mxu1 %vm1657_vm5, %v2958_v10 }
 0x66c   : > { %13262 = vmatmul.mubr.msk.f32.vlgmr.msra.gmra.mrb[12].mxu0 %vm1657_vm5, %v2957_v12  ;;  %13276 = vmatprep.mubr.msk.f32.mxu1 %vm15124_vm0, %v15123_v0 }
 0x66d   : > { %v14596_v5 = vpop.eup %14595  ;;  %13270 = vmatpush3.msra.mxu0 %v2963_v13  ;;  %13271 = vmatprep.mubr.msk.f32.mxu0 %vm15124_vm0, %v15123_v0 }
 0x66e   : > { %v2959_v15 = vmul.f32 %v14596_v5, %v14588_v55  ;;  %13279 = vmatprep.subr.mxu0 %v15123_v0 }
 0x66f   : > { %13275 = vmatpush3.xpose.msra.mxu1 %v3265_v14 }
 0x670   : > { %13272 = vmatmul.mubr.msk.f32.vlgmr.msra.gmra.mrb[14].mxu0 %vm1657_vm5, %v2959_v15  ;;  %13284 = vmatprep.subr.mxu1 %v15123_v0  ;;  %v3595_v15 = vmul.f32 %v15941_v11, %v15811_v2 }
 0x671   : > { %13281 = vmatprep.mubr.msk.f32.mxu0 %vm15124_vm0, %v15123_v0 }
 0x672   : > { %13277 = vmatmul.mubr.f32.vlgmr.msra.gmra.mrb[30].mxu1 %v15738_v36 }
 0x673   : > { %13285 = vmatpush3.xpose.msra.mxu1 %v3267_v16  ;;  %13286 = vmatprep.mubr.msk.f32.mxu1 %vm15124_vm0, %v15123_v0 }
 0x674   : > { %13280 = vmatpush3.xpose.msra.mxu0 %v3266_v18  ;;  %13294 = vmatprep.subr.mxu1 %v15123_v0 }
 0x675   : > { %13289 = vmatprep.subr.mxu0 %v15123_v0 }
 0x676   : > { %13287 = vmatmul.mubr.f32.vlgmr.msra.gmra.mrb[32].mxu1 %v15738_v36 }
 0x677   : > { %13282 = vmatmul.mubr.f32.vlgmr.msra.gmra.mrb[20].mxu0 %v15750_v41  ;;  %13295 = vmatpush3.msra.mxu1 %v3593_v9 }
 0x678   : > { %13290 = vmatpush3.xpose.msra.mxu0 %v3268_v19  ;;  %13291 = vmatprep.mubr.msk.f32.mxu0 %vm15124_vm0, %v15123_v0  ;;  %v16004_v19 = vsel %vm3894_vm14, 1.0, %v15123_v0 }
 0x679   : > { %13299 = vmatprep.subr.mxu0 %v15123_v0  ;;  %13296 = vmatprep.mubr.msk.f32.mxu1 %vm15124_vm0, %v15123_v0 }
 0x67a   : > { %13304 = vmatprep.subr.mxu1 %v15123_v0 }
 0x67b   : > { %13292 = vmatmul.mubr.f32.vlgmr.msra.gmra.mrb[22].mxu0 %v15750_v41 }
 0x67c   : > { %13300 = vmatpush3.msra.mxu0 %v3594_v22  ;;  %13301 = vmatprep.mubr.msk.f32.mxu0 %vm15124_vm0, %v15123_v0 }
 0x67d   : > { %13309 = vmatprep.subr.mxu0 %v15123_v0 }
 0x745   : > { %v3335_v23 = vpop.f32.mrb[30].mxu1 }
 0x746   : > { %v13278_v24 = vpop.f32.mrb[31].mxu1  ;;  %v3549_v25 = vsel %vm1657_vm5, %v3335_v23, -inf }
 0x747   : > { %3550 = vmax.xlane.f32.xlu0 %v3549_v25  ;;  %v3897_v25 = vmul.f32 %v16004_v19, %v15729_v30  ;;  %v4225_v30 = vmul.f32 %v16004_v19, %v15803_v59 }
 0x749   : > { %v3475_v27 = vpop.f32.mrb[32].mxu1 }
 0x74a   : > { %v3405_v29 = vpop.f32.mrb[20].mxu0  ;;  %v13288_v31 = vpop.f32.mrb[33].mxu1  ;;  %v3555_v32 = vsel %vm1657_vm5, %v3475_v27, -inf }
 0x74b   : > { %v13283_v33 = vpop.f32.mrb[21].mxu0  ;;  %v3552_v34 = vsel %vm1657_vm5, %v3405_v29, -inf  ;;  %3556 = vmax.xlane.f32.xlu0 %v3555_v32  ;;  %v3898_v31 = vmul.f32 %v16004_v19, %v15736_v35  ;;  %v4226_v35 = vmul.f32 %v16004_v19, %v15801_v57 }
 0x74c   : > { %3553 = vmax.xlane.f32.xlu1 %v3552_v34 }
 0x74e   : > { %v3545_v37 = vpop.f32.mrb[22].mxu0 }
 0x74f   : > { %v13293_v38 = vpop.f32.mrb[23].mxu0  ;;  %v3558_v39 = vsel %vm1657_vm5, %v3545_v37, -inf }
 0x750   : > { %3559 = vmax.xlane.f32.xlu1 %v3558_v39 }
 0x7d4   : > { %v3551_v42 = vpop.xlane.xlu0 %3550 }
 0x7d5   : > { %v3561_v43 = vsub.f32 %v3335_v23, %v3551_v42  ;;  %v3596_v23 = vmul.f32 %v15941_v11, %v15809_v63 }
 0x7d7   : > { %v3565_v44 = vmul.f32 1.442695, %v3561_v43 }
 0x7d8   : > { %v3557_v46 = vpop.xlane.xlu0 %3556 }
 0x7d9   : > { %14597 = vpow2.f32 %v3565_v44  ;;  %v3554_v48 = vpop.xlane.xlu1 %3553  ;;  %v3563_v49 = vsub.f32 %v3475_v27, %v3557_v46 }
 0x7da   : > { %v3562_v50 = vsub.f32 %v3405_v29, %v3554_v48  ;;  %v3899_v29 = vmul.f32 %v16004_v19, %v15744_v40  ;;  %v3900_v40 = vmul.f32 %v16004_v19, %v15756_v45 }
 0x7db   : > { %v3569_v51 = vmul.f32 1.442695, %v3563_v49 }
 0x7dc   : > { %v3567_v53 = vmul.f32 1.442695, %v3562_v50 }
 0x7dd   : > { %14599 = vpow2.f32 %v3569_v51  ;;  %v3560_v54 = vpop.xlane.xlu1 %3559 }
 0x7de   : > { %14601 = vpow2.f32 %v3567_v53  ;;  %v3564_v55 = vsub.f32 %v3545_v37, %v3560_v54 }
 0x7e0   : > { %v3571_v56 = vmul.f32 1.442695, %v3564_v55 }
 0x7e2   : > { %14603 = vpow2.f32 %v3571_v56 }
 0x7e3   : > { %v14598_v58 = vpop.eup %14597 }
 0x7e4   : > { %v3573_v60 = vsel %vm1657_vm5, %v14598_v58, 0.0 }
 0x7e5   : > { %3574 = vadd.xlane.f32.xlu0 %v3573_v60 }
 0x7e7   : > { %v14600_v61 = vpop.eup %14599 }
 0x7e8   : > { %v14602_v1 = vpop.eup %14601  ;;  %v3579_v4 = vsel %vm1657_vm5, %v14600_v61, 0.0 }
 0x7e9   : > { %v3576_v3 = vsel %vm1657_vm5, %v14602_v1, 0.0  ;;  %3580 = vadd.xlane.f32.xlu0 %v3579_v4 }
 0x7ea   : > { %3577 = vadd.xlane.f32.xlu1 %v3576_v3 }
 0x7ec   : > { %v14604_v6 = vpop.eup %14603 }
 0x7ed   : > { %v3582_v8 = vsel %vm1657_vm5, %v14604_v6, 0.0 }
 0x7ee   : > { %3583 = vadd.xlane.f32.xlu1 %v3582_v8 }
 0x872   : > { %v3575_v7 = vpop.xlane.xlu0 %3574 }
 0x873   : > { %14605 = vrcp.f32 %v3575_v7 }
 0x876   : > { %v3581_v10 = vpop.xlane.xlu0 %3580 }
 0x877   : > { %v3578_v12 = vpop.xlane.xlu1 %3577  ;;  %14607 = vrcp.f32 %v3581_v10 }
 0x878   : > { %14609 = vrcp.f32 %v3578_v12 }
 0x87b   : > { %v3584_v13 = vpop.xlane.xlu1 %3583 }
 0x87c   : > { %14611 = vrcp.f32 %v3584_v13 }
 0x87d   : > { %v14606_v5 = vpop.eup %14605 }
 0x87e   : > { %v3589_v14 = vmul.f32 %v14606_v5, %v14598_v58 }
 0x880   : > { %13297 = vmatmul.mubr.msk.f32.vlgmr.msra.gmra.mrb[22].mxu1 %vm1657_vm5, %v3589_v14  ;;  %v1352_v14 = vld [vmem:[%s15597_s16] sm:$0xff] }
 0x881   : > { %v14608_v16 = vpop.eup %14607  ;;  %13305 = vmatpush3.msra.mxu1 %v3595_v15  ;;  %13306 = vmatprep.mubr.msk.f32.mxu1 %vm15124_vm0, %v15123_v0  ;;  %v1353_v15 = vld [vmem:[%s15597_s16 + $0x8] sm:$0xff] }
 0x882   : > { %v14610_v18 = vpop.eup %14609  ;;  %v3591_v9 = vmul.f32 %v14608_v16, %v14600_v61  ;;  %13314 = vmatprep.subr.mxu1 %v15123_v0 }
 0x883   : > { %v3590_v22 = vmul.f32 %v14610_v18, %v14602_v1 }
 0x884   : > { %13307 = vmatmul.mubr.msk.f32.vlgmr.msra.gmra.mrb[24].mxu1 %vm1657_vm5, %v3591_v9  ;;  %v14080_v9 = vpack.c.bf16 %v1353_v15, %v1352_v14  ;;  %v16093_v14 = vld [vmem:[%s15649_s20] sm:$0xff] }
 0x885   : > { %13302 = vmatmul.mubr.msk.f32.vlgmr.msra.gmra.mrb[12].mxu0 %vm1657_vm5, %v3590_v22  ;;  %13316 = vmatprep.mubr.msk.f32.mxu1 %vm15124_vm0, %v15123_v0  ;;  %v4227_v22 = vmul.f32 %v16004_v19, %v15811_v2  ;;  %v4228_v2 = vmul.f32 %v16004_v19, %v15809_v63 }
 0x886   : > { %v14612_v24 = vpop.eup %14611  ;;  %13310 = vmatpush3.msra.mxu0 %v3596_v23  ;;  %13311 = vmatprep.mubr.msk.f32.mxu0 %vm15124_vm0, %v15123_v0  ;;  %v1354_v23 = vld [vmem:[%s15597_s16 + $0x10] sm:$0xff] }
 0x887   : > { %v3592_v27 = vmul.f32 %v14612_v24, %v14604_v6  ;;  %13319 = vmatprep.subr.mxu0 %v15123_v0  ;;  %v1355_v24 = vld [vmem:[%s15597_s16 + $0x18] sm:$0xff] }
 0x888   : > { %13315 = vmatpush3.xpose.msra.mxu1 %v3897_v25 }
 0x889   : > { %13312 = vmatmul.mubr.msk.f32.vlgmr.msra.gmra.mrb[14].mxu0 %vm1657_vm5, %v3592_v27  ;;  %13324 = vmatprep.subr.mxu1 %v15123_v0 }
 0x88a   : > { %13321 = vmatprep.mubr.msk.f32.mxu0 %vm15124_vm0, %v15123_v0 }
 0x88b   : > { %13317 = vmatmul.mubr.f32.vlgmr.msra.gmra.mrb[34].mxu1 %v15738_v36 }
 0x88c   : > { %13325 = vmatpush3.xpose.msra.mxu1 %v3899_v29  ;;  %13326 = vmatprep.mubr.msk.f32.mxu1 %vm15124_vm0, %v15123_v0 }
 0x88d   : > { %13320 = vmatpush3.xpose.msra.mxu0 %v3898_v31  ;;  %13334 = vmatprep.subr.mxu1 %v15123_v0 }
 0x88e   : > { %13329 = vmatprep.subr.mxu0 %v15123_v0 }
 0x88f   : > { %13327 = vmatmul.mubr.f32.vlgmr.msra.gmra.mrb[36].mxu1 %v15738_v36 }
 0x890   : > { %13322 = vmatmul.mubr.f32.vlgmr.msra.gmra.mrb[24].mxu0 %v15750_v41  ;;  %13335 = vmatpush3.msra.mxu1 %v4225_v30  ;;  %v14084_v30 = vpack.c.bf16 %v1355_v24, %v1354_v23  ;;  %v4687_v23 = vld [vmem:[%s15605_s22 + $0x10] sm:$0xff] }
 0x891   : > { %13330 = vmatpush3.xpose.msra.mxu0 %v3900_v40  ;;  %13331 = vmatprep.mubr.msk.f32.mxu0 %vm15124_vm0, %v15123_v0  ;;  %v1356_v40 = vld [vmem:[%s15597_s16 + $0x20] sm:$0xff] }
 0x892   : > { %13339 = vmatprep.subr.mxu0 %v15123_v0  ;;  %13336 = vmatprep.mubr.msk.f32.mxu1 %vm15124_vm0, %v15123_v0 }
 0x893   : > { %13344 = vmatprep.subr.mxu1 %v15123_v0 }
 0x894   : > { %13332 = vmatmul.mubr.f32.vlgmr.msra.gmra.mrb[26].mxu0 %v15750_v41 }
 0x895   : > { %13340 = vmatpush3.msra.mxu0 %v4226_v35  ;;  %13341 = vmatprep.mubr.msk.f32.mxu0 %vm15124_vm0, %v15123_v0  ;;  %v1357_v35 = vld [vmem:[%s15597_s16 + $0x28] sm:$0xff] }
 0x896   : > { %13349 = vmatprep.subr.mxu0 %v15123_v0 }
 0x95e   : > { %v3967_v36 = vpop.f32.mrb[34].mxu1 }
 0x95f   : > { %v13318_v45 = vpop.f32.mrb[35].mxu1  ;;  %v4181_v59 = vsel %vm1657_vm5, %v3967_v36, -inf }
 0x960   : > { %4182 = vmax.xlane.f32.xlu0 %v4181_v59  ;;  %v14088_v45 = vpack.c.bf16 %v1357_v35, %v1356_v40  ;;  %v4691_v40 = vld [vmem:[%s15605_s22 + $0x30] sm:$0xff]  ;;  %v4692_v35 = vld [vmem:[%s15605_s22 + $0x38] sm:$0xff] }
 0x962   : > { %v4107_v32 = vpop.f32.mrb[36].mxu1 }
 0x963   : > { %v4037_v33 = vpop.f32.mrb[24].mxu0  ;;  %v13328_v34 = vpop.f32.mrb[37].mxu1  ;;  %v4187_v57 = vsel %vm1657_vm5, %v4107_v32, -inf }
 0x964   : > { %v13323_v37 = vpop.f32.mrb[25].mxu0  ;;  %v4184_v38 = vsel %vm1657_vm5, %v4037_v33, -inf  ;;  %4188 = vmax.xlane.f32.xlu0 %v4187_v57  ;;  %v1360_v34 = vld [vmem:[%s15597_s16 + $0x40] sm:$0xff]  ;;  %v1361_v57 = vld [vmem:[%s15597_s16 + $0x48] sm:$0xff] }
 0x965   : > { %4185 = vmax.xlane.f32.xlu1 %v4184_v38  ;;  %v14096_v37 = vpack.c.bf16 %v1361_v57, %v1360_v34  ;;  %v1362_v38 = vld [vmem:[%s15597_s16 + $0x50] sm:$0xff] }
 0x967   : > { %v4177_v41 = vpop.f32.mrb[26].mxu0 }
 0x968   : > { %v13333_v39 = vpop.f32.mrb[27].mxu0  ;;  %v4190_v42 = vsel %vm1657_vm5, %v4177_v41, -inf }
 0x969   : > { %4191 = vmax.xlane.f32.xlu1 %v4190_v42  ;;  %v1364_v42 = vld [vmem:[%s15597_s16 + $0x60] sm:$0xff] }
 0x9ed   : > { %v4183_v43 = vpop.xlane.xlu0 %4182 }
 0x9ee   : > { %v4193_v44 = vsub.f32 %v3967_v36, %v4183_v43  ;;  %v1365_v43 = vld [vmem:[%s15597_s16 + $0x68] sm:$0xff] }
 0x9f0   : > { %v4197_v46 = vmul.f32 1.442695, %v4193_v44  ;;  %v14104_v44 = vpack.c.bf16 %v1365_v43, %v1364_v42 }
 0x9f1   : > { %v4189_v48 = vpop.xlane.xlu0 %4188 }
 0x9f2   : > { %14613 = vpow2.f32 %v4197_v46  ;;  %v4186_v49 = vpop.xlane.xlu1 %4185  ;;  %v4195_v50 = vsub.f32 %v4107_v32, %v4189_v48  ;;  %v1358_v32 = vld [vmem:[%s15597_s16 + $0x30] sm:$0xff]  ;;  %v1367_v48 = vld [vmem:[%s15597_s16 + $0x78] sm:$0xff] }
 0x9f3   : > { %v4194_v51 = vsub.f32 %v4037_v33, %v4186_v49  ;;  %v1359_v33 = vld [vmem:[%s15597_s16 + $0x38] sm:$0xff]  ;;  %v1366_v46 = vld [vmem:[%s15597_s16 + $0x70] sm:$0xff] }
 0x9f4   : > { %v4201_v53 = vmul.f32 1.442695, %v4195_v50  ;;  %v14092_v63 = vpack.c.bf16 %v1359_v33, %v1358_v32  ;;  %v14108_v49 = vpack.c.bf16 %v1367_v48, %v1366_v46  ;;  %v16109_v33 = vsel %vm1090_vm12, 1.0, %v15123_v0 }
 0x9f5   : > { %v4199_v54 = vmul.f32 1.442695, %v4194_v51 }
 0x9f6   : > { %14615 = vpow2.f32 %v4201_v53  ;;  %v4192_v55 = vpop.xlane.xlu1 %4191 }
 0x9f7   : > { %14617 = vpow2.f32 %v4199_v54  ;;  %v4196_v56 = vsub.f32 %v4177_v41, %v4192_v55  ;;  %v1363_v41 = vld [vmem:[%s15597_s16 + $0x58] sm:$0xff] }
 0x9f8   : > { %v14100_v39 = vpack.c.bf16 %v1363_v41, %v1362_v38 }
 0x9f9   : > { %v4203_v58 = vmul.f32 1.442695, %v4196_v56 }
 0x9fb   : > { %14619 = vpow2.f32 %v4203_v58 }
 0x9fc   : > { %v14614_v60 = vpop.eup %14613 }
 0x9fd   : > { %v4205_v61 = vsel %vm1657_vm5, %v14614_v60, 0.0 }
 0x9fe   : > { %4206 = vadd.xlane.f32.xlu0 %v4205_v61 }
 0xa00   : > { %v14616_v1 = vpop.eup %14615 }
 0xa01   : > { %v14618_v4 = vpop.eup %14617  ;;  %v4211_v3 = vsel %vm1657_vm5, %v14616_v1, 0.0 }
 0xa02   : > { %v4208_v6 = vsel %vm1657_vm5, %v14618_v4, 0.0  ;;  %4212 = vadd.xlane.f32.xlu0 %v4211_v3 }
 0xa03   : > { %4209 = vadd.xlane.f32.xlu1 %v4208_v6 }
 0xa05   : > { %v14620_v8 = vpop.eup %14619 }
 0xa06   : > { %v4214_v7 = vsel %vm1657_vm5, %v14620_v8, 0.0 }
 0xa07   : > { %4215 = vadd.xlane.f32.xlu1 %v4214_v7 }
 0xa8b   : > { %v4207_v10 = vpop.xlane.xlu0 %4206 }
 0xa8c   : > { %14621 = vrcp.f32 %v4207_v10 }
 0xa8f   : > { %v4213_v12 = vpop.xlane.xlu0 %4212 }
 0xa90   : > { %v4210_v13 = vpop.xlane.xlu1 %4209  ;;  %14623 = vrcp.f32 %v4213_v12  ;;  %v16089_v12 = vld [vmem:[%s15649_s20 + $0x8] sm:$0xff]  ;;  %s17282_s20 = sld [smem:[#allocation33_spill]] }
 0xa91   : > { %14625 = vrcp.f32 %v4210_v13 }
 0xa94   : > { %v4216_v5 = vpop.xlane.xlu1 %4215 }
 0xa95   : > { %14627 = vrcp.f32 %v4216_v5 }
 0xa96   : > { %v14622_v16 = vpop.eup %14621  ;;  %s1082_s13 = scalar_lea.vmem %s17282_s20, %s17302_s8  ;;  %s17289_s8 = sld [smem:[#allocation41_spill]] }
 0xa97   : > { %v4221_v18 = vmul.f32 %v14622_v16, %v14614_v60  ;;  %s17295_s20 = sld [smem:[#allocation46_spill]] }
 0xa99   : > { %13337 = vmatmul.mubr.msk.f32.vlgmr.msra.gmra.mrb[22].mxu1 %vm1657_vm5, %v4221_v18 }
 0xa9a   : > { %v14624_v25 = vpop.eup %14623  ;;  %13345 = vmatpush3.msra.mxu1 %v4227_v22  ;;  %13346 = vmatprep.mubr.msk.f32.mxu1 %vm15124_vm0, %v15123_v0  ;;  %v4686_v22 = vld [vmem:[%s15605_s22 + $0x8] sm:$0xff] }
 0xa9b   : > { %v14626_v27 = vpop.eup %14625  ;;  %v4223_v29 = vmul.f32 %v14624_v25, %v14616_v1  ;;  %14081 = vmatprep.subr.bf16.mxu1 %v14080_v9  ;;  %v4688_v25 = vld [vmem:[%s15605_s22 + $0x18] sm:$0xff] }
 0xa9c   : > { %v4222_v31 = vmul.f32 %v14626_v27, %v14618_v4  ;;  %v12611_v4 = vld [vmem:[%s1079_s1] ss:$0 sm:$0xff]  ;;  %v14116_v27 = vpack.c.bf16 %v4688_v25, %v4687_v23 }
 0xa9d   : > { %13347 = vmatmul.mubr.msk.f32.vlgmr.msra.gmra.mrb[24].mxu1 %vm1657_vm5, %v4223_v29  ;;  %v4689_v29 = vld [vmem:[%s15605_s22 + $0x20] sm:$0xff] }
 0xa9e   : > { %13342 = vmatmul.mubr.msk.f32.vlgmr.msra.gmra.mrb[12].mxu0 %vm1657_vm5, %v4222_v31  ;;  %14083 = vmatpush3.bf16.msra.mxu1 %v14080_v9  ;;  %v4685_v9 = vld [vmem:[%s15605_s22] sm:$0xff]  ;;  %v4690_v31 = vld [vmem:[%s15605_s22 + $0x28] sm:$0xff] }
 0xa9f   : > { %v14628_v36 = vpop.eup %14627  ;;  %13350 = vmatpush3.msra.mxu0 %v4228_v2  ;;  %13351 = vmatprep.mubr.msk.f32.mxu0 %vm15124_vm0, %v15123_v0  ;;  %v14112_v24 = vpack.c.bf16 %v4686_v22, %v4685_v9  ;;  %v14124_v2 = vpack.c.bf16 %v4692_v35, %v4691_v40 }
 0xaa0   : > { %v4224_v59 = vmul.f32 %v14628_v36, %v14620_v8  ;;  %14085 = vmatprep.subr.bf16.mxu1 %v14084_v30 }
 0xaa1   : > { %14113 = vmatprep.subr.bf16.mxu0 %v14112_v24 }
 0xaa2   : > { %13352 = vmatmul.mubr.msk.f32.vlgmr.msra.gmra.mrb[14].mxu0 %vm1657_vm5, %v4224_v59  ;;  %14087 = vmatpush3.bf16.msra.mxu1 %v14084_v30  ;;  %v14120_v30 = vpack.c.bf16 %v4690_v31, %v4689_v29  ;;  %v4671_v29 = vld [vmem:[%s15603_s29 + $0x10] sm:$0xff]  ;;  %v4672_v31 = vld [vmem:[%s15603_s29 + $0x18] sm:$0xff] }
 0xaa3   : > { %14089 = vmatprep.subr.bf16.mxu1 %v14088_v45  ;;  %14115 = vmatpush3.bf16.msra.mxu0 %v14112_v24 }
 0xaa4   : > { %14117 = vmatprep.subr.bf16.mxu0 %v14116_v27 }
 0xaa6   : > { %14091 = vmatpush3.bf16.msra.mxu1 %v14088_v45 }
 0xaa7   : > { %14093 = vmatprep.subr.bf16.mxu1 %v14092_v63  ;;  %14119 = vmatpush3.bf16.msra.mxu0 %v14116_v27 }
 0xaa8   : > { %14121 = vmatprep.subr.bf16.mxu0 %v14120_v30 }
 0xaaa   : > { %14095 = vmatpush3.bf16.msra.mxu1 %v14092_v63 }
 0xaab   : > { %14097 = vmatprep.subr.bf16.mxu1 %v14096_v37  ;;  %14123 = vmatpush3.bf16.msra.mxu0 %v14120_v30 }
 0xaac   : > { %14125 = vmatprep.subr.bf16.mxu0 %v14124_v2 }
 0xaae   : > { %14099 = vmatpush3.bf16.msra.mxu1 %v14096_v37 }
 0xaaf   : > { %14101 = vmatprep.subr.bf16.mxu1 %v14100_v39  ;;  %14127 = vmatpush3.bf16.msra.mxu0 %v14124_v2  ;;  %v14148_v2 = vpack.c.bf16 %v4672_v31, %v4671_v29  ;;  %v4980_v31 = vld [vmem:[#allocation9 + $0x40] sm:$0xff] }
 0xab2   : > { %14103 = vmatpush3.bf16.msra.mxu1 %v14100_v39 }
 0xab3   : > { %14105 = vmatprep.subr.bf16.mxu1 %v14104_v44 }
 0xab6   : > { %14107 = vmatpush3.bf16.msra.mxu1 %v14104_v44 }
 0xab7   : > { %14109 = vmatprep.subr.bf16.mxu1 %v14108_v49 }
 0xaba   : > { %14111 = vmatpush3.bf16.msra.mxu1 %v14108_v49 }
 0xb6c   : > { %v4298_v50 = vpop.f32.mrb[22].mxu1 }
 0xb6d   : > { %v13338_v51 = vpop.f32.mrb[23].mxu1  ;;  %13386 = vmatprep.mubr.f32.mxu1 %v4298_v50 }
 0xb70   : > { %v4444_v53 = vpop.f32.mrb[24].mxu1 }
 0xb71   : > { %v4371_v54 = vpop.f32.mrb[12].mxu0  ;;  %v13348_v55 = vpop.f32.mrb[25].mxu1 }
 0xb72   : > { %v13343_v56 = vpop.f32.mrb[13].mxu0  ;;  %13387 = vmatmul.mubr.f32.vlgmr.msra.gmra.mrb[38].mxu1 %v4371_v54  ;;  %v4694_v54 = vld [vmem:[%s15605_s22 + $0x48] sm:$0xff] }
 0xb73   : > { %13389 = vmatprep.mubr.f32.mxu1 %v4444_v53  ;;  %v4693_v53 = vld [vmem:[%s15605_s22 + $0x40] sm:$0xff]  ;;  %v4695_v56 = vld [vmem:[%s15605_s22 + $0x50] sm:$0xff] }
 0xb74   : > { %v14128_v55 = vpack.c.bf16 %v4694_v54, %v4693_v53  ;;  %v4683_v54 = vld [vmem:[%s15603_s29 + $0x70] sm:$0xff] }
 0xb75   : > { %v4517_v58 = vpop.f32.mrb[14].mxu0 }
 0xb76   : > { %v13353_v60 = vpop.f32.mrb[15].mxu0  ;;  %13390 = vmatmul.mubr.f32.gmra.mrb[40].mxu1 %v4517_v58  ;;  %14129 = vmatprep.subr.bf16.mxu0 %v14128_v55  ;;  %v4696_v58 = vld [vmem:[%s15605_s22 + $0x58] sm:$0xff] }
 0xb77   : > { %14131 = vmatpush3.bf16.msra.mxu0 %v14128_v55  ;;  %v14132_v60 = vpack.c.bf16 %v4696_v58, %v4695_v56  ;;  %v4684_v55 = vld [vmem:[%s15603_s29 + $0x78] sm:$0xff] }
 0xb78   : > { %v14172_v56 = vpack.c.bf16 %v4684_v55, %v4683_v54 }
 0xb79   : > { %14133 = vmatprep.subr.bf16.mxu0 %v14132_v60 }
 0xb7b   : > { %14135 = vmatpush3.bf16.msra.mxu0 %v14132_v60 }
 0xc45   : > { %v13388_v61 = vpop.f32.mrb[38].mxu1 }
 0xc46   : > { %v4598_v1 = vpop.f32.mrb[39].mxu1  ;;  %v4604_v10 = vadd.f32 %v13388_v61, %v12611_v4  ;;  %v4697_v61 = vld [vmem:[%s15605_s22 + $0x60] sm:$0xff] }
 0xc47   : > { %v4599_v5 = vadd.f32 %v12611_v4, %v4598_v1  ;;  %v4698_v1 = vld [vmem:[%s15605_s22 + $0x68] sm:$0xff] }
 0xc48   : > { %v4618_v16 = vadd.f32 %v16089_v12, %v4604_v10  ;;  %v4670_v10 = vld [vmem:[%s15603_s29 + $0x8] sm:$0xff] }
 0xc49   : > { %v13391_v3 = vpop.f32.mrb[40].mxu1  ;;  %v4617_v18 = vadd.f32 %v16093_v14, %v4599_v5 }
 0xc4a   : > { %v4614_v6 = vadd.f32 %v13391_v3, %v12611_v4  ;;  %v4608_v8 = vpop.f32.mrb[41].mxu1  ;;  %v4699_v3 = vld [vmem:[%s15605_s22 + $0x70] sm:$0xff] }
 0xc4b   : > { %v4609_v7 = vadd.f32 %v12611_v4, %v4608_v8  ;;  %v14136_v4 = vpack.c.bf16 %v4698_v1, %v4697_v61  ;;  %v12612_v61 = vld [vmem:[%s1082_s13] ss:$0 sm:$0xff]  ;;  %s17285_s13 = sld [smem:[#allocation36_spill]] }
 0xc4c   : > { %v4644_v13 = vadd.f32 %v16089_v12, %v4614_v6  ;;  %v4700_v6 = vld [vmem:[%s15605_s22 + $0x78] sm:$0xff] }
 0xc4d   : > { %v4643_v15 = vadd.f32 %v16093_v14, %v4609_v7  ;;  %v14140_v8 = vpack.c.bf16 %v4700_v6, %v4699_v3  ;;  %14137 = vmatprep.subr.bf16.mxu0 %v14136_v4  ;;  %v4669_v7 = vld [vmem:[%s15603_s29] sm:$0xff] }
 0xc4e   : > { %4647 = vadd.xlane.f32.xlu1 %v4644_v13  ;;  %14139 = vmatpush3.bf16.msra.mxu0 %v14136_v4 }
 0xc4f   : > { %4645 = vadd.xlane.f32.xlu0 %v4643_v15  ;;  %14141 = vmatprep.subr.bf16.mxu0 %v14140_v8 }
 0xc52   : > { %4621 = vadd.xlane.f32.xlu1 %v4618_v16  ;;  %14143 = vmatpush3.bf16.msra.mxu0 %v14140_v8 }
 0xc53   : > { %4619 = vadd.xlane.f32.xlu0 %v4617_v18 }
 0xcdb   : > { %v4648_v36 = vpop.xlane.xlu1 %4647 }
 0xcdc   : > { %v4650_v45 = vmul.f32 0.025, %v4648_v36  ;;  %v4646_v59 = vpop.xlane.xlu0 %4645  ;;  %v4673_v36 = vld [vmem:[%s15603_s29 + $0x20] sm:$0xff] }
 0xcdd   : > { %v4649_v32 = vmul.f32 0.025, %v4646_v59 }
 0xcde   : > { %v4652_v63 = vsub.f32 %v4644_v13, %v4650_v45  ;;  %v14144_v13 = vpack.c.bf16 %v4670_v10, %v4669_v7  ;;  %v4674_v45 = vld [vmem:[%s15603_s29 + $0x28] sm:$0xff] }
 0xcdf   : > { %v4651_v34 = vsub.f32 %v4643_v15, %v4649_v32  ;;  %v4622_v57 = vpop.xlane.xlu1 %4621 }
 0xce0   : > { %v4624_v37 = vmul.f32 0.025, %v4622_v57  ;;  %v4620_v38 = vpop.xlane.xlu0 %4619  ;;  %v4654_v41 = vmul.f32 %v16109_v33, %v4652_v63  ;;  %14145 = vmatprep.subr.bf16.mxu0 %v14144_v13  ;;  %v14152_v63 = vpack.c.bf16 %v4674_v45, %v4673_v36  ;;  %v4676_v57 = vld [vmem:[%s15603_s29 + $0x38] sm:$0xff]  ;;  %v4992_v45 = vld [vmem:[#allocation9 + $0xa0] sm:$0xff] }
 0xce1   : > { %v4623_v39 = vmul.f32 0.025, %v4620_v38  ;;  %v4653_v42 = vmul.f32 %v16109_v33, %v4651_v34  ;;  %v4675_v34 = vld [vmem:[%s15603_s29 + $0x30] sm:$0xff] }
 0xce2   : > { %v4626_v43 = vsub.f32 %v4618_v16, %v4624_v37  ;;  %v4656_v44 = vmul.f32 %v4654_v41, %v4654_v41  ;;  %v14156_v38 = vpack.c.bf16 %v4676_v57, %v4675_v34  ;;  %v5001_v34 = vld [vmem:[#allocation9 + $0xe8] sm:$0xff] }
 0xce3   : > { %v4625_v46 = vsub.f32 %v4617_v18, %v4623_v39  ;;  %v4655_v20 = vmul.f32 %v4653_v42, %v4653_v42  ;;  %v4678_v39 = vld [vmem:[%s15603_s29 + $0x48] sm:$0xff] }
 0xce4   : > { %4659 = vadd.xlane.f32.xlu1 %v4656_v44  ;;  %v16114_v48 = vmul.f32 %v16109_v33, %v4626_v43  ;;  %v4679_v44 = vld [vmem:[%s15603_s29 + $0x50] sm:$0xff] }
 0xce5   : > { %4657 = vadd.xlane.f32.xlu0 %v4655_v20  ;;  %v4627_v49 = vmul.f32 %v16109_v33, %v4625_v46  ;;  %v4680_v46 = vld [vmem:[%s15603_s29 + $0x58] sm:$0xff] }
 0xce6   : > { %v4630_v50 = vmul.f32 %v16114_v48, %v16114_v48 }
 0xce7   : > { %v4629_v51 = vmul.f32 %v4627_v49, %v4627_v49 }
 0xce8   : > { %4633 = vadd.xlane.f32.xlu1 %v4630_v50  ;;  %v4681_v50 = vld [vmem:[%s15603_s29 + $0x60] sm:$0xff] }
 0xce9   : > { %4631 = vadd.xlane.f32.xlu0 %v4629_v51  ;;  %v4682_v51 = vld [vmem:[%s15603_s29 + $0x68] sm:$0xff] }
 0xcea   : > { %v14168_v53 = vpack.c.bf16 %v4682_v51, %v4681_v50 }
 0xd71   : > { %v4660_v5 = vpop.xlane.xlu1 %4659 }
 0xd72   : > { %v4662_v15 = vmul.f32 0.025, %v4660_v5  ;;  %v4658_v16 = vpop.xlane.xlu0 %4657 }
 0xd73   : > { %v4661_v18 = vmul.f32 0.025, %v4658_v16 }
 0xd74   : > { %v4664_v9 = vadd.f32 1e-05, %v4662_v15 }
 0xd75   : > { %v4663_v22 = vadd.f32 1e-05, %v4661_v18  ;;  %v4634_v37 = vpop.xlane.xlu1 %4633 }
 0xd76   : > { %14629 = vrsqrt.f32 %v4664_v9  ;;  %v4632_v23 = vpop.xlane.xlu0 %4631 }
 0xd77   : > { %14631 = vrsqrt.f32 %v4663_v22  ;;  %v4635_v24 = vmul.f32 0.025, %v4632_v23 }
 0xd79   : > { %v4637_v25 = vadd.f32 1e-05, %v4635_v24 }
 0xd7b   : > { %14633 = vrsqrt.f32 %v4637_v25 }
 0xd80   : > { %v14630_v27 = vpop.eup %14629 }
 0xd81   : > { %v14632_v30 = vpop.eup %14631  ;;  %v4668_v35 = vmul.f32 %v14630_v27, %v4654_v41  ;;  %v4677_v41 = vld [vmem:[%s15603_s29 + $0x40] sm:$0xff]  ;;  %v4977_v27 = vld [vmem:[#allocation9 + $0x28] sm:$0xff] }
 0xd82   : > { %v4667_v40 = vmul.f32 %v14632_v30, %v4653_v42  ;;  %v4636_v42 = vmul.f32 0.025, %v4634_v37  ;;  %v14160_v43 = vpack.c.bf16 %v4678_v39, %v4677_v41  ;;  %v4983_v30 = vld [vmem:[#allocation9 + $0x58] sm:$0xff]  ;;  %v5004_v37 = vld [vmem:[#allocation9 + $0x100] sm:$0xff]  ;;  %v5010_v39 = vld [vmem:[#allocation9 + $0x130] sm:$0xff] }
 0xd84   : > { %13424 = vmatprep.mubr.f32.mxu0 %v4667_v40  ;;  %v4638_v20 = vadd.f32 1e-05, %v4636_v42  ;;  %v14216_v40 = vpack.c.bf16 %v4983_v30, %v4980_v31  ;;  %v5013_v42 = vld [vmem:[#allocation9 + $0x148] sm:$0xff]  ;;  %v5000_v30 = vld [vmem:[#allocation9 + $0xe0] sm:$0xff] }
 0xd85   : > { %v14634_v59 = vpop.eup %14633  ;;  %13425 = vmatmul.mubr.f32.vlgmr.msra.gmra.mrb[28].mxu0 %v4668_v35  ;;  %v4986_v35 = vld [vmem:[#allocation9 + $0x70] sm:$0xff]  ;;  %v4997_v31 = vld [vmem:[#allocation9 + $0xc8] sm:$0xff] }
 0xd86   : > { %14147 = vmatpush3.bf16.msra.mxu0 %v14144_v13  ;;  %v4641_v32 = vmul.f32 %v14634_v59, %v4627_v49  ;;  %v14164_v49 = vpack.c.bf16 %v4680_v46, %v4679_v44  ;;  %14635 = vrsqrt.f32 %v4638_v20  ;;  %v4995_v59 = vld [vmem:[#allocation9 + $0xb8] sm:$0xff] }
 0xd87   : > { %14149 = vmatprep.subr.bf16.mxu0 %v14148_v2 }
 0xd88   : > { %13459 = vmatprep.mubr.f32.mxu0 %v4641_v32  ;;  %v14224_v32 = vpack.c.bf16 %v4995_v59, %v4992_v45  ;;  %v5003_v45 = vld [vmem:[#allocation9 + $0xf8] sm:$0xff]  ;;  %v5006_v59 = vld [vmem:[#allocation9 + $0x110] sm:$0xff] }
 0xd8a   : > { %14151 = vmatpush3.bf16.msra.mxu0 %v14148_v2  ;;  %v4989_v2 = vld [vmem:[#allocation9 + $0x88] sm:$0xff] }
 0xd8b   : > { %14153 = vmatprep.subr.bf16.mxu0 %v14152_v63  ;;  %v14220_v36 = vpack.c.bf16 %v4989_v2, %v4986_v35  ;;  %v14196_v35 = vpack.c.bf16 %v5000_v30, %v4997_v31  ;;  %v4996_v2 = vld [vmem:[#allocation9 + $0xc0] sm:$0xff] }
 0xd8e   : > { %14155 = vmatpush3.bf16.msra.mxu0 %v14152_v63  ;;  %v4998_v63 = vld [vmem:[#allocation9 + $0xd0] sm:$0xff] }
 0xd8f   : > { %14157 = vmatprep.subr.bf16.mxu0 %v14156_v38  ;;  %v14228_v57 = vpack.c.bf16 %v5001_v34, %v4998_v63  ;;  %v14200_v63 = vpack.c.bf16 %v5006_v59, %v5003_v45  ;;  %v5002_v34 = vld [vmem:[#allocation9 + $0xf0] sm:$0xff] }
 0xd90   : > { %v14636_v58 = vpop.eup %14635 }
 0xd91   : > { %v4642_v60 = vmul.f32 %v14636_v58, %v16114_v48  ;;  %v4976_v58 = vld [vmem:[#allocation9 + $0x20] sm:$0xff] }
 0xd92   : > { %14159 = vmatpush3.bf16.msra.mxu0 %v14156_v38  ;;  %v5007_v38 = vld [vmem:[#allocation9 + $0x118] sm:$0xff] }
 0xd93   : > { %14161 = vmatprep.subr.bf16.mxu0 %v14160_v43  ;;  %v14232_v41 = vpack.c.bf16 %v5007_v38, %v5004_v37  ;;  %v5009_v37 = vld [vmem:[#allocation9 + $0x128] sm:$0xff]  ;;  %v5012_v38 = vld [vmem:[#allocation9 + $0x140] sm:$0xff] }
 0xd96   : > { %14163 = vmatpush3.bf16.msra.mxu0 %v14160_v43  ;;  %v14236_v43 = vpack.c.bf16 %v5013_v42, %v5010_v39  ;;  %v14204_v39 = vpack.c.bf16 %v5012_v38, %v5009_v37  ;;  %v5008_v42 = vld [vmem:[#allocation9 + $0x120] sm:$0xff] }
 0xd97   : > { %14165 = vmatprep.subr.bf16.mxu0 %v14164_v49 }
 0xd9a   : > { %14167 = vmatpush3.bf16.msra.mxu0 %v14164_v49 }
 0xd9b   : > { %14169 = vmatprep.subr.bf16.mxu0 %v14168_v53 }
 0xd9e   : > { %14171 = vmatpush3.bf16.msra.mxu0 %v14168_v53 }
 0xd9f   : > { %14173 = vmatprep.subr.bf16.mxu0 %v14172_v56 }
 0xda2   : > { %14175 = vmatpush3.bf16.msra.mxu0 %v14172_v56  ;;  %v4973_v56 = vld [vmem:[#allocation9 + $0x8] sm:$0xff] }
 0xda5   : > { %13460 = vmatmul.mubr.f32.vlgmr.msra.gmra.mrb[28].mxu0 %v4642_v60 }
 0xe78   : > { %v13461_v1 = vpop.f32.mrb[28].mxu0 }
 0xe79   : > { %v4859_v4 = vadd.f32 %v13461_v1, %v12612_v61  ;;  %v4842_v3 = vpop.f32.mrb[29].mxu0  ;;  %v14180_v1 = vpack.c.bf16 %v4976_v58, %v4973_v56 }
 0xe7a   : > { %v4858_v6 = vadd.f32 %v12612_v61, %v4842_v3  ;;  %v4975_v3 = vld [vmem:[#allocation9 + $0x18] sm:$0xff] }
 0xe7b   : > { %v4861_v8 = vmax.f32 %v4859_v4, 0.0  ;;  %v4972_v4 = vld [vmem:[#allocation9] sm:$0xff] }
 0xe7c   : > { %v4860_v7 = vmax.f32 %v4858_v6, 0.0  ;;  %v4979_v6 = vld [vmem:[#allocation9 + $0x38] sm:$0xff] }
 0xe7d   : > { %v4863_v10 = vadd.f32 %v16089_v12, %v4861_v8  ;;  %v4888_v12 = vld [vmem:[%s17190_s24] sm:$0xff]  ;;  %v4982_v8 = vld [vmem:[#allocation9 + $0x50] sm:$0xff] }
 0xe7e   : > { %v4862_v13 = vadd.f32 %v16093_v14, %v4860_v7  ;;  %13466 = vmatprep.mubr.msk.f32.mxu1 %vm4890_vm15, %v4888_v12  ;;  %v4974_v14 = vld [vmem:[#allocation9 + $0x10] sm:$0xff]  ;;  %v4889_v7 = vld [vmem:[%s17190_s24 + $0x8] sm:$0xff] }
 0xe7f   : > { %4866 = vadd.xlane.f32.xlu1 %v4863_v10  ;;  %v14212_v29 = vpack.c.bf16 %v4977_v27, %v4974_v14  ;;  %v4990_v27 = vld [vmem:[#allocation9 + $0x90] sm:$0xff] }
 0xe80   : > { %4864 = vadd.xlane.f32.xlu0 %v4862_v13 }
 0xe81   : > { %14213 = vmatprep.subr.bf16.mxu0 %v14212_v29 }
 0xe82   : > { %14215 = vmatpush3.bf16.msra.mxu0 %v14212_v29  ;;  %v4993_v29 = vld [vmem:[#allocation9 + $0xa8] sm:$0xff] }
 0xe83   : > { %14217 = vmatprep.subr.bf16.mxu0 %v14216_v40 }
 0xe86   : > { %14219 = vmatpush3.bf16.msra.mxu0 %v14216_v40  ;;  %v14194_v40 = vpack.c.bf16 %v4993_v29, %v4990_v27 }
 0xe87   : > { %14221 = vmatprep.subr.bf16.mxu0 %v14220_v36 }
 0xe8a   : > { %14223 = vmatpush3.bf16.msra.mxu0 %v14220_v36  ;;  %v4999_v36 = vld [vmem:[#allocation9 + $0xd8] sm:$0xff] }
 0xe8b   : > { %14225 = vmatprep.subr.bf16.mxu0 %v14224_v32 }
 0xe8e   : > { %14227 = vmatpush3.bf16.msra.mxu0 %v14224_v32  ;;  %v14198_v32 = vpack.c.bf16 %v4999_v36, %v4996_v2 }
 0xe8f   : > { %14229 = vmatprep.subr.bf16.mxu0 %v14228_v57 }
 0xe92   : > { %14231 = vmatpush3.bf16.msra.mxu0 %v14228_v57  ;;  %v5005_v57 = vld [vmem:[#allocation9 + $0x108] sm:$0xff] }
 0xe93   : > { %14233 = vmatprep.subr.bf16.mxu0 %v14232_v41 }
 0xe96   : > { %14235 = vmatpush3.bf16.msra.mxu0 %v14232_v41  ;;  %v14202_v41 = vpack.c.bf16 %v5005_v57, %v5002_v34 }
 0xe97   : > { %14237 = vmatprep.subr.bf16.mxu0 %v14236_v43 }
 0xe9a   : > { %14239 = vmatpush3.bf16.msra.mxu0 %v14236_v43  ;;  %v5011_v43 = vld [vmem:[#allocation9 + $0x138] sm:$0xff] }
 0xf0c   : > { %v4867_v5 = vpop.xlane.xlu1 %4866 }
 0xf0d   : > { %v4869_v48 = vmul.f32 0.025, %v4867_v5  ;;  %v4865_v15 = vpop.xlane.xlu0 %4864  ;;  %v4978_v5 = vld [vmem:[#allocation9 + $0x30] sm:$0xff] }
 0xf0e   : > { %v4868_v16 = vmul.f32 0.025, %v4865_v15  ;;  %v4985_v15 = vld [vmem:[#allocation9 + $0x68] sm:$0xff] }
 0xf0f   : > { %v4871_v18 = vsub.f32 %v4863_v10, %v4869_v48  ;;  %v14182_v10 = vpack.c.bf16 %v4975_v3, %v4972_v4  ;;  %v4981_v48 = vld [vmem:[#allocation9 + $0x48] sm:$0xff]  ;;  %v5020_v4 = vld [vmem:[%s17177_s11] sm:$0x7] }
 0xf10   : > { %v4870_v9 = vsub.f32 %v4862_v13, %v4868_v16  ;;  %v14184_v13 = vpack.c.bf16 %v4982_v8, %v4979_v6  ;;  %v4988_v16 = vld [vmem:[#allocation9 + $0x80] sm:$0xff]  ;;  %v5029_v6 = vrot.slane %v5020_v4, %v1155_v21  ;;  %v5033_v8 = vrot.slane %v5020_v4, %v1159_v52 }
 0xf11   : > { %v4873_v22 = vmul.f32 %v16109_v33, %v4871_v18  ;;  %v14186_v18 = vpack.c.bf16 %v4981_v48, %v4978_v5 }
 0xf12   : > { %v4872_v23 = vmul.f32 %v16109_v33, %v4870_v9  ;;  %v14188_v9 = vpack.c.bf16 %v4988_v16, %v4985_v15 }
 0xf13   : > { %v4875_v24 = vmul.f32 %v4873_v22, %v4873_v22 }
 0xf14   : > { %v4874_v25 = vmul.f32 %v4872_v23, %v4872_v23 }
 0xf15   : > { %4878 = vadd.xlane.f32.xlu1 %v4875_v24  ;;  %v4991_v24 = vld [vmem:[#allocation9 + $0x98] sm:$0xff] }
 0xf16   : > { %4876 = vadd.xlane.f32.xlu0 %v4874_v25  ;;  %v4994_v25 = vld [vmem:[#allocation9 + $0xb0] sm:$0xff] }
 0xf17   : > { %v14192_v14 = vpack.c.bf16 %v4994_v25, %v4991_v24 }
 0xfa2   : > { %v4879_v44 = vpop.xlane.xlu1 %4878 }
 0xfa3   : > { %v4881_v46 = vmul.f32 0.025, %v4879_v44  ;;  %v4877_v20 = vpop.xlane.xlu0 %4876  ;;  %v5015_v44 = vld [vmem:[#allocation9 + $0x158] sm:$0xff] }
 0xfa4   : > { %v4880_v49 = vmul.f32 0.025, %v4877_v20  ;;  %v14206_v20 = vpack.c.bf16 %v5011_v43, %v5008_v42 }
 0xfa5   : > { %v4883_v50 = vadd.f32 1e-05, %v4881_v46  ;;  %v5018_v46 = vld [vmem:[#allocation9 + $0x170] sm:$0xff] }
 0xfa6   : > { %v4882_v51 = vadd.f32 1e-05, %v4880_v49  ;;  %v14208_v49 = vpack.c.bf16 %v5018_v46, %v5015_v44 }
 0xfa7   : > { %14637 = vrsqrt.f32 %v4883_v50  ;;  %v5014_v50 = vld [vmem:[#allocation9 + $0x150] sm:$0xff] }
 0xfa8   : > { %14639 = vrsqrt.f32 %v4882_v51  ;;  %v5017_v51 = vld [vmem:[#allocation9 + $0x168] sm:$0xff] }
 0xfb1   : > { %v14638_v53 = vpop.eup %14637 }
 0xfb2   : > { %v14640_v54 = vpop.eup %14639  ;;  %v4887_v55 = vmul.f32 %v14638_v53, %v4873_v22  ;;  %v4984_v22 = vld [vmem:[#allocation9 + $0x60] sm:$0xff]  ;;  %v14210_v53 = vpack.c.bf16 %v5017_v51, %v5014_v50 }
 0xfb3   : > { %v4886_v60 = vmul.f32 %v14640_v54, %v4872_v23  ;;  %v4987_v23 = vld [vmem:[#allocation9 + $0x78] sm:$0xff]  ;;  %v5016_v54 = vld [vmem:[#allocation9 + $0x160] sm:$0xff] }
 0xfb4   : > { %v14190_v12 = vpack.c.bf16 %v4987_v23, %v4984_v22 }
 0xfb5   : > { %v14176_v61 = vpack.c.bf16 %v4887_v55, %v4886_v60  ;;  %v5019_v55 = vld [vmem:[#allocation9 + $0x178] sm:$0xff] }
 0xfb6   : > { %v14240_v56 = vpack.c.bf16 %v5019_v55, %v5016_v54 }
 0xfb7   : > { %14177 = vmatprep.subr.bf16.mxu1 %v14176_v61 }
 0xfb8   : > { %14179 = vmatpush3.bf16.msra.mxu1 %v14176_v61  ;;  %14241 = vmatprep.subr.bf16.mxu0 %v14240_v56  ;;  %v15125_v61 = vmov 1983009808  }
 0xfb9   : > { %14181 = vmatprep.subr.bf16.mxu1 %v14180_v1  ;;  %14243 = vmatpush3.bf16.msra.mxu0 %v14240_v56  ;;  %v5209_v1 = vunpack.c.l.s4 %v15125_v61 }
 0xfba   : > { %13534 = vmatprep.subr.mxu0 %v15123_v0 }
 0xfbb   : > { %13467 = vmatmul.mubr.msk.f32.vlgmr.msra.gmra.mrb[42].mxu1 %vm4890_vm15, %v4889_v7  ;;  %v5210_v3 = vunpack.c.0.s8 %v5209_v1 }
 0xfbc   : > { %14183 = vmatpush1.bf16.msra.mxu1 %v14182_v10  ;;  %5101 = vmatprep.mubr.f32.mxu1 %v15123_v0 }
 0xfbd   : > { %14185 = vmatprep.subr.bf16.mxu1 %v14184_v13  ;;  %v16184_v7 = vsub.s32 %v5210_v3, %v15711_v17 }
 0xfc0   : > { %14187 = vmatpush1.bf16.msra.mxu1 %v14186_v18  ;;  %v5025_v18 = vrot.slane %v5020_v4, %v1151_v26 }
 0xfc1   : > { %14189 = vmatprep.subr.bf16.mxu1 %v14188_v9 }
 0xfc4   : > { %14191 = vmatpush1.bf16.msra.mxu1 %v14190_v12 }
 0xfc5   : > { %14193 = vmatprep.subr.bf16.mxu1 %v14192_v14 }
 0xfc8   : > { %14195 = vmatpush1.bf16.msra.mxu1 %v14194_v40 }
 0xfc9   : > { %14197 = vmatprep.subr.bf16.mxu1 %v14196_v35 }
 0xfcc   : > { %14199 = vmatpush1.bf16.msra.mxu1 %v14198_v32 }
 0xfcd   : > { %14201 = vmatprep.subr.bf16.mxu1 %v14200_v63 }
 0xfd0   : > { %14203 = vmatpush1.bf16.msra.mxu1 %v14202_v41 }
 0xfd1   : > { %14205 = vmatprep.subr.bf16.mxu1 %v14204_v39 }
 0xfd4   : > { %14207 = vmatpush1.bf16.msra.mxu1 %v14206_v20 }
 0xfd5   : > { %14209 = vmatprep.subr.bf16.mxu1 %v14208_v49 }
 0xfd8   : > { %14211 = vmatpush1.bf16.msra.mxu1 %v14210_v53 }
 0xfd9   : > { %13504 = vmatprep.subr.mxu1 %v15123_v0 }
0x108e   : > { %v16163_v58 = vpop.f32.mrb[42].mxu1 }
0x108f   : > { %v16165_v60 = vpop.f32.mrb[43].mxu1 }
0x1090   : > { %5102 = vmatmul.mubr.f32.vlgmr.msra.gmra.mrb[44].mxu1 %v16165_v60  ;;  %13501 = vmatprep.mubr.f32.mxu0 %v16165_v60 }
0x1091   : > { %13502 = vmatmul.mubr.f32.vlgmr.msra.gmra.mrb[30].mxu0 %v16163_v58  ;;  %5107 = vmatprep.mubr.f32.mxu1 %v15123_v0 }
0x1092   : > { %13536 = vmatprep.mubr.msk.f32.mxu0 %vm15124_vm0, %v15123_v0 }
0x1094   : > { %5108 = vmatmul.mubr.f32.gmra.mrb[46].mxu1 %v16163_v58 }
0x1095   : > { %13506 = vmatprep.mubr.msk.f32.mxu1 %vm15124_vm0, %v15123_v0 }
0x1163   : > { %v5103_v10 = vpop.f32.mrb[44].mxu1 }
0x1164   : > { %v5105_v13 = vpop.f32.mrb[45].mxu1  ;;  %v13503_v5 = vpop.f32.mrb[30].mxu0  ;;  %v5104_v52 = vadd.f32 %v5103_v10, %v5025_v18 }
0x1165   : > { %v5106_v48 = vadd.f32 %v5105_v13, %v5029_v6  ;;  %v16186_v15 = vadd.f32 %v13503_v5, %v5033_v8  ;;  %v5180_v16 = vpop.f32.mrb[31].mxu0 }
0x1166   : > { %v16203_v26 = vrot.slane %v5104_v52, %v16184_v7  ;;  %v5207_v35 = vcombine.high %v5104_v52, %v5104_v52  ;;  %v16268_v42 = vadd.f32 %v5180_v16, %v5033_v8 }
0x1167   : > { %v16191_v9 = vrot.slane %v5106_v48, %v16184_v7  ;;  %v5109_v21 = vpop.f32.mrb[46].mxu1  ;;  %v5251_v24 = vcombine.high %v5106_v48, %v5106_v48 }
0x1168   : > { %v5111_v22 = vpop.f32.mrb[47].mxu1  ;;  %v5110_v25 = vadd.f32 %v5109_v21, %v5025_v18  ;;  %v16218_v2 = vcombine.high %v16203_v26, %v16203_v26  ;;  %v16236_v63 = vrot.slane %v5207_v35, %v16184_v7  ;;  %v16291_v49 = vrot.slane %v16268_v42, %v16184_v7 }
0x1169   : > { %v5112_v23 = vadd.f32 %v5111_v22, %v5029_v6  ;;  %v5337_v14 = vmul.f32 %v15727_v28, %v16191_v9  ;;  %v16197_v27 = vcombine.high %v16191_v9, %v16191_v9  ;;  %v16207_v29 = vrot.slane %v5251_v24, %v16184_v7 }
0x116a   : > { %v5224_v31 = vcombine.high %v5110_v25, %v5110_v25  ;;  %v6002_v32 = vmul.f32 %v15764_v47, %v16191_v9  ;;  %v16257_v38 = vcombine.high %v16236_v63, %v16236_v63  ;;  %v16276_v44 = vrot.slane %v5110_v25, %v16184_v7 }
0x116b   : > { %v5268_v12 = vcombine.high %v5112_v23, %v5112_v23  ;;  %13505 = vmatpush3.xpose.msra.mxu1 %v5337_v14  ;;  %v5338_v30 = vmul.f32 %v15727_v28, %v16197_v27  ;;  %v5339_v45 = vmul.f32 %v15727_v28, %v16207_v29  ;;  %v16229_v59 = vcombine.high %v16207_v29, %v16207_v29 }
0x116c   : > { %13509 = vmatprep.subr.mxu1 %v15123_v0  ;;  %v16222_v36 = vrot.slane %v5224_v31, %v16184_v7  ;;  %v16241_v34 = vrot.slane %v5112_v23, %v16184_v7  ;;  %v6004_v37 = vmul.f32 %v15764_v47, %v16207_v29  ;;  %v16302_v51 = vcombine.high %v16276_v44, %v16276_v44 }
0x116d   : > { %v16200_v17 = vrot.slane %v5268_v12, %v16184_v7  ;;  %v5340_v57 = vmul.f32 %v15727_v28, %v16229_v59  ;;  %v6658_v54 = vmul.f32 %v15764_v47, %v16291_v49  ;;  %v6003_v56 = vmul.f32 %v15764_v47, %v16197_v27 }
0x116e   : > { %13507 = vmatmul.mubr.f32.vlgmr.msra.gmra.mrb[48].mxu1 %v16203_v26  ;;  %v5341_v41 = vmul.f32 %v15727_v28, %v16241_v34  ;;  %v16266_v39 = vcombine.high %v16241_v34, %v16241_v34  ;;  %v6006_v43 = vmul.f32 %v15764_v47, %v16241_v34  ;;  %v16319_v55 = vcombine.high %v16222_v36, %v16222_v36 }
0x116f   : > { %v5343_v40 = vmul.f32 %v15727_v28, %v16200_v17  ;;  %13510 = vmatpush3.xpose.msra.mxu1 %v5338_v30  ;;  %13511 = vmatprep.mubr.msk.f32.mxu1 %vm15124_vm0, %v15123_v0  ;;  %v16287_v20 = vcombine.high %v16200_v17, %v16200_v17  ;;  %v6008_v50 = vmul.f32 %v15764_v47, %v16200_v17 }
0x1170   : > { %13514 = vmatprep.subr.mxu1 %v15123_v0  ;;  %v5342_v46 = vmul.f32 %v15727_v28, %v16266_v39  ;;  %v6005_v61 = vmul.f32 %v15764_v47, %v16229_v59  ;;  %v6007_v1 = vmul.f32 %v15764_v47, %v16266_v39  ;;  %v16345_v4 = vcombine.high %v16291_v49, %v16291_v49 }
0x1171   : > { %13535 = vmatpush3.xpose.msra.mxu0 %v5343_v40  ;;  %v5344_v53 = vmul.f32 %v15727_v28, %v16287_v20  ;;  %v6009_v3 = vmul.f32 %v15764_v47, %v16287_v20 }
0x1172   : > { %13544 = vmatprep.subr.mxu0 %v15123_v0  ;;  %13512 = vmatmul.mubr.f32.vlgmr.msra.gmra.mrb[50].mxu1 %v16218_v2  ;;  %v6659_v6 = vmul.f32 %v15764_v47, %v16345_v4 }
0x1173   : > { %13515 = vmatpush3.xpose.msra.mxu1 %v5339_v45  ;;  %13516 = vmatprep.mubr.msk.f32.mxu1 %vm15124_vm0, %v15123_v0 }
0x1174   : > { %13537 = vmatmul.mubr.f32.vlgmr.msra.gmra.mrb[32].mxu0 %v16222_v36  ;;  %13519 = vmatprep.subr.mxu1 %v15123_v0 }
0x1175   : > { %13545 = vmatpush3.xpose.msra.mxu0 %v6002_v32  ;;  %13546 = vmatprep.mubr.msk.f32.mxu0 %vm15124_vm0, %v15123_v0 }
0x1176   : > { %13517 = vmatmul.mubr.f32.vlgmr.msra.gmra.mrb[52].mxu1 %v16236_v63  ;;  %13554 = vmatprep.subr.mxu0 %v15123_v0 }
0x1177   : > { %13520 = vmatpush3.xpose.msra.mxu1 %v5340_v57  ;;  %13521 = vmatprep.mubr.msk.f32.mxu1 %vm15124_vm0, %v15123_v0 }
0x1178   : > { %13547 = vmatmul.mubr.f32.vlgmr.msra.gmra.mrb[34].mxu0 %v16203_v26  ;;  %13524 = vmatprep.subr.mxu1 %v15123_v0 }
0x1179   : > { %13555 = vmatpush3.xpose.msra.mxu0 %v6004_v37  ;;  %13556 = vmatprep.mubr.msk.f32.mxu0 %vm15124_vm0, %v15123_v0 }
0x117a   : > { %13522 = vmatmul.mubr.f32.vlgmr.msra.gmra.mrb[54].mxu1 %v16257_v38  ;;  %13564 = vmatprep.subr.mxu0 %v15123_v0 }
0x117b   : > { %13525 = vmatpush3.xpose.msra.mxu1 %v5341_v41  ;;  %13526 = vmatprep.mubr.msk.f32.mxu1 %vm15124_vm0, %v15123_v0 }
0x117c   : > { %13557 = vmatmul.mubr.f32.vlgmr.msra.gmra.mrb[36].mxu0 %v16236_v63  ;;  %13529 = vmatprep.subr.mxu1 %v15123_v0 }
0x117d   : > { %13565 = vmatpush3.xpose.msra.mxu0 %v6006_v43  ;;  %13566 = vmatprep.mubr.msk.f32.mxu0 %vm15124_vm0, %v15123_v0 }
0x117e   : > { %13527 = vmatmul.mubr.f32.vlgmr.msra.gmra.mrb[56].mxu1 %v16276_v44  ;;  %13574 = vmatprep.subr.mxu0 %v15123_v0 }
0x117f   : > { %13530 = vmatpush3.xpose.msra.mxu1 %v5342_v46  ;;  %13531 = vmatprep.mubr.msk.f32.mxu1 %vm15124_vm0, %v15123_v0 }
0x1180   : > { %13567 = vmatmul.mubr.f32.vlgmr.msra.gmra.mrb[38].mxu0 %v16276_v44  ;;  %13539 = vmatprep.subr.mxu1 %v15123_v0 }
0x1181   : > { %13575 = vmatpush3.xpose.msra.mxu0 %v6008_v50  ;;  %13576 = vmatprep.mubr.msk.f32.mxu0 %vm15124_vm0, %v15123_v0 }
0x1182   : > { %13532 = vmatmul.mubr.f32.vlgmr.msra.gmra.mrb[58].mxu1 %v16302_v51  ;;  %13584 = vmatprep.subr.mxu0 %v15123_v0 }
0x1183   : > { %13540 = vmatpush3.xpose.msra.mxu1 %v5344_v53  ;;  %13541 = vmatprep.mubr.msk.f32.mxu1 %vm15124_vm0, %v15123_v0 }
0x1184   : > { %13577 = vmatmul.mubr.f32.vlgmr.msra.gmra.mrb[40].mxu0 %v16222_v36  ;;  %13549 = vmatprep.subr.mxu1 %v15123_v0 }
0x1185   : > { %13585 = vmatpush3.msk.msra.mxu0 %vm6670_vm1, %v6658_v54  ;;  %13586 = vmatprep.mubr.msk.f32.mxu0 %vm15124_vm0, %v15123_v0 }
0x1186   : > { %13542 = vmatmul.mubr.f32.vlgmr.msra.gmra.mrb[60].mxu1 %v16319_v55  ;;  %13594 = vmatprep.subr.mxu0 %v15123_v0 }
0x1187   : > { %13550 = vmatpush3.xpose.msra.mxu1 %v6003_v56  ;;  %13551 = vmatprep.mubr.msk.f32.mxu1 %vm15124_vm0, %v15123_v0 }
0x1188   : > { %13559 = vmatprep.subr.mxu1 %v15123_v0 }
0x118a   : > { %13552 = vmatmul.mubr.f32.vlgmr.msra.gmra.mrb[62].mxu1 %v16218_v2 }
0x118b   : > { %13560 = vmatpush3.xpose.msra.mxu1 %v6005_v61  ;;  %13561 = vmatprep.mubr.msk.f32.mxu1 %vm15124_vm0, %v15123_v0 }
0x118c   : > { %13569 = vmatprep.subr.mxu1 %v15123_v0 }
0x118e   : > { %13562 = vmatmul.mubr.f32.vlgmr.msra.gmra.mrb[64].mxu1 %v16257_v38 }
0x118f   : > { %13570 = vmatpush3.xpose.msra.mxu1 %v6007_v1  ;;  %13571 = vmatprep.mubr.msk.f32.mxu1 %vm15124_vm0, %v15123_v0 }
0x1190   : > { %13579 = vmatprep.subr.mxu1 %v15123_v0 }
0x1192   : > { %13572 = vmatmul.mubr.f32.vlgmr.msra.gmra.mrb[66].mxu1 %v16302_v51 }
0x1193   : > { %13580 = vmatpush3.xpose.msra.mxu1 %v6009_v3  ;;  %13581 = vmatprep.mubr.msk.f32.mxu1 %vm15124_vm0, %v15123_v0 }
0x1194   : > { %13589 = vmatprep.subr.mxu1 %v15123_v0 }
0x1196   : > { %13582 = vmatmul.mubr.f32.vlgmr.msra.gmra.mrb[68].mxu1 %v16319_v55 }
0x1197   : > { %13590 = vmatpush3.msk.msra.mxu1 %vm6670_vm1, %v6659_v6  ;;  %13591 = vmatprep.mubr.msk.f32.mxu1 %vm15124_vm0, %v15123_v0 }
0x1198   : > { %13599 = vmatprep.subr.mxu1 %v15123_v0 }
0x1241   : > { %v16360_v8 = vpop.f32.mrb[48].mxu1 }
0x1242   : > { %v13508_v10 = vpop.f32.mrb[49].mxu1  ;;  %v5906_v54 = vsel %vm5905_vm2, %v16360_v8, -inf }
0x1245   : > { %v16362_v13 = vpop.f32.mrb[50].mxu1 }
0x1246   : > { %v13513_v5 = vpop.f32.mrb[51].mxu1 }
0x1247   : > { %v16364_v48 = vpop.f32.mrb[32].mxu0 }
0x1248   : > { %v13538_v16 = vpop.f32.mrb[33].mxu0 }
0x1249   : > { %v16366_v18 = vpop.f32.mrb[52].mxu1 }
0x124a   : > { %v13518_v21 = vpop.f32.mrb[53].mxu1  ;;  %v5912_v3 = vsel %vm5905_vm2, %v16366_v18, -inf }
0x124b   : > { %v6076_v22 = vpop.f32.mrb[34].mxu0 }
0x124c   : > { %v13548_v23 = vpop.f32.mrb[35].mxu0  ;;  %v6570_v52 = vsel %vm5905_vm2, %v6076_v22, -inf }
0x124d   : > { %6571 = vmax.xlane.f32.xlu0 %v6570_v52  ;;  %v16369_v24 = vpop.f32.mrb[54].mxu1 }
0x124e   : > { %v13523_v25 = vpop.f32.mrb[55].mxu1 }
0x124f   : > { %v6216_v12 = vpop.f32.mrb[36].mxu0  ;;  %v5924_v25 = vsel %vm5905_vm2, %v16364_v48, -inf }
0x1250   : > { %v13558_v14 = vpop.f32.mrb[37].mxu0  ;;  %v6576_v31 = vsel %vm5905_vm2, %v6216_v12, -inf }
0x1251   : > { %6577 = vmax.xlane.f32.xlu0 %v6576_v31  ;;  %v16372_v30 = vpop.f32.mrb[56].mxu1 }
0x1252   : > { %v13528_v40 = vpop.f32.mrb[57].mxu1  ;;  %v5918_v16 = vsel %vm5905_vm2, %v16372_v30, -inf }
0x1253   : > { %v6356_v35 = vpop.f32.mrb[38].mxu0 }
0x1254   : > { %v13568_v45 = vpop.f32.mrb[39].mxu0  ;;  %v6582_v32 = vsel %vm5905_vm2, %v6356_v35, -inf }
0x1255   : > { %6583 = vmax.xlane.f32.xlu0 %v6582_v32  ;;  %v16375_v57 = vpop.f32.mrb[58].mxu1  ;;  %v5909_v45 = vsel %vm5905_vm2, %v16362_v13, -inf  ;;  %v5915_v32 = vsel %vm5905_vm2, %v16369_v24, -inf }
0x1256   : > { %v13533_v37 = vpop.f32.mrb[59].mxu1 }
0x1257   : > { %v6496_v41 = vpop.f32.mrb[40].mxu0  ;;  %v5921_v37 = vsel %vm5905_vm2, %v16375_v57, -inf }
0x1258   : > { %v13578_v43 = vpop.f32.mrb[41].mxu0  ;;  %v6588_v46 = vsel %vm5905_vm2, %v6496_v41, -inf }
0x1259   : > { %6589 = vmax.xlane.f32.xlu0 %v6588_v46  ;;  %v16378_v50 = vpop.f32.mrb[60].mxu1 }
0x125a   : > { %v13543_v53 = vpop.f32.mrb[61].mxu1  ;;  %v5927_v43 = vsel %vm5905_vm2, %v16378_v50, -inf }
0x125d   : > { %5907 = vmax.xlane.f32.xlu0 %v5906_v54  ;;  %v6146_v56 = vpop.f32.mrb[62].mxu1 }
0x125e   : > { %v13553_v61 = vpop.f32.mrb[63].mxu1  ;;  %v6573_v1 = vsel %vm5905_vm2, %v6146_v56, -inf }
0x125f   : > { %6574 = vmax.xlane.f32.xlu1 %v6573_v1 }
0x1261   : > { %5913 = vmax.xlane.f32.xlu0 %v5912_v3  ;;  %v16385_v6 = vpop.f32.mrb[64].mxu1 }
0x1262   : > { %v13563_v10 = vpop.f32.mrb[65].mxu1  ;;  %v6579_v5 = vsel %vm5905_vm2, %v16385_v6, -inf }
0x1263   : > { %6580 = vmax.xlane.f32.xlu1 %v6579_v5 }
0x1265   : > { %5919 = vmax.xlane.f32.xlu0 %v5918_v16  ;;  %v16391_v21 = vpop.f32.mrb[66].mxu1 }
0x1266   : > { %v13573_v23 = vpop.f32.mrb[67].mxu1  ;;  %v6585_v52 = vsel %vm5905_vm2, %v16391_v21, -inf }
0x1267   : > { %6586 = vmax.xlane.f32.xlu1 %v6585_v52 }
0x1269   : > { %5925 = vmax.xlane.f32.xlu0 %v5924_v25  ;;  %v16397_v14 = vpop.f32.mrb[68].mxu1 }
0x126a   : > { %v13583_v31 = vpop.f32.mrb[69].mxu1  ;;  %v6591_v40 = vsel %vm5905_vm2, %v16397_v14, -inf }
0x126b   : > { %6592 = vmax.xlane.f32.xlu1 %v6591_v40 }
0x126f   : > { %5910 = vmax.xlane.f32.xlu1 %v5909_v45 }
0x1273   : > { %5916 = vmax.xlane.f32.xlu1 %v5915_v32 }
0x1277   : > { %5922 = vmax.xlane.f32.xlu1 %v5921_v37 }
0x127b   : > { %5928 = vmax.xlane.f32.xlu1 %v5927_v43 }
0x12da   : > { %v6572_v46 = vpop.xlane.xlu0 %6571 }
0x12db   : > { %v6594_v53 = vsub.f32 %v6076_v22, %v6572_v46 }
0x12dd   : > { %v6602_v54 = vmul.f32 1.442695, %v6594_v53 }
0x12de   : > { %v6578_v61 = vpop.xlane.xlu0 %6577 }
0x12df   : > { %14641 = vpow2.f32 %v6602_v54  ;;  %v6596_v1 = vsub.f32 %v6216_v12, %v6578_v61 }
0x12e1   : > { %v6606_v3 = vmul.f32 1.442695, %v6596_v1 }
0x12e2   : > { %v6584_v10 = vpop.xlane.xlu0 %6583 }
0x12e3   : > { %14643 = vpow2.f32 %v6606_v3  ;;  %v6598_v5 = vsub.f32 %v6356_v35, %v6584_v10 }
0x12e5   : > { %v6610_v16 = vmul.f32 1.442695, %v6598_v5 }
0x12e6   : > { %v6590_v23 = vpop.xlane.xlu0 %6589 }
0x12e7   : > { %14645 = vpow2.f32 %v6610_v16  ;;  %v6600_v52 = vsub.f32 %v6496_v41, %v6590_v23 }
0x12e9   : > { %v16409_v25 = vpop.eup %14641  ;;  %v6614_v31 = vmul.f32 1.442695, %v6600_v52 }
0x12ea   : > { %v5908_v40 = vpop.xlane.xlu0 %5907  ;;  %v6618_v45 = vsel %vm5905_vm2, %v16409_v25, 0.0 }
0x12eb   : > { %14647 = vpow2.f32 %v6614_v31  ;;  %v5930_v22 = vsub.f32 %v16360_v8, %v5908_v40  ;;  %6619 = vadd.xlane.f32.xlu0 %v6618_v45 }
0x12ec   : > { %v6575_v37 = vpop.xlane.xlu1 %6574 }
0x12ed   : > { %v16414_v12 = vpop.eup %14643  ;;  %v5938_v32 = vmul.f32 1.442695, %v5930_v22  ;;  %v6595_v35 = vsub.f32 %v6146_v56, %v6575_v37 }
0x12ee   : > { %v5914_v43 = vpop.xlane.xlu0 %5913  ;;  %v6624_v41 = vsel %vm5905_vm2, %v16414_v12, 0.0 }
0x12ef   : > { %14649 = vpow2.f32 %v5938_v32  ;;  %v5932_v46 = vsub.f32 %v16366_v18, %v5914_v43  ;;  %6625 = vadd.xlane.f32.xlu0 %v6624_v41  ;;  %v6604_v53 = vmul.f32 1.442695, %v6595_v35 }
0x12f0   : > { %v6581_v1 = vpop.xlane.xlu1 %6580 }
0x12f1   : > { %v16419_v54 = vpop.eup %14645  ;;  %v5942_v61 = vmul.f32 1.442695, %v5932_v46  ;;  %14651 = vpow2.f32 %v6604_v53  ;;  %v6597_v8 = vsub.f32 %v16385_v6, %v6581_v1 }
0x12f2   : > { %v5920_v3 = vpop.xlane.xlu0 %5919  ;;  %v6630_v56 = vsel %vm5905_vm2, %v16419_v54, 0.0 }
0x12f3   : > { %14653 = vpow2.f32 %v5942_v61  ;;  %v5934_v10 = vsub.f32 %v16372_v30, %v5920_v3  ;;  %6631 = vadd.xlane.f32.xlu0 %v6630_v56  ;;  %v6608_v5 = vmul.f32 1.442695, %v6597_v8 }
0x12f4   : > { %v6587_v23 = vpop.xlane.xlu1 %6586 }
0x12f5   : > { %v16425_v16 = vpop.eup %14647  ;;  %v5946_v18 = vmul.f32 1.442695, %v5934_v10  ;;  %14655 = vpow2.f32 %v6608_v5  ;;  %v6599_v52 = vsub.f32 %v16391_v21, %v6587_v23 }
0x12f6   : > { %v5926_v31 = vpop.xlane.xlu0 %5925  ;;  %v6636_v6 = vsel %vm5905_vm2, %v16425_v16, 0.0 }
0x12f7   : > { %14657 = vpow2.f32 %v5946_v18  ;;  %v5936_v40 = vsub.f32 %v16364_v48, %v5926_v31  ;;  %6637 = vadd.xlane.f32.xlu0 %v6636_v6  ;;  %v6612_v45 = vmul.f32 1.442695, %v6599_v52 }
0x12f8   : > { %v6593_v32 = vpop.xlane.xlu1 %6592 }
0x12f9   : > { %v16431_v22 = vpop.eup %14649  ;;  %v5950_v30 = vmul.f32 1.442695, %v5936_v40  ;;  %14659 = vpow2.f32 %v6612_v45  ;;  %v6601_v37 = vsub.f32 %v16397_v14, %v6593_v32 }
0x12fa   : > { %v5954_v35 = vsel %vm5905_vm2, %v16431_v22, 0.0 }
0x12fb   : > { %14661 = vpow2.f32 %v5950_v30  ;;  %5955 = vadd.xlane.f32.xlu0 %v5954_v35  ;;  %v16436_v21 = vpop.eup %14651  ;;  %v6616_v43 = vmul.f32 1.442695, %v6601_v37 }
0x12fc   : > { %v5911_v48 = vpop.xlane.xlu1 %5910  ;;  %v6621_v46 = vsel %vm5905_vm2, %v16436_v21, 0.0 }
0x12fd   : > { %v16438_v41 = vpop.eup %14653  ;;  %14663 = vpow2.f32 %v6616_v43  ;;  %v5931_v53 = vsub.f32 %v16362_v13, %v5911_v48  ;;  %6622 = vadd.xlane.f32.xlu1 %v6621_v46 }
0x12fe   : > { %v5960_v14 = vsel %vm5905_vm2, %v16438_v41, 0.0 }
0x12ff   : > { %5961 = vadd.xlane.f32.xlu0 %v5960_v14  ;;  %v16445_v61 = vpop.eup %14655  ;;  %v5940_v1 = vmul.f32 1.442695, %v5931_v53 }
0x1300   : > { %v5917_v3 = vpop.xlane.xlu1 %5916  ;;  %v6627_v56 = vsel %vm5905_vm2, %v16445_v61, 0.0 }
0x1301   : > { %v16447_v8 = vpop.eup %14657  ;;  %14665 = vpow2.f32 %v5940_v1  ;;  %v5933_v10 = vsub.f32 %v16369_v24, %v5917_v3  ;;  %6628 = vadd.xlane.f32.xlu1 %v6627_v56 }
0x1302   : > { %v5966_v13 = vsel %vm5905_vm2, %v16447_v8, 0.0 }
0x1303   : > { %5967 = vadd.xlane.f32.xlu0 %v5966_v13  ;;  %v16454_v5 = vpop.eup %14659  ;;  %v5944_v18 = vmul.f32 1.442695, %v5933_v10  ;;  %v5295_v10 = vcombine.high %v16268_v42, %v16268_v42 }
0x1304   : > { %v5923_v52 = vpop.xlane.xlu1 %5922  ;;  %v6633_v31 = vsel %vm5905_vm2, %v16454_v5, 0.0 }
0x1305   : > { %v16456_v23 = vpop.eup %14661  ;;  %14667 = vpow2.f32 %v5944_v18  ;;  %v5935_v6 = vsub.f32 %v16375_v57, %v5923_v52  ;;  %6634 = vadd.xlane.f32.xlu1 %v6633_v31  ;;  %v16487_v18 = vrot.slane %v5295_v10, %v16184_v7  ;;  %v5994_v10 = vmul.f32 %v15727_v28, %v16291_v49 }
0x1306   : > { %v5972_v24 = vsel %vm5905_vm2, %v16456_v23, 0.0 }
0x1307   : > { %5973 = vadd.xlane.f32.xlu0 %v5972_v24  ;;  %v16463_v40 = vpop.eup %14663  ;;  %v5948_v45 = vmul.f32 1.442695, %v5935_v6  ;;  %v5312_v24 = vcombine.high %v16186_v15, %v16186_v15  ;;  %v6660_v42 = vmul.f32 %v15764_v47, %v16487_v18 }
0x1308   : > { %v5929_v30 = vpop.xlane.xlu1 %5928  ;;  %v6639_v32 = vsel %vm5905_vm2, %v16463_v40, 0.0 }
0x1309   : > { %14669 = vpow2.f32 %v5948_v45  ;;  %v5937_v37 = vsub.f32 %v16378_v50, %v5929_v30  ;;  %6640 = vadd.xlane.f32.xlu1 %v6639_v32  ;;  %v16494_v45 = vrot.slane %v16186_v15, %v16184_v7  ;;  %v16505_v15 = vrot.slane %v5312_v24, %v16184_v7 }
0x130a   : > { %v5996_v24 = vmul.f32 %v15727_v28, %v16487_v18 }
0x130b   : > { %v16468_v35 = vpop.eup %14665  ;;  %v5952_v43 = vmul.f32 1.442695, %v5937_v37  ;;  %v6662_v37 = vmul.f32 %v15764_v47, %v16494_v45 }
0x130c   : > { %v5957_v57 = vsel %vm5905_vm2, %v16468_v35, 0.0 }
0x130d   : > { %14671 = vpow2.f32 %v5952_v43  ;;  %5958 = vadd.xlane.f32.xlu1 %v5957_v57 }
0x130f   : > { %v16472_v48 = vpop.eup %14667 }
0x1310   : > { %v5963_v46 = vsel %vm5905_vm2, %v16472_v48, 0.0 }
0x1311   : > { %5964 = vadd.xlane.f32.xlu1 %v5963_v46 }
0x1313   : > { %v16476_v53 = vpop.eup %14669 }
0x1314   : > { %v5969_v50 = vsel %vm5905_vm2, %v16476_v53, 0.0 }
0x1315   : > { %5970 = vadd.xlane.f32.xlu1 %v5969_v50  ;;  %v6664_v50 = vmul.f32 %v15764_v47, %v16505_v15 }
0x1317   : > { %v16480_v14 = vpop.eup %14671 }
0x1318   : > { %v5975_v1 = vsel %vm5905_vm2, %v16480_v14, 0.0 }
0x1319   : > { %5976 = vadd.xlane.f32.xlu1 %v5975_v1 }
0x1378   : > { %v6620_v3 = vpop.xlane.xlu0 %6619 }
0x1379   : > { %14673 = vrcp.f32 %v6620_v3 }
0x137c   : > { %v6626_v56 = vpop.xlane.xlu0 %6625 }
0x137d   : > { %14675 = vrcp.f32 %v6626_v56 }
0x1380   : > { %v6632_v13 = vpop.xlane.xlu0 %6631 }
0x1381   : > { %14677 = vrcp.f32 %v6632_v13 }
0x1383   : > { %v14674_v52 = vpop.eup %14673 }
0x1384   : > { %v6650_v31 = vmul.f32 %v14674_v52, %v16409_v25  ;;  %v6638_v6 = vpop.xlane.xlu0 %6637 }
0x1385   : > { %14679 = vrcp.f32 %v6638_v6 }
0x1386   : > { %13587 = vmatmul.mubr.msk.f32.vlgmr.msra.gmra.mrb[42].mxu0 %vm6666_vm3, %v6650_v31 }
0x1387   : > { %v14676_v30 = vpop.eup %14675  ;;  %13595 = vmatpush3.msk.msra.mxu0 %vm6670_vm1, %v6660_v42  ;;  %13596 = vmatprep.mubr.msk.f32.mxu0 %vm15124_vm0, %v15123_v0 }
0x1388   : > { %v6652_v25 = vmul.f32 %v14676_v30, %v16414_v12  ;;  %v5956_v32 = vpop.xlane.xlu0 %5955  ;;  %13604 = vmatprep.subr.mxu0 %v15123_v0 }
0x1389   : > { %14681 = vrcp.f32 %v5956_v32 }
0x138a   : > { %13597 = vmatmul.mubr.msk.f32.vlgmr.msra.gmra.mrb[44].mxu0 %vm6666_vm3, %v6652_v25  ;;  %v6623_v57 = vpop.xlane.xlu1 %6622 }
0x138b   : > { %v14678_v43 = vpop.eup %14677  ;;  %13605 = vmatpush3.msk.msra.mxu0 %vm6670_vm1, %v6662_v37  ;;  %13606 = vmatprep.mubr.msk.f32.mxu0 %vm15124_vm0, %v15123_v0  ;;  %14683 = vrcp.f32 %v6623_v57 }
0x138c   : > { %v6654_v12 = vmul.f32 %v14678_v43, %v16419_v54  ;;  %v5962_v46 = vpop.xlane.xlu0 %5961  ;;  %13614 = vmatprep.subr.mxu0 %v15123_v0 }
0x138d   : > { %14685 = vrcp.f32 %v5962_v46 }
0x138e   : > { %13607 = vmatmul.mubr.msk.f32.vlgmr.msra.gmra.mrb[46].mxu0 %vm6666_vm3, %v6654_v12  ;;  %v6629_v3 = vpop.xlane.xlu1 %6628 }
0x138f   : > { %v14680_v1 = vpop.eup %14679  ;;  %13615 = vmatpush3.msk.msra.mxu0 %vm6670_vm1, %v6664_v50  ;;  %13616 = vmatprep.mubr.msk.f32.mxu0 %vm15124_vm0, %v15123_v0  ;;  %14687 = vrcp.f32 %v6629_v3  ;;  %v16561_v50 = vcombine.high %v16505_v15, %v16505_v15 }
0x1390   : > { %v6656_v56 = vmul.f32 %v14680_v1, %v16425_v16  ;;  %v5968_v54 = vpop.xlane.xlu0 %5967  ;;  %13624 = vmatprep.subr.mxu0 %v15123_v0  ;;  %v16531_v16 = vcombine.high %v16487_v18, %v16487_v18 }
0x1391   : > { %14689 = vrcp.f32 %v5968_v54 }
0x1392   : > { %13617 = vmatmul.mubr.msk.f32.vlgmr.msra.gmra.mrb[48].mxu0 %vm6666_vm3, %v6656_v56  ;;  %v6635_v52 = vpop.xlane.xlu1 %6634  ;;  %v6661_v43 = vmul.f32 %v15764_v47, %v16531_v16 }
0x1393   : > { %v14682_v13 = vpop.eup %14681  ;;  %13625 = vmatpush3.msk.msra.mxu0 %vm6670_vm1, %v5994_v10  ;;  %13626 = vmatprep.mubr.msk.f32.mxu0 %vm15124_vm0, %v15123_v0  ;;  %14691 = vrcp.f32 %v6635_v52  ;;  %v6665_v52 = vmul.f32 %v15764_v47, %v16561_v50 }
0x1394   : > { %v5986_v31 = vmul.f32 %v14682_v13, %v16431_v22  ;;  %v5974_v6 = vpop.xlane.xlu0 %5973  ;;  %13634 = vmatprep.subr.mxu0 %v15123_v0  ;;  %v16544_v22 = vcombine.high %v16494_v45, %v16494_v45 }
0x1395   : > { %14693 = vrcp.f32 %v5974_v6  ;;  %v14684_v42 = vpop.eup %14683  ;;  %v7884_v6 = vmul.f32 %v15874_v62, %v16191_v9 }
0x1396   : > { %13627 = vmatmul.mubr.msk.f32.vlgmr.msra.gmra.mrb[42].mxu0 %vm6666_vm3, %v5986_v31  ;;  %v6651_v25 = vmul.f32 %v14684_v42, %v16436_v21  ;;  %v6641_v32 = vpop.xlane.xlu1 %6640  ;;  %v5998_v21 = vmul.f32 %v15727_v28, %v16494_v45  ;;  %v6663_v3 = vmul.f32 %v15764_v47, %v16544_v22  ;;  %v5995_v47 = vmul.f32 %v15727_v28, %v16345_v4 }
0x1397   : > { %v14686_v30 = vpop.eup %14685  ;;  %13635 = vmatpush3.msk.msra.mxu0 %vm6670_vm1, %v5996_v24  ;;  %13636 = vmatprep.mubr.msk.f32.mxu0 %vm15124_vm0, %v15123_v0  ;;  %14695 = vrcp.f32 %v6641_v32 }
0x1398   : > { %v5988_v37 = vmul.f32 %v14686_v30, %v16438_v41  ;;  %13644 = vmatprep.subr.mxu0 %v15123_v0  ;;  %13592 = vmatmul.mubr.msk.f32.vlgmr.msra.gmra.mrb[70].mxu1 %vm6666_vm3, %v6651_v25  ;;  %v5997_v30 = vmul.f32 %v15727_v28, %v16531_v16  ;;  %v7886_v25 = vmul.f32 %v15874_v62, %v16207_v29 }
0x1399   : > { %v14688_v57 = vpop.eup %14687  ;;  %13600 = vmatpush3.msk.msra.mxu1 %vm6670_vm1, %v6661_v43  ;;  %13601 = vmatprep.mubr.msk.f32.mxu1 %vm15124_vm0, %v15123_v0  ;;  %v7888_v43 = vmul.f32 %v15874_v62, %v16241_v34 }
0x139a   : > { %13637 = vmatmul.mubr.msk.f32.vlgmr.msra.gmra.mrb[44].mxu0 %vm6666_vm3, %v5988_v37  ;;  %v6653_v46 = vmul.f32 %v14688_v57, %v16445_v61  ;;  %v5959_v41 = vpop.xlane.xlu1 %5958  ;;  %13609 = vmatprep.subr.mxu1 %v15123_v0  ;;  %v6000_v61 = vmul.f32 %v15727_v28, %v16505_v15  ;;  %v5999_v37 = vmul.f32 %v15727_v28, %v16544_v22 }
0x139b   : > { %v14690_v12 = vpop.eup %14689  ;;  %13645 = vmatpush3.msk.msra.mxu0 %vm6670_vm1, %v5998_v21  ;;  %14697 = vrcp.f32 %v5959_v41  ;;  %13646 = vmatprep.mubr.msk.f32.mxu0 %vm15124_vm0, %v15123_v0  ;;  %v6001_v57 = vmul.f32 %v15727_v28, %v16561_v50  ;;  %v8540_v28 = vmul.f32 %v15874_v62, %v16291_v49  ;;  %v7887_v41 = vmul.f32 %v15874_v62, %v16229_v59 }
0x139c   : > { %v5990_v1 = vmul.f32 %v14690_v12, %v16447_v8  ;;  %13602 = vmatmul.mubr.msk.f32.vlgmr.msra.gmra.mrb[72].mxu1 %vm6666_vm3, %v6653_v46  ;;  %13654 = vmatprep.subr.mxu0 %v15123_v0  ;;  %v7890_v12 = vmul.f32 %v15874_v62, %v16200_v17 }
0x139d   : > { %v14692_v56 = vpop.eup %14691  ;;  %13610 = vmatpush3.msk.msra.mxu1 %vm6670_vm1, %v6663_v3  ;;  %13611 = vmatprep.mubr.msk.f32.mxu1 %vm15124_vm0, %v15123_v0  ;;  %v7891_v3 = vmul.f32 %v15874_v62, %v16287_v20 }
0x139e   : > { %13647 = vmatmul.mubr.msk.f32.vlgmr.msra.gmra.mrb[46].mxu0 %vm6666_vm3, %v5990_v1  ;;  %v6655_v54 = vmul.f32 %v14692_v56, %v16454_v5  ;;  %v5965_v10 = vpop.xlane.xlu1 %5964  ;;  %13619 = vmatprep.subr.mxu1 %v15123_v0  ;;  %v7889_v1 = vmul.f32 %v15874_v62, %v16266_v39 }
0x139f   : > { %v14694_v8 = vpop.eup %14693  ;;  %13655 = vmatpush3.msk.msra.mxu0 %vm6670_vm1, %v6000_v61  ;;  %14699 = vrcp.f32 %v5965_v10  ;;  %13656 = vmatprep.mubr.msk.f32.mxu0 %vm15124_vm0, %v15123_v0  ;;  %v8541_v61 = vmul.f32 %v15874_v62, %v16345_v4 }
0x13a0   : > { %v5992_v13 = vmul.f32 %v14694_v8, %v16456_v23  ;;  %13612 = vmatmul.mubr.msk.f32.vlgmr.msra.gmra.mrb[74].mxu1 %vm6666_vm3, %v6655_v54  ;;  %13664 = vmatprep.subr.mxu0 %v15123_v0 }
0x13a1   : > { %v14696_v5 = vpop.eup %14695  ;;  %13620 = vmatpush3.msk.msra.mxu1 %vm6670_vm1, %v6665_v52  ;;  %13621 = vmatprep.mubr.msk.f32.mxu1 %vm15124_vm0, %v15123_v0 }
0x13a2   : > { %13657 = vmatmul.mubr.msk.f32.vlgmr.msra.gmra.mrb[48].mxu0 %vm6666_vm3, %v5992_v13  ;;  %v6657_v23 = vmul.f32 %v14696_v5, %v16463_v40  ;;  %v5971_v31 = vpop.xlane.xlu1 %5970  ;;  %13629 = vmatprep.subr.mxu1 %v15123_v0 }
0x13a3   : > { %14701 = vrcp.f32 %v5971_v31  ;;  %13666 = vmatprep.mubr.msk.f32.mxu0 %vm15124_vm0, %v15123_v0 }
0x13a4   : > { %13622 = vmatmul.mubr.msk.f32.vlgmr.msra.gmra.mrb[76].mxu1 %vm6666_vm3, %v6657_v23 }
0x13a5   : > { %v14698_v24 = vpop.eup %14697  ;;  %13630 = vmatpush3.msk.msra.mxu1 %vm6670_vm1, %v5995_v47  ;;  %13631 = vmatprep.mubr.msk.f32.mxu1 %vm15124_vm0, %v15123_v0 }
0x13a6   : > { %13665 = vmatpush3.xpose.msra.mxu0 %v7884_v6  ;;  %v5987_v40 = vmul.f32 %v14698_v24, %v16468_v35  ;;  %v5977_v42 = vpop.xlane.xlu1 %5976  ;;  %13639 = vmatprep.subr.mxu1 %v15123_v0 }
0x13a7   : > { %14703 = vrcp.f32 %v5977_v42  ;;  %13674 = vmatprep.subr.mxu0 %v15123_v0 }
0x13a8   : > { %13632 = vmatmul.mubr.msk.f32.vlgmr.msra.gmra.mrb[70].mxu1 %vm6666_vm3, %v5987_v40 }
0x13a9   : > { %13667 = vmatmul.mubr.f32.vlgmr.msra.gmra.mrb[50].mxu0 %v16203_v26  ;;  %v14700_v35 = vpop.eup %14699  ;;  %13640 = vmatpush3.msk.msra.mxu1 %vm6670_vm1, %v5997_v30 }
0x13aa   : > { %13675 = vmatpush3.xpose.msra.mxu0 %v7886_v25  ;;  %v5989_v32 = vmul.f32 %v14700_v35, %v16472_v48  ;;  %13641 = vmatprep.mubr.msk.f32.mxu1 %vm15124_vm0, %v15123_v0 }
0x13ab   : > { %13649 = vmatprep.subr.mxu1 %v15123_v0  ;;  %13676 = vmatprep.mubr.msk.f32.mxu0 %vm15124_vm0, %v15123_v0 }
0x13ac   : > { %13684 = vmatprep.subr.mxu0 %v15123_v0  ;;  %13642 = vmatmul.mubr.msk.f32.vlgmr.msra.gmra.mrb[72].mxu1 %vm6666_vm3, %v5989_v32 }
0x13ad   : > { %13677 = vmatmul.mubr.f32.vlgmr.msra.gmra.mrb[52].mxu0 %v16236_v63  ;;  %v14702_v48 = vpop.eup %14701  ;;  %13650 = vmatpush3.msk.msra.mxu1 %vm6670_vm1, %v5999_v37 }
0x13ae   : > { %13685 = vmatpush3.xpose.msra.mxu0 %v7888_v43  ;;  %v5991_v21 = vmul.f32 %v14702_v48, %v16476_v53  ;;  %13651 = vmatprep.mubr.msk.f32.mxu1 %vm15124_vm0, %v15123_v0 }
0x13af   : > { %13659 = vmatprep.subr.mxu1 %v15123_v0  ;;  %13686 = vmatprep.mubr.msk.f32.mxu0 %vm15124_vm0, %v15123_v0 }
0x13b0   : > { %13694 = vmatprep.subr.mxu0 %v15123_v0  ;;  %13652 = vmatmul.mubr.msk.f32.vlgmr.msra.gmra.mrb[74].mxu1 %vm6666_vm3, %v5991_v21 }
0x13b1   : > { %13687 = vmatmul.mubr.f32.vlgmr.msra.gmra.mrb[54].mxu0 %v16276_v44  ;;  %v14704_v53 = vpop.eup %14703  ;;  %13660 = vmatpush3.msk.msra.mxu1 %vm6670_vm1, %v6001_v57 }
0x13b2   : > { %13695 = vmatpush3.xpose.msra.mxu0 %v7890_v12  ;;  %v5993_v46 = vmul.f32 %v14704_v53, %v16480_v14  ;;  %13661 = vmatprep.mubr.msk.f32.mxu1 %vm15124_vm0, %v15123_v0  ;;  %v7885_v14 = vmul.f32 %v15874_v62, %v16197_v27 }
0x13b3   : > { %13696 = vmatprep.mubr.msk.f32.mxu0 %vm15124_vm0, %v15123_v0  ;;  %13704 = vmatprep.subr.mxu0 %v15123_v0 }
0x13b4   : > { %13669 = vmatprep.subr.mxu1 %v15123_v0  ;;  %13662 = vmatmul.mubr.msk.f32.vlgmr.msra.gmra.mrb[76].mxu1 %vm6666_vm3, %v5993_v46 }
0x13b5   : > { %13697 = vmatmul.mubr.f32.vlgmr.msra.gmra.mrb[56].mxu0 %v16222_v36  ;;  %13671 = vmatprep.mubr.msk.f32.mxu1 %vm15124_vm0, %v15123_v0 }
0x13b6   : > { %13705 = vmatpush3.msk.msra.mxu0 %vm6670_vm1, %v8540_v28  ;;  %13706 = vmatprep.mubr.msk.f32.mxu0 %vm15124_vm0, %v15123_v0 }
0x13b7   : > { %13714 = vmatprep.subr.mxu0 %v15123_v0 }
0x13b8   : > { %13670 = vmatpush3.xpose.msra.mxu1 %v7885_v14 }
0x13b9   : > { %13679 = vmatprep.subr.mxu1 %v15123_v0 }
0x13bb   : > { %13672 = vmatmul.mubr.f32.vlgmr.msra.gmra.mrb[78].mxu1 %v16218_v2 }
0x13bc   : > { %13680 = vmatpush3.xpose.msra.mxu1 %v7887_v41  ;;  %13681 = vmatprep.mubr.msk.f32.mxu1 %vm15124_vm0, %v15123_v0 }
0x13bd   : > { %13689 = vmatprep.subr.mxu1 %v15123_v0 }
0x13bf   : > { %13682 = vmatmul.mubr.f32.vlgmr.msra.gmra.mrb[80].mxu1 %v16257_v38 }
0x13c0   : > { %13690 = vmatpush3.xpose.msra.mxu1 %v7889_v1  ;;  %13691 = vmatprep.mubr.msk.f32.mxu1 %vm15124_vm0, %v15123_v0 }
0x13c1   : > { %13699 = vmatprep.subr.mxu1 %v15123_v0 }
0x13c3   : > { %13692 = vmatmul.mubr.f32.vlgmr.msra.gmra.mrb[82].mxu1 %v16302_v51 }
0x13c4   : > { %13700 = vmatpush3.xpose.msra.mxu1 %v7891_v3  ;;  %13701 = vmatprep.mubr.msk.f32.mxu1 %vm15124_vm0, %v15123_v0 }
0x13c5   : > { %13709 = vmatprep.subr.mxu1 %v15123_v0 }
0x13c7   : > { %13702 = vmatmul.mubr.f32.vlgmr.msra.gmra.mrb[84].mxu1 %v16319_v55 }
0x13c8   : > { %13710 = vmatpush3.msk.msra.mxu1 %vm6670_vm1, %v8541_v61  ;;  %13711 = vmatprep.mubr.msk.f32.mxu1 %vm15124_vm0, %v15123_v0 }
0x13c9   : > { %13719 = vmatprep.subr.mxu1 %v15123_v0 }
0x147c   : > { %v7958_v56 = vpop.f32.mrb[50].mxu0 }
0x147d   : > { %v13668_v8 = vpop.f32.mrb[51].mxu0  ;;  %v8452_v54 = vsel %vm5905_vm2, %v7958_v56, -inf }
0x147e   : > { %8453 = vmax.xlane.f32.xlu0 %v8452_v54 }
0x1480   : > { %v8098_v10 = vpop.f32.mrb[52].mxu0 }
0x1481   : > { %v13678_v13 = vpop.f32.mrb[53].mxu0  ;;  %v8458_v52 = vsel %vm5905_vm2, %v8098_v10, -inf }
0x1482   : > { %8459 = vmax.xlane.f32.xlu0 %v8458_v52 }
0x1484   : > { %v8238_v5 = vpop.f32.mrb[54].mxu0 }
0x1485   : > { %v13688_v23 = vpop.f32.mrb[55].mxu0  ;;  %v8464_v31 = vsel %vm5905_vm2, %v8238_v5, -inf }
0x1486   : > { %8465 = vmax.xlane.f32.xlu0 %v8464_v31 }
0x1488   : > { %v8378_v47 = vpop.f32.mrb[56].mxu0 }
0x1489   : > { %v13698_v6 = vpop.f32.mrb[57].mxu0  ;;  %v8470_v24 = vsel %vm5905_vm2, %v8378_v47, -inf }
0x148a   : > { %8471 = vmax.xlane.f32.xlu0 %v8470_v24 }
0x148e   : > { %v8028_v40 = vpop.f32.mrb[78].mxu1 }
0x148f   : > { %v13673_v42 = vpop.f32.mrb[79].mxu1  ;;  %v8455_v30 = vsel %vm5905_vm2, %v8028_v40, -inf }
0x1490   : > { %8456 = vmax.xlane.f32.xlu1 %v8455_v30 }
0x1492   : > { %v8168_v25 = vpop.f32.mrb[80].mxu1 }
0x1493   : > { %v13683_v35 = vpop.f32.mrb[81].mxu1  ;;  %v8461_v32 = vsel %vm5905_vm2, %v8168_v25, -inf }
0x1494   : > { %8462 = vmax.xlane.f32.xlu1 %v8461_v32 }
0x1496   : > { %v8308_v37 = vpop.f32.mrb[82].mxu1 }
0x1497   : > { %v13693_v43 = vpop.f32.mrb[83].mxu1  ;;  %v8467_v48 = vsel %vm5905_vm2, %v8308_v37, -inf }
0x1498   : > { %8468 = vmax.xlane.f32.xlu1 %v8467_v48 }
0x149a   : > { %v8448_v21 = vpop.f32.mrb[84].mxu1 }
0x149b   : > { %v13703_v57 = vpop.f32.mrb[85].mxu1  ;;  %v8473_v12 = vsel %vm5905_vm2, %v8448_v21, -inf }
0x149c   : > { %8474 = vmax.xlane.f32.xlu1 %v8473_v12 }
0x150b   : > { %v8454_v53 = vpop.xlane.xlu0 %8453 }
0x150c   : > { %v8476_v46 = vsub.f32 %v7958_v56, %v8454_v53 }
0x150e   : > { %v8484_v28 = vmul.f32 1.442695, %v8476_v46 }
0x150f   : > { %v8460_v14 = vpop.xlane.xlu0 %8459 }
0x1510   : > { %14705 = vpow2.f32 %v8484_v28  ;;  %v8478_v41 = vsub.f32 %v8098_v10, %v8460_v14 }
0x1512   : > { %v8488_v1 = vmul.f32 1.442695, %v8478_v41 }
0x1513   : > { %v8466_v3 = vpop.xlane.xlu0 %8465 }
0x1514   : > { %14707 = vpow2.f32 %v8488_v1  ;;  %v8480_v61 = vsub.f32 %v8238_v5, %v8466_v3 }
0x1516   : > { %v8492_v8 = vmul.f32 1.442695, %v8480_v61 }
0x1517   : > { %v8472_v54 = vpop.xlane.xlu0 %8471 }
0x1518   : > { %14709 = vpow2.f32 %v8492_v8  ;;  %v8482_v13 = vsub.f32 %v8378_v47, %v8472_v54 }
0x151a   : > { %v14706_v52 = vpop.eup %14705  ;;  %v8496_v23 = vmul.f32 1.442695, %v8482_v13 }
0x151b   : > { %v8500_v31 = vsel %vm5905_vm2, %v14706_v52, 0.0 }
0x151c   : > { %14711 = vpow2.f32 %v8496_v23  ;;  %8501 = vadd.xlane.f32.xlu0 %v8500_v31 }
0x151d   : > { %v8457_v56 = vpop.xlane.xlu1 %8456 }
0x151e   : > { %v14708_v6 = vpop.eup %14707  ;;  %v8477_v24 = vsub.f32 %v8028_v40, %v8457_v56 }
0x151f   : > { %v8506_v42 = vsel %vm5905_vm2, %v14708_v6, 0.0 }
0x1520   : > { %8507 = vadd.xlane.f32.xlu0 %v8506_v42  ;;  %v8486_v10 = vmul.f32 1.442695, %v8477_v24  ;;  %v8542_v24 = vmul.f32 %v15874_v62, %v16487_v18 }
0x1521   : > { %v8463_v35 = vpop.xlane.xlu1 %8462 }
0x1522   : > { %v14710_v30 = vpop.eup %14709  ;;  %14713 = vpow2.f32 %v8486_v10  ;;  %v8479_v5 = vsub.f32 %v8168_v25, %v8463_v35  ;;  %v8544_v35 = vmul.f32 %v15874_v62, %v16494_v45 }
0x1523   : > { %v8512_v32 = vsel %vm5905_vm2, %v14710_v30, 0.0 }
0x1524   : > { %8513 = vadd.xlane.f32.xlu0 %v8512_v32  ;;  %v8490_v47 = vmul.f32 1.442695, %v8479_v5 }
0x1525   : > { %v8469_v48 = vpop.xlane.xlu1 %8468 }
0x1526   : > { %v14712_v43 = vpop.eup %14711  ;;  %14715 = vpow2.f32 %v8490_v47  ;;  %v8481_v57 = vsub.f32 %v8308_v37, %v8469_v48 }
0x1527   : > { %v8518_v12 = vsel %vm5905_vm2, %v14712_v43, 0.0 }
0x1528   : > { %8519 = vadd.xlane.f32.xlu0 %v8518_v12  ;;  %v8494_v40 = vmul.f32 1.442695, %v8481_v57  ;;  %v9164_v12 = vmul.f32 %v15941_v11, %v16191_v9 }
0x1529   : > { %v8475_v53 = vpop.xlane.xlu1 %8474 }
0x152a   : > { %14717 = vpow2.f32 %v8494_v40  ;;  %v8483_v46 = vsub.f32 %v8448_v21, %v8475_v53 }
0x152c   : > { %v14714_v28 = vpop.eup %14713  ;;  %v8498_v14 = vmul.f32 1.442695, %v8483_v46 }
0x152d   : > { %v8503_v41 = vsel %vm5905_vm2, %v14714_v28, 0.0 }
0x152e   : > { %14719 = vpow2.f32 %v8498_v14  ;;  %8504 = vadd.xlane.f32.xlu1 %v8503_v41  ;;  %v9166_v14 = vmul.f32 %v15941_v11, %v16207_v29 }
0x1530   : > { %v14716_v25 = vpop.eup %14715 }
0x1531   : > { %v8509_v1 = vsel %vm5905_vm2, %v14716_v25, 0.0 }
0x1532   : > { %8510 = vadd.xlane.f32.xlu1 %v8509_v1 }
0x1534   : > { %v16700_v3 = vpop.eup %14717 }
0x1535   : > { %v8515_v37 = vsel %vm5905_vm2, %v16700_v3, 0.0 }
0x1536   : > { %8516 = vadd.xlane.f32.xlu1 %v8515_v37  ;;  %v9168_v37 = vmul.f32 %v15941_v11, %v16241_v34 }
0x1538   : > { %v16704_v61 = vpop.eup %14719 }
0x1539   : > { %v8521_v21 = vsel %vm5905_vm2, %v16704_v61, 0.0 }
0x153a   : > { %8522 = vadd.xlane.f32.xlu1 %v8521_v21 }
0x15a9   : > { %v8502_v8 = vpop.xlane.xlu0 %8501 }
0x15aa   : > { %14721 = vrcp.f32 %v8502_v8  ;;  %v8547_v8 = vmul.f32 %v15874_v62, %v16561_v50 }
0x15ad   : > { %v8508_v54 = vpop.xlane.xlu0 %8507 }
0x15ae   : > { %14723 = vrcp.f32 %v8508_v54  ;;  %v9170_v54 = vmul.f32 %v15941_v11, %v16200_v17 }
0x15b1   : > { %v8514_v13 = vpop.xlane.xlu0 %8513 }
0x15b2   : > { %14725 = vrcp.f32 %v8514_v13 }
0x15b4   : > { %v14722_v23 = vpop.eup %14721 }
0x15b5   : > { %v8532_v31 = vmul.f32 %v14722_v23, %v14706_v52  ;;  %v8520_v56 = vpop.xlane.xlu0 %8519  ;;  %v9167_v23 = vmul.f32 %v15941_v11, %v16229_v59 }
0x15b6   : > { %14727 = vrcp.f32 %v8520_v56  ;;  %v9171_v56 = vmul.f32 %v15941_v11, %v16287_v20 }
0x15b7   : > { %13707 = vmatmul.mubr.msk.f32.vlgmr.msra.gmra.mrb[42].mxu0 %vm6666_vm3, %v8532_v31  ;;  %v9169_v31 = vmul.f32 %v15941_v11, %v16266_v39 }
0x15b8   : > { %v14724_v42 = vpop.eup %14723  ;;  %13715 = vmatpush3.msk.msra.mxu0 %vm6670_vm1, %v8542_v24  ;;  %13716 = vmatprep.mubr.msk.f32.mxu0 %vm15124_vm0, %v15123_v0  ;;  %v9821_v24 = vmul.f32 %v15941_v11, %v16345_v4 }
0x15b9   : > { %v8534_v10 = vmul.f32 %v14724_v42, %v14708_v6  ;;  %13724 = vmatprep.subr.mxu0 %v15123_v0  ;;  %v8546_v6 = vmul.f32 %v15874_v62, %v16505_v15 }
0x15bb   : > { %13717 = vmatmul.mubr.msk.f32.vlgmr.msra.gmra.mrb[44].mxu0 %vm6666_vm3, %v8534_v10  ;;  %v8505_v5 = vpop.xlane.xlu1 %8504 }
0x15bc   : > { %v14726_v52 = vpop.eup %14725  ;;  %13725 = vmatpush3.msk.msra.mxu0 %vm6670_vm1, %v8544_v35  ;;  %13726 = vmatprep.mubr.msk.f32.mxu0 %vm15124_vm0, %v15123_v0  ;;  %14729 = vrcp.f32 %v8505_v5 }
0x15bd   : > { %v8536_v32 = vmul.f32 %v14726_v52, %v14710_v30  ;;  %13734 = vmatprep.subr.mxu0 %v15123_v0 }
0x15bf   : > { %13727 = vmatmul.mubr.msk.f32.vlgmr.msra.gmra.mrb[46].mxu0 %vm6666_vm3, %v8536_v32  ;;  %v8511_v48 = vpop.xlane.xlu1 %8510 }
0x15c0   : > { %v14728_v47 = vpop.eup %14727  ;;  %13735 = vmatpush3.msk.msra.mxu0 %vm6670_vm1, %v8546_v6  ;;  %13736 = vmatprep.mubr.msk.f32.mxu0 %vm15124_vm0, %v15123_v0  ;;  %14731 = vrcp.f32 %v8511_v48 }
0x15c1   : > { %v8538_v57 = vmul.f32 %v14728_v47, %v14712_v43  ;;  %13744 = vmatprep.subr.mxu0 %v15123_v0  ;;  %v8543_v43 = vmul.f32 %v15874_v62, %v16531_v16 }
0x15c3   : > { %13737 = vmatmul.mubr.msk.f32.vlgmr.msra.gmra.mrb[48].mxu0 %vm6666_vm3, %v8538_v57  ;;  %v8517_v30 = vpop.xlane.xlu1 %8516 }
0x15c4   : > { %13746 = vmatprep.mubr.msk.f32.mxu0 %vm15124_vm0, %v15123_v0  ;;  %14733 = vrcp.f32 %v8517_v30 }
0x15c6   : > { %v14730_v40 = vpop.eup %14729 }
0x15c7   : > { %13745 = vmatpush3.xpose.msra.mxu0 %v9164_v12  ;;  %v8533_v53 = vmul.f32 %v14730_v40, %v14714_v28  ;;  %v8523_v46 = vpop.xlane.xlu1 %8522  ;;  %v8545_v28 = vmul.f32 %v15874_v62, %v16544_v22  ;;  %v9820_v62 = vmul.f32 %v15941_v11, %v16291_v49 }
0x15c8   : > { %13754 = vmatprep.subr.mxu0 %v15123_v0  ;;  %14735 = vrcp.f32 %v8523_v46 }
0x15c9   : > { %13712 = vmatmul.mubr.msk.f32.vlgmr.msra.gmra.mrb[70].mxu1 %vm6666_vm3, %v8533_v53 }
0x15ca   : > { %13747 = vmatmul.mubr.f32.vlgmr.msra.gmra.mrb[58].mxu0 %v16203_v26  ;;  %v14732_v41 = vpop.eup %14731  ;;  %13720 = vmatpush3.msk.msra.mxu1 %vm6670_vm1, %v8543_v43 }
0x15cb   : > { %13755 = vmatpush3.xpose.msra.mxu0 %v9166_v14  ;;  %v8535_v1 = vmul.f32 %v14732_v41, %v14716_v25  ;;  %13721 = vmatprep.mubr.msk.f32.mxu1 %vm15124_vm0, %v15123_v0 }
0x15cc   : > { %13729 = vmatprep.subr.mxu1 %v15123_v0  ;;  %13756 = vmatprep.mubr.msk.f32.mxu0 %vm15124_vm0, %v15123_v0 }
0x15cd   : > { %13764 = vmatprep.subr.mxu0 %v15123_v0  ;;  %13722 = vmatmul.mubr.msk.f32.vlgmr.msra.gmra.mrb[72].mxu1 %vm6666_vm3, %v8535_v1 }
0x15ce   : > { %13757 = vmatmul.mubr.f32.vlgmr.msra.gmra.mrb[60].mxu0 %v16236_v63  ;;  %v14734_v25 = vpop.eup %14733  ;;  %13730 = vmatpush3.msk.msra.mxu1 %vm6670_vm1, %v8545_v28 }
0x15cf   : > { %13765 = vmatpush3.xpose.msra.mxu0 %v9168_v37  ;;  %v8537_v21 = vmul.f32 %v14734_v25, %v16700_v3  ;;  %13731 = vmatprep.mubr.msk.f32.mxu1 %vm15124_vm0, %v15123_v0 }
0x15d0   : > { %13739 = vmatprep.subr.mxu1 %v15123_v0  ;;  %13766 = vmatprep.mubr.msk.f32.mxu0 %vm15124_vm0, %v15123_v0 }
0x15d1   : > { %13774 = vmatprep.subr.mxu0 %v15123_v0  ;;  %13732 = vmatmul.mubr.msk.f32.vlgmr.msra.gmra.mrb[74].mxu1 %vm6666_vm3, %v8537_v21 }
0x15d2   : > { %13767 = vmatmul.mubr.f32.vlgmr.msra.gmra.mrb[62].mxu0 %v16276_v44  ;;  %v14736_v3 = vpop.eup %14735  ;;  %13740 = vmatpush3.msk.msra.mxu1 %vm6670_vm1, %v8547_v8 }
0x15d3   : > { %13775 = vmatpush3.xpose.msra.mxu0 %v9170_v54  ;;  %v8539_v13 = vmul.f32 %v14736_v3, %v16704_v61  ;;  %13741 = vmatprep.mubr.msk.f32.mxu1 %vm15124_vm0, %v15123_v0  ;;  %v9165_v61 = vmul.f32 %v15941_v11, %v16197_v27 }
0x15d4   : > { %13776 = vmatprep.mubr.msk.f32.mxu0 %vm15124_vm0, %v15123_v0  ;;  %13784 = vmatprep.subr.mxu0 %v15123_v0 }
0x15d5   : > { %13749 = vmatprep.subr.mxu1 %v15123_v0  ;;  %13742 = vmatmul.mubr.msk.f32.vlgmr.msra.gmra.mrb[76].mxu1 %vm6666_vm3, %v8539_v13 }
0x15d6   : > { %13777 = vmatmul.mubr.f32.vlgmr.msra.gmra.mrb[64].mxu0 %v16222_v36  ;;  %13751 = vmatprep.mubr.msk.f32.mxu1 %vm15124_vm0, %v15123_v0 }
0x15d7   : > { %13785 = vmatpush3.msk.msra.mxu0 %vm6670_vm1, %v9820_v62  ;;  %13786 = vmatprep.mubr.msk.f32.mxu0 %vm15124_vm0, %v15123_v0 }
0x15d8   : > { %13794 = vmatprep.subr.mxu0 %v15123_v0 }
0x15d9   : > { %13750 = vmatpush3.xpose.msra.mxu1 %v9165_v61 }
0x15da   : > { %13759 = vmatprep.subr.mxu1 %v15123_v0 }
0x15dc   : > { %13752 = vmatmul.mubr.f32.vlgmr.msra.gmra.mrb[86].mxu1 %v16218_v2 }
0x15dd   : > { %13760 = vmatpush3.xpose.msra.mxu1 %v9167_v23  ;;  %13761 = vmatprep.mubr.msk.f32.mxu1 %vm15124_vm0, %v15123_v0 }
0x15de   : > { %13769 = vmatprep.subr.mxu1 %v15123_v0 }
0x15e0   : > { %13762 = vmatmul.mubr.f32.vlgmr.msra.gmra.mrb[88].mxu1 %v16257_v38 }
0x15e1   : > { %13770 = vmatpush3.xpose.msra.mxu1 %v9169_v31  ;;  %13771 = vmatprep.mubr.msk.f32.mxu1 %vm15124_vm0, %v15123_v0 }
0x15e2   : > { %13779 = vmatprep.subr.mxu1 %v15123_v0 }
0x15e4   : > { %13772 = vmatmul.mubr.f32.vlgmr.msra.gmra.mrb[90].mxu1 %v16302_v51 }
0x15e5   : > { %13780 = vmatpush3.xpose.msra.mxu1 %v9171_v56  ;;  %13781 = vmatprep.mubr.msk.f32.mxu1 %vm15124_vm0, %v15123_v0 }
0x15e6   : > { %13789 = vmatprep.subr.mxu1 %v15123_v0 }
0x15e8   : > { %13782 = vmatmul.mubr.f32.vlgmr.msra.gmra.mrb[92].mxu1 %v16319_v55 }
0x15e9   : > { %13790 = vmatpush3.msk.msra.mxu1 %vm6670_vm1, %v9821_v24  ;;  %13791 = vmatprep.mubr.msk.f32.mxu1 %vm15124_vm0, %v15123_v0 }
0x15ea   : > { %13799 = vmatprep.subr.mxu1 %v15123_v0 }
0x169d   : > { %v9238_v42 = vpop.f32.mrb[58].mxu0 }
0x169e   : > { %v13748_v10 = vpop.f32.mrb[59].mxu0  ;;  %v9732_v35 = vsel %vm5905_vm2, %v9238_v42, -inf }
0x169f   : > { %9733 = vmax.xlane.f32.xlu0 %v9732_v35 }
0x16a1   : > { %v9378_v52 = vpop.f32.mrb[60].mxu0 }
0x16a2   : > { %v13758_v5 = vpop.f32.mrb[61].mxu0  ;;  %v9738_v32 = vsel %vm5905_vm2, %v9378_v52, -inf }
0x16a3   : > { %9739 = vmax.xlane.f32.xlu0 %v9738_v32 }
0x16a5   : > { %v9518_v6 = vpop.f32.mrb[62].mxu0 }
0x16a6   : > { %v13768_v47 = vpop.f32.mrb[63].mxu0  ;;  %v9744_v48 = vsel %vm5905_vm2, %v9518_v6, -inf }
0x16a7   : > { %9745 = vmax.xlane.f32.xlu0 %v9744_v48 }
0x16a9   : > { %v9658_v57 = vpop.f32.mrb[64].mxu0 }
0x16aa   : > { %v13778_v30 = vpop.f32.mrb[65].mxu0  ;;  %v9750_v12 = vsel %vm5905_vm2, %v9658_v57, -inf }
0x16ab   : > { %9751 = vmax.xlane.f32.xlu0 %v9750_v12 }
0x16af   : > { %v9308_v40 = vpop.f32.mrb[86].mxu1 }
0x16b0   : > { %v13753_v53 = vpop.f32.mrb[87].mxu1  ;;  %v9735_v46 = vsel %vm5905_vm2, %v9308_v40, -inf }
0x16b1   : > { %9736 = vmax.xlane.f32.xlu1 %v9735_v46 }
0x16b3   : > { %v9448_v43 = vpop.f32.mrb[88].mxu1 }
0x16b4   : > { %v13763_v14 = vpop.f32.mrb[89].mxu1  ;;  %v9741_v41 = vsel %vm5905_vm2, %v9448_v43, -inf }
0x16b5   : > { %9742 = vmax.xlane.f32.xlu1 %v9741_v41 }
0x16b7   : > { %v9588_v1 = vpop.f32.mrb[90].mxu1 }
0x16b8   : > { %v13773_v28 = vpop.f32.mrb[91].mxu1  ;;  %v9747_v37 = vsel %vm5905_vm2, %v9588_v1, -inf }
0x16b9   : > { %9748 = vmax.xlane.f32.xlu1 %v9747_v37 }
0x16bb   : > { %v9728_v25 = vpop.f32.mrb[92].mxu1 }
0x16bc   : > { %v13783_v21 = vpop.f32.mrb[93].mxu1  ;;  %v9753_v8 = vsel %vm5905_vm2, %v9728_v25, -inf }
0x16bd   : > { %9754 = vmax.xlane.f32.xlu1 %v9753_v8 }
0x172c   : > { %v9734_v54 = vpop.xlane.xlu0 %9733 }
0x172d   : > { %v9756_v3 = vsub.f32 %v9238_v42, %v9734_v54 }
0x172f   : > { %v9764_v13 = vmul.f32 1.442695, %v9756_v3 }
0x1730   : > { %v9740_v62 = vpop.xlane.xlu0 %9739 }
0x1731   : > { %14737 = vpow2.f32 %v9764_v13  ;;  %v9758_v61 = vsub.f32 %v9378_v52, %v9740_v62 }
0x1733   : > { %v9768_v23 = vmul.f32 1.442695, %v9758_v61 }
0x1734   : > { %v9746_v31 = vpop.xlane.xlu0 %9745 }
0x1735   : > { %14739 = vpow2.f32 %v9768_v23  ;;  %v9760_v56 = vsub.f32 %v9518_v6, %v9746_v31 }
0x1737   : > { %v9772_v24 = vmul.f32 1.442695, %v9760_v56 }
0x1738   : > { %v9752_v10 = vpop.xlane.xlu0 %9751 }
0x1739   : > { %14741 = vpow2.f32 %v9772_v24  ;;  %v9762_v35 = vsub.f32 %v9658_v57, %v9752_v10 }
0x173b   : > { %v14738_v5 = vpop.eup %14737  ;;  %v9776_v32 = vmul.f32 1.442695, %v9762_v35 }
0x173c   : > { %v9780_v47 = vsel %vm5905_vm2, %v14738_v5, 0.0 }
0x173d   : > { %14743 = vpow2.f32 %v9776_v32  ;;  %9781 = vadd.xlane.f32.xlu0 %v9780_v47 }
0x173e   : > { %v9737_v42 = vpop.xlane.xlu1 %9736 }
0x173f   : > { %v14740_v48 = vpop.eup %14739  ;;  %v9757_v30 = vsub.f32 %v9308_v40, %v9737_v42  ;;  %v9822_v42 = vmul.f32 %v15941_v11, %v16487_v18 }
0x1740   : > { %v9786_v12 = vsel %vm5905_vm2, %v14740_v48, 0.0 }
0x1741   : > { %9787 = vadd.xlane.f32.xlu0 %v9786_v12  ;;  %v9766_v52 = vmul.f32 1.442695, %v9757_v30 }
0x1742   : > { %v9743_v46 = vpop.xlane.xlu1 %9742 }
0x1743   : > { %v14742_v53 = vpop.eup %14741  ;;  %14745 = vpow2.f32 %v9766_v52  ;;  %v9759_v6 = vsub.f32 %v9448_v43, %v9743_v46  ;;  %v9824_v52 = vmul.f32 %v15941_v11, %v16494_v45 }
0x1744   : > { %v9792_v14 = vsel %vm5905_vm2, %v14742_v53, 0.0 }
0x1745   : > { %9793 = vadd.xlane.f32.xlu0 %v9792_v14  ;;  %v9770_v57 = vmul.f32 1.442695, %v9759_v6 }
0x1746   : > { %v9749_v28 = vpop.xlane.xlu1 %9748 }
0x1747   : > { %v14744_v41 = vpop.eup %14743  ;;  %14747 = vpow2.f32 %v9770_v57  ;;  %v9761_v37 = vsub.f32 %v9588_v1, %v9749_v28 }
0x1748   : > { %v9798_v21 = vsel %vm5905_vm2, %v14744_v41, 0.0 }
0x1749   : > { %9799 = vadd.xlane.f32.xlu0 %v9798_v21  ;;  %v9774_v40 = vmul.f32 1.442695, %v9761_v37  ;;  %v10444_v37 = vmul.f32 %v16004_v19, %v16191_v9 }
0x174a   : > { %v9755_v8 = vpop.xlane.xlu1 %9754 }
0x174b   : > { %14749 = vpow2.f32 %v9774_v40  ;;  %v9763_v54 = vsub.f32 %v9728_v25, %v9755_v8 }
0x174d   : > { %v14746_v3 = vpop.eup %14745  ;;  %v9778_v13 = vmul.f32 1.442695, %v9763_v54  ;;  %v10446_v54 = vmul.f32 %v16004_v19, %v16207_v29  ;;  %v9825_v29 = vmul.f32 %v15941_v11, %v16544_v22 }
0x174e   : > { %v9783_v62 = vsel %vm5905_vm2, %v14746_v3, 0.0 }
0x174f   : > { %14751 = vpow2.f32 %v9778_v13  ;;  %9784 = vadd.xlane.f32.xlu1 %v9783_v62 }
0x1751   : > { %v14748_v43 = vpop.eup %14747 }
0x1752   : > { %v9789_v61 = vsel %vm5905_vm2, %v14748_v43, 0.0 }
0x1753   : > { %9790 = vadd.xlane.f32.xlu1 %v9789_v61 }
0x1755   : > { %v16828_v23 = vpop.eup %14749 }
0x1756   : > { %v9795_v1 = vsel %vm5905_vm2, %v16828_v23, 0.0 }
0x1757   : > { %9796 = vadd.xlane.f32.xlu1 %v9795_v1 }
0x1759   : > { %v16832_v31 = vpop.eup %14751 }
0x175a   : > { %v9801_v25 = vsel %vm5905_vm2, %v16832_v31, 0.0 }
0x175b   : > { %9802 = vadd.xlane.f32.xlu1 %v9801_v25 }
0x17ca   : > { %v9782_v56 = vpop.xlane.xlu0 %9781 }
0x17cb   : > { %14753 = vrcp.f32 %v9782_v56 }
0x17ce   : > { %v9788_v24 = vpop.xlane.xlu0 %9787 }
0x17cf   : > { %14755 = vrcp.f32 %v9788_v24 }
0x17d2   : > { %v9794_v10 = vpop.xlane.xlu0 %9793 }
0x17d3   : > { %14757 = vrcp.f32 %v9794_v10 }
0x17d5   : > { %v14754_v35 = vpop.eup %14753 }
0x17d6   : > { %v9812_v32 = vmul.f32 %v14754_v35, %v14738_v5  ;;  %v9800_v47 = vpop.xlane.xlu0 %9799 }
0x17d7   : > { %14759 = vrcp.f32 %v9800_v47 }
0x17d8   : > { %13787 = vmatmul.mubr.msk.f32.vlgmr.msra.gmra.mrb[42].mxu0 %vm6666_vm3, %v9812_v32 }
0x17d9   : > { %v14756_v30 = vpop.eup %14755  ;;  %13795 = vmatpush3.msk.msra.mxu0 %vm6670_vm1, %v9822_v42  ;;  %13796 = vmatprep.mubr.msk.f32.mxu0 %vm15124_vm0, %v15123_v0 }
0x17da   : > { %v9814_v12 = vmul.f32 %v14756_v30, %v14740_v48  ;;  %13804 = vmatprep.subr.mxu0 %v15123_v0  ;;  %v9826_v48 = vmul.f32 %v15941_v11, %v16505_v15 }
0x17dc   : > { %13797 = vmatmul.mubr.msk.f32.vlgmr.msra.gmra.mrb[44].mxu0 %vm6666_vm3, %v9814_v12  ;;  %v9785_v46 = vpop.xlane.xlu1 %9784 }
0x17dd   : > { %v14758_v5 = vpop.eup %14757  ;;  %13805 = vmatpush3.msk.msra.mxu0 %vm6670_vm1, %v9824_v52  ;;  %13806 = vmatprep.mubr.msk.f32.mxu0 %vm15124_vm0, %v15123_v0  ;;  %14761 = vrcp.f32 %v9785_v46 }
0x17de   : > { %v9816_v6 = vmul.f32 %v14758_v5, %v14742_v53  ;;  %13814 = vmatprep.subr.mxu0 %v15123_v0 }
0x17e0   : > { %13807 = vmatmul.mubr.msk.f32.vlgmr.msra.gmra.mrb[46].mxu0 %vm6666_vm3, %v9816_v6  ;;  %v9791_v57 = vpop.xlane.xlu1 %9790 }
0x17e1   : > { %v14760_v14 = vpop.eup %14759  ;;  %13815 = vmatpush3.msk.msra.mxu0 %vm6670_vm1, %v9826_v48  ;;  %13816 = vmatprep.mubr.msk.f32.mxu0 %vm15124_vm0, %v15123_v0  ;;  %14763 = vrcp.f32 %v9791_v57 }
0x17e2   : > { %v9818_v28 = vmul.f32 %v14760_v14, %v14744_v41  ;;  %13824 = vmatprep.subr.mxu0 %v15123_v0  ;;  %v9823_v41 = vmul.f32 %v15941_v11, %v16531_v16 }
0x17e4   : > { %13817 = vmatmul.mubr.msk.f32.vlgmr.msra.gmra.mrb[48].mxu0 %vm6666_vm3, %v9818_v28  ;;  %v9797_v53 = vpop.xlane.xlu1 %9796 }
0x17e5   : > { %13826 = vmatprep.mubr.msk.f32.mxu0 %vm15124_vm0, %v15123_v0  ;;  %14765 = vrcp.f32 %v9797_v53 }
0x17e7   : > { %v14762_v21 = vpop.eup %14761 }
0x17e8   : > { %13825 = vmatpush3.xpose.msra.mxu0 %v10444_v37  ;;  %v9813_v40 = vmul.f32 %v14762_v21, %v14746_v3  ;;  %v9803_v8 = vpop.xlane.xlu1 %9802 }
0x17e9   : > { %13834 = vmatprep.subr.mxu0 %v15123_v0  ;;  %14767 = vrcp.f32 %v9803_v8 }
0x17ea   : > { %13792 = vmatmul.mubr.msk.f32.vlgmr.msra.gmra.mrb[70].mxu1 %vm6666_vm3, %v9813_v40 }
0x17eb   : > { %13827 = vmatmul.mubr.f32.vlgmr.msra.gmra.mrb[66].mxu0 %v16203_v26  ;;  %v14764_v13 = vpop.eup %14763  ;;  %13800 = vmatpush3.msk.msra.mxu1 %vm6670_vm1, %v9823_v41  ;;  %v10448_v26 = vmul.f32 %v16004_v19, %v16241_v34  ;;  %v9827_v34 = vmul.f32 %v15941_v11, %v16561_v50  ;;  %v11100_v11 = vmul.f32 %v16004_v19, %v16291_v49 }
0x17ec   : > { %13835 = vmatpush3.xpose.msra.mxu0 %v10446_v54  ;;  %v9815_v9 = vmul.f32 %v14764_v13, %v14748_v43  ;;  %13801 = vmatprep.mubr.msk.f32.mxu1 %vm15124_vm0, %v15123_v0 }
0x17ed   : > { %13809 = vmatprep.subr.mxu1 %v15123_v0  ;;  %13836 = vmatprep.mubr.msk.f32.mxu0 %vm15124_vm0, %v15123_v0 }
0x17ee   : > { %13844 = vmatprep.subr.mxu0 %v15123_v0  ;;  %13802 = vmatmul.mubr.msk.f32.vlgmr.msra.gmra.mrb[72].mxu1 %vm6666_vm3, %v9815_v9 }
0x17ef   : > { %13837 = vmatmul.mubr.f32.vlgmr.msra.gmra.mrb[68].mxu0 %v16236_v63  ;;  %v14766_v3 = vpop.eup %14765  ;;  %13810 = vmatpush3.msk.msra.mxu1 %vm6670_vm1, %v9825_v29  ;;  %v10450_v63 = vmul.f32 %v16004_v19, %v16200_v17  ;;  %v10445_v17 = vmul.f32 %v16004_v19, %v16197_v27  ;;  %v10449_v27 = vmul.f32 %v16004_v19, %v16266_v39 }
0x17f0   : > { %13845 = vmatpush3.xpose.msra.mxu0 %v10448_v26  ;;  %v9817_v62 = vmul.f32 %v14766_v3, %v16828_v23  ;;  %13811 = vmatprep.mubr.msk.f32.mxu1 %vm15124_vm0, %v15123_v0 }
0x17f1   : > { %13819 = vmatprep.subr.mxu1 %v15123_v0  ;;  %13846 = vmatprep.mubr.msk.f32.mxu0 %vm15124_vm0, %v15123_v0 }
0x17f2   : > { %13854 = vmatprep.subr.mxu0 %v15123_v0  ;;  %13812 = vmatmul.mubr.msk.f32.vlgmr.msra.gmra.mrb[74].mxu1 %vm6666_vm3, %v9817_v62 }
0x17f3   : > { %13847 = vmatmul.mubr.f32.vlgmr.msra.gmra.mrb[70].mxu0 %v16276_v44  ;;  %v14768_v43 = vpop.eup %14767  ;;  %13820 = vmatpush3.msk.msra.mxu1 %vm6670_vm1, %v9827_v34  ;;  %v10447_v44 = vmul.f32 %v16004_v19, %v16229_v59 }
0x17f4   : > { %13855 = vmatpush3.xpose.msra.mxu0 %v10450_v63  ;;  %v9819_v61 = vmul.f32 %v14768_v43, %v16832_v31  ;;  %13821 = vmatprep.mubr.msk.f32.mxu1 %vm15124_vm0, %v15123_v0 }
0x17f5   : > { %13856 = vmatprep.mubr.msk.f32.mxu0 %vm15124_vm0, %v15123_v0  ;;  %13864 = vmatprep.subr.mxu0 %v15123_v0 }
0x17f6   : > { %13829 = vmatprep.subr.mxu1 %v15123_v0  ;;  %13822 = vmatmul.mubr.msk.f32.vlgmr.msra.gmra.mrb[76].mxu1 %vm6666_vm3, %v9819_v61 }
0x17f7   : > { %13857 = vmatmul.mubr.f32.vlgmr.msra.gmra.mrb[72].mxu0 %v16222_v36  ;;  %13831 = vmatprep.mubr.msk.f32.mxu1 %vm15124_vm0, %v15123_v0  ;;  %v11101_v36 = vmul.f32 %v16004_v19, %v16345_v4 }
0x17f8   : > { %13865 = vmatpush3.msk.msra.mxu0 %vm6670_vm1, %v11100_v11  ;;  %13866 = vmatprep.mubr.msk.f32.mxu0 %vm15124_vm0, %v15123_v0 }
0x17f9   : > { %13874 = vmatprep.subr.mxu0 %v15123_v0 }
0x17fa   : > { %13830 = vmatpush3.xpose.msra.mxu1 %v10445_v17 }
0x17fb   : > { %13839 = vmatprep.subr.mxu1 %v15123_v0 }
0x17fd   : > { %13832 = vmatmul.mubr.f32.vlgmr.msra.gmra.mrb[94].mxu1 %v16218_v2  ;;  %v10451_v2 = vmul.f32 %v16004_v19, %v16287_v20 }
0x17fe   : > { %13840 = vmatpush3.xpose.msra.mxu1 %v10447_v44  ;;  %13841 = vmatprep.mubr.msk.f32.mxu1 %vm15124_vm0, %v15123_v0 }
0x17ff   : > { %13849 = vmatprep.subr.mxu1 %v15123_v0 }
0x1801   : > { %13842 = vmatmul.mubr.f32.vlgmr.msra.gmra.mrb[96].mxu1 %v16257_v38 }
0x1802   : > { %13850 = vmatpush3.xpose.msra.mxu1 %v10449_v27  ;;  %13851 = vmatprep.mubr.msk.f32.mxu1 %vm15124_vm0, %v15123_v0 }
0x1803   : > { %13859 = vmatprep.subr.mxu1 %v15123_v0 }
0x1805   : > { %13852 = vmatmul.mubr.f32.vlgmr.msra.gmra.mrb[98].mxu1 %v16302_v51 }
0x1806   : > { %13860 = vmatpush3.xpose.msra.mxu1 %v10451_v2  ;;  %13861 = vmatprep.mubr.msk.f32.mxu1 %vm15124_vm0, %v15123_v0 }
0x1807   : > { %13869 = vmatprep.subr.mxu1 %v15123_v0 }
0x1809   : > { %13862 = vmatmul.mubr.f32.vlgmr.msra.gmra.mrb[100].mxu1 %v16319_v55 }
0x180a   : > { %13870 = vmatpush3.msk.msra.mxu1 %vm6670_vm1, %v11101_v36  ;;  %13871 = vmatprep.mubr.msk.f32.mxu1 %vm15124_vm0, %v15123_v0 }
0x180b   : > { %13879 = vmatprep.subr.mxu1 %v15123_v0 }
0x18be   : > { %v10518_v59 = vpop.f32.mrb[66].mxu0 }
0x18bf   : > { %v13828_v38 = vpop.f32.mrb[67].mxu0  ;;  %v11012_v39 = vsel %vm5905_vm2, %v10518_v59, -inf }
0x18c0   : > { %11013 = vmax.xlane.f32.xlu0 %v11012_v39 }
0x18c2   : > { %v10658_v20 = vpop.f32.mrb[68].mxu0 }
0x18c3   : > { %v13838_v49 = vpop.f32.mrb[69].mxu0  ;;  %v11018_v51 = vsel %vm5905_vm2, %v10658_v20, -inf }
0x18c4   : > { %11019 = vmax.xlane.f32.xlu0 %v11018_v51 }
0x18c6   : > { %v10798_v4 = vpop.f32.mrb[70].mxu0 }
0x18c7   : > { %v13848_v23 = vpop.f32.mrb[71].mxu0  ;;  %v11024_v55 = vsel %vm5905_vm2, %v10798_v4, -inf }
0x18c8   : > { %11025 = vmax.xlane.f32.xlu0 %v11024_v55 }
0x18ca   : > { %v10938_v1 = vpop.f32.mrb[72].mxu0 }
0x18cb   : > { %v13858_v31 = vpop.f32.mrb[73].mxu0  ;;  %v11030_v25 = vsel %vm5905_vm2, %v10938_v1, -inf }
0x18cc   : > { %11031 = vmax.xlane.f32.xlu0 %v11030_v25 }
0x18d0   : > { %v10588_v56 = vpop.f32.mrb[94].mxu1 }
0x18d1   : > { %v13833_v24 = vpop.f32.mrb[95].mxu1  ;;  %v11015_v10 = vsel %vm5905_vm2, %v10588_v56, -inf }
0x18d2   : > { %11016 = vmax.xlane.f32.xlu1 %v11015_v10 }
0x18d4   : > { %v10728_v35 = vpop.f32.mrb[96].mxu1 }
0x18d5   : > { %v13843_v32 = vpop.f32.mrb[97].mxu1  ;;  %v11021_v47 = vsel %vm5905_vm2, %v10728_v35, -inf }
0x18d6   : > { %11022 = vmax.xlane.f32.xlu1 %v11021_v47 }
0x18d8   : > { %v10868_v42 = vpop.f32.mrb[98].mxu1 }
0x18d9   : > { %v13853_v30 = vpop.f32.mrb[99].mxu1  ;;  %v11027_v12 = vsel %vm5905_vm2, %v10868_v42, -inf }
0x18da   : > { %11028 = vmax.xlane.f32.xlu1 %v11027_v12 }
0x18dc   : > { %v11008_v52 = vpop.f32.mrb[100].mxu1 }
0x18dd   : > { %v13863_v5 = vpop.f32.mrb[101].mxu1  ;;  %v11033_v46 = vsel %vm5905_vm2, %v11008_v52, -inf }
0x18de   : > { %11034 = vmax.xlane.f32.xlu1 %v11033_v46 }
0x194d   : > { %v11014_v6 = vpop.xlane.xlu0 %11013 }
0x194e   : > { %v11036_v48 = vsub.f32 %v10518_v59, %v11014_v6  ;;  %v11106_v6 = vmul.f32 %v16004_v19, %v16505_v15  ;;  %v11103_v15 = vmul.f32 %v16004_v19, %v16531_v16 }
0x1950   : > { %v11044_v14 = vmul.f32 1.442695, %v11036_v48 }
0x1951   : > { %v11020_v57 = vpop.xlane.xlu0 %11019 }
0x1952   : > { %14769 = vpow2.f32 %v11044_v14  ;;  %v11038_v28 = vsub.f32 %v10658_v20, %v11020_v57 }
0x1954   : > { %v11048_v53 = vmul.f32 1.442695, %v11038_v28 }
0x1955   : > { %v11026_v37 = vpop.xlane.xlu0 %11025 }
0x1956   : > { %14771 = vpow2.f32 %v11048_v53  ;;  %v11040_v21 = vsub.f32 %v10798_v4, %v11026_v37 }
0x1958   : > { %v11052_v40 = vmul.f32 1.442695, %v11040_v21 }
0x1959   : > { %v11032_v8 = vpop.xlane.xlu0 %11031 }
0x195a   : > { %14773 = vpow2.f32 %v11052_v40  ;;  %v11042_v41 = vsub.f32 %v10938_v1, %v11032_v8  ;;  %v11105_v8 = vmul.f32 %v16004_v19, %v16544_v22 }
0x195c   : > { %v14770_v54 = vpop.eup %14769  ;;  %v11056_v13 = vmul.f32 1.442695, %v11042_v41 }
0x195d   : > { %v11060_v9 = vsel %vm5905_vm2, %v14770_v54, 0.0 }
0x195e   : > { %14775 = vpow2.f32 %v11056_v13  ;;  %11061 = vadd.xlane.f32.xlu0 %v11060_v9  ;;  %v5189_v9 = vld [vmem:[%s17283_s7] sm:$0xff] }
0x195f   : > { %v11017_v26 = vpop.xlane.xlu1 %11016 }
0x1960   : > { %v14772_v29 = vpop.eup %14771  ;;  %v11037_v3 = vsub.f32 %v10588_v56, %v11017_v26 }
0x1961   : > { %v11066_v62 = vsel %vm5905_vm2, %v14772_v29, 0.0 }
0x1962   : > { %11067 = vadd.xlane.f32.xlu0 %v11066_v62  ;;  %v11046_v34 = vmul.f32 1.442695, %v11037_v3  ;;  %v5193_v3 = vld [vmem:[%s17284_s0 + $0x20] sm:$0xff]  ;;  %v5194_v62 = vld [vmem:[%s17284_s0 + $0x28] sm:$0xff] }
0x1963   : > { %v11023_v43 = vpop.xlane.xlu1 %11022 }
0x1964   : > { %v14774_v63 = vpop.eup %14773  ;;  %14777 = vpow2.f32 %v11046_v34  ;;  %v11039_v61 = vsub.f32 %v10728_v35, %v11023_v43  ;;  %v5195_v34 = vld [vmem:[%s17284_s0 + $0x30] sm:$0xff]  ;;  %v5196_v43 = vld [vmem:[%s17284_s0 + $0x38] sm:$0xff] }
0x1965   : > { %v11072_v11 = vsel %vm5905_vm2, %v14774_v63, 0.0 }
0x1966   : > { %11073 = vadd.xlane.f32.xlu0 %v11072_v11  ;;  %v11050_v17 = vmul.f32 1.442695, %v11039_v61  ;;  %v14256_v61 = vpack.c.bf16 %v5196_v43, %v5195_v34  ;;  %v5197_v11 = vld [vmem:[%s17284_s0 + $0x40] sm:$0xff] }
0x1967   : > { %v11029_v27 = vpop.xlane.xlu1 %11028 }
0x1968   : > { %v14776_v44 = vpop.eup %14775  ;;  %14779 = vpow2.f32 %v11050_v17  ;;  %v11041_v2 = vsub.f32 %v10868_v42, %v11029_v27  ;;  %v11102_v42 = vmul.f32 %v16004_v19, %v16487_v18  ;;  %v5198_v17 = vld [vmem:[%s17284_s0 + $0x48] sm:$0xff]  ;;  %v5199_v27 = vld [vmem:[%s17284_s0 + $0x50] sm:$0xff] }
0x1969   : > { %v11078_v36 = vsel %vm5905_vm2, %v14776_v44, 0.0 }
0x196a   : > { %11079 = vadd.xlane.f32.xlu0 %v11078_v36  ;;  %v11054_v59 = vmul.f32 1.442695, %v11041_v2  ;;  %v5200_v2 = vld [vmem:[%s17284_s0 + $0x58] sm:$0xff] }
0x196b   : > { %v11035_v38 = vpop.xlane.xlu1 %11034  ;;  %v14264_v36 = vpack.c.bf16 %v5200_v2, %v5199_v27  ;;  %v11902_v27 = vld [vmem:[%s17286_s19 + $0x40] sm:$0xff] }
0x196c   : > { %14781 = vpow2.f32 %v11054_v59  ;;  %v11043_v39 = vsub.f32 %v11008_v52, %v11035_v38  ;;  %v11104_v52 = vmul.f32 %v16004_v19, %v16494_v45  ;;  %v5201_v59 = vld [vmem:[%s17284_s0 + $0x60] sm:$0xff]  ;;  %v5202_v38 = vld [vmem:[%s17284_s0 + $0x68] sm:$0xff] }
0x196e   : > { %v14778_v20 = vpop.eup %14777  ;;  %v11058_v49 = vmul.f32 1.442695, %v11043_v39  ;;  %v14268_v39 = vpack.c.bf16 %v5202_v38, %v5201_v59  ;;  %v11904_v38 = vld [vmem:[%s17286_s19 + $0x50] sm:$0xff] }
0x196f   : > { %v11063_v51 = vsel %vm5905_vm2, %v14778_v20, 0.0 }
0x1970   : > { %14783 = vpow2.f32 %v11058_v49  ;;  %11064 = vadd.xlane.f32.xlu1 %v11063_v51  ;;  %v5204_v49 = vld [vmem:[%s17284_s0 + $0x78] sm:$0xff] }
0x1972   : > { %v14780_v4 = vpop.eup %14779 }
0x1973   : > { %v11069_v23 = vsel %vm5905_vm2, %v14780_v4, 0.0 }
0x1974   : > { %11070 = vadd.xlane.f32.xlu1 %v11069_v23 }
0x1976   : > { %v14782_v55 = vpop.eup %14781 }
0x1977   : > { %v11075_v1 = vsel %vm5905_vm2, %v14782_v55, 0.0 }
0x1978   : > { %11076 = vadd.xlane.f32.xlu1 %v11075_v1 }
0x197a   : > { %v16957_v31 = vpop.eup %14783 }
0x197b   : > { %v11081_v25 = vsel %vm5905_vm2, %v16957_v31, 0.0 }
0x197c   : > { %11082 = vadd.xlane.f32.xlu1 %v11081_v25 }
0x19eb   : > { %v11062_v56 = vpop.xlane.xlu0 %11061 }
0x19ec   : > { %14785 = vrcp.f32 %v11062_v56 }
0x19ef   : > { %v11068_v24 = vpop.xlane.xlu0 %11067 }
0x19f0   : > { %14787 = vrcp.f32 %v11068_v24 }
0x19f3   : > { %v11074_v10 = vpop.xlane.xlu0 %11073 }
0x19f4   : > { %14789 = vrcp.f32 %v11074_v10 }
0x19f6   : > { %v14786_v35 = vpop.eup %14785 }
0x19f7   : > { %v11092_v32 = vmul.f32 %v14786_v35, %v14770_v54  ;;  %v11080_v47 = vpop.xlane.xlu0 %11079  ;;  %v11107_v54 = vmul.f32 %v16004_v19, %v16561_v50  ;;  %v5190_v19 = vld [vmem:[%s17284_s0 + $0x8] sm:$0xff] }
0x19f8   : > { %14791 = vrcp.f32 %v11080_v47  ;;  %v14244_v50 = vpack.c.bf16 %v5190_v19, %v5189_v9  ;;  %v11898_v9 = vld [vmem:[%s17286_s19 + $0x20] sm:$0xff]  ;;  %v11899_v19 = vld [vmem:[%s17286_s19 + $0x28] sm:$0xff] }
0x19f9   : > { %13867 = vmatmul.mubr.msk.f32.vlgmr.msra.gmra.mrb[42].mxu0 %vm6666_vm3, %v11092_v32 }
0x19fa   : > { %v14788_v30 = vpop.eup %14787  ;;  %13875 = vmatpush3.msk.msra.mxu0 %vm6670_vm1, %v11102_v42  ;;  %13876 = vmatprep.mubr.msk.f32.mxu0 %vm15124_vm0, %v15123_v0 }
0x19fb   : > { %v11094_v12 = vmul.f32 %v14788_v30, %v14772_v29  ;;  %13884 = vmatprep.subr.mxu0 %v15123_v0  ;;  %v5191_v29 = vld [vmem:[%s17284_s0 + $0x10] sm:$0xff] }
0x19fd   : > { %13877 = vmatmul.mubr.msk.f32.vlgmr.msra.gmra.mrb[44].mxu0 %vm6666_vm3, %v11094_v12  ;;  %v11065_v18 = vpop.xlane.xlu1 %11064 }
0x19fe   : > { %v14790_v5 = vpop.eup %14789  ;;  %13885 = vmatpush3.msk.msra.mxu0 %vm6670_vm1, %v11104_v52  ;;  %13886 = vmatprep.mubr.msk.f32.mxu0 %vm15124_vm0, %v15123_v0  ;;  %14793 = vrcp.f32 %v11065_v18 }
0x19ff   : > { %v11096_v46 = vmul.f32 %v14790_v5, %v14774_v63  ;;  %13894 = vmatprep.subr.mxu0 %v15123_v0  ;;  %v14252_v63 = vpack.c.bf16 %v5194_v62, %v5193_v3 }
0x1a01   : > { %13887 = vmatmul.mubr.msk.f32.vlgmr.msra.gmra.mrb[46].mxu0 %vm6666_vm3, %v11096_v46  ;;  %v11071_v45 = vpop.xlane.xlu1 %11070 }
0x1a02   : > { %v14792_v48 = vpop.eup %14791  ;;  %13895 = vmatpush3.msk.msra.mxu0 %vm6670_vm1, %v11106_v6  ;;  %13896 = vmatprep.mubr.msk.f32.mxu0 %vm15124_vm0, %v15123_v0  ;;  %14795 = vrcp.f32 %v11071_v45 }
0x1a03   : > { %v11098_v14 = vmul.f32 %v14792_v48, %v14776_v44  ;;  %14245 = vmatprep.subr.bf16.mxu0 %v14244_v50  ;;  %v14260_v44 = vpack.c.bf16 %v5198_v17, %v5197_v11  ;;  %v11900_v17 = vld [vmem:[%s17286_s19 + $0x30] sm:$0xff] }
0x1a05   : > { %13897 = vmatmul.mubr.msk.f32.vlgmr.msra.gmra.mrb[48].mxu0 %vm6666_vm3, %v11098_v14  ;;  %v11077_v57 = vpop.xlane.xlu1 %11076 }
0x1a06   : > { %14797 = vrcp.f32 %v11077_v57  ;;  %14247 = vmatpush3.bf16.msra.mxu0 %v14244_v50  ;;  %v14284_v50 = vpack.c.bf16 %v11899_v19, %v11898_v9  ;;  %v12059_v9 = vld [vmem:[#allocation12 + $0x68] sm:$0xff] }
0x1a08   : > { %v14794_v28 = vpop.eup %14793 }
0x1a09   : > { %v11093_v53 = vmul.f32 %v14794_v28, %v14778_v20  ;;  %v11083_v37 = vpop.xlane.xlu1 %11082  ;;  %v5203_v20 = vld [vmem:[%s17284_s0 + $0x70] sm:$0xff] }
0x1a0a   : > { %14799 = vrcp.f32 %v11083_v37  ;;  %v14272_v51 = vpack.c.bf16 %v5204_v49, %v5203_v20  ;;  %v12695_v37 = vld [vmem:[%s17285_s13] ss:$0 sm:$0xff]  ;;  %s1087_s13 = scalar_lea.vmem %s17295_s20, %s15639_s4 }
0x1a0b   : > { %13872 = vmatmul.mubr.msk.f32.vlgmr.msra.gmra.mrb[70].mxu1 %vm6666_vm3, %v11093_v53  ;;  %v11906_v49 = vld [vmem:[%s17286_s19 + $0x60] sm:$0xff] }
0x1a0c   : > { %v14796_v21 = vpop.eup %14795  ;;  %13880 = vmatpush3.msk.msra.mxu1 %vm6670_vm1, %v11103_v15  ;;  %13881 = vmatprep.mubr.msk.f32.mxu1 %vm15124_vm0, %v15123_v0 }
0x1a0d   : > { %v11095_v40 = vmul.f32 %v14796_v21, %v14780_v4  ;;  %13889 = vmatprep.subr.mxu1 %v15123_v0 }
0x1a0f   : > { %13882 = vmatmul.mubr.msk.f32.vlgmr.msra.gmra.mrb[72].mxu1 %vm6666_vm3, %v11095_v40 }
0x1a10   : > { %v14798_v41 = vpop.eup %14797  ;;  %13890 = vmatpush3.msk.msra.mxu1 %vm6670_vm1, %v11105_v8  ;;  %13891 = vmatprep.mubr.msk.f32.mxu1 %vm15124_vm0, %v15123_v0 }
0x1a11   : > { %v11097_v16 = vmul.f32 %v14798_v41, %v14782_v55  ;;  %13899 = vmatprep.subr.mxu1 %v15123_v0 }
0x1a13   : > { %13892 = vmatmul.mubr.msk.f32.vlgmr.msra.gmra.mrb[74].mxu1 %vm6666_vm3, %v11097_v16 }
0x1a14   : > { %v14800_v13 = vpop.eup %14799  ;;  %13900 = vmatpush3.msk.msra.mxu1 %vm6670_vm1, %v11107_v54  ;;  %13901 = vmatprep.mubr.msk.f32.mxu1 %vm15124_vm0, %v15123_v0  ;;  %v5192_v0 = vld [vmem:[%s17284_s0 + $0x18] sm:$0xff]  ;;  %v11895_v54 = vld [vmem:[%s17286_s19 + $0x8] sm:$0xff] }
0x1a15   : > { %v11099_v22 = vmul.f32 %v14800_v13, %v16957_v31  ;;  %v14248_v26 = vpack.c.bf16 %v5192_v0, %v5191_v29  ;;  %v11896_v13 = vld [vmem:[%s17286_s19 + $0x10] sm:$0xff] }
0x1a17   : > { %13902 = vmatmul.mubr.msk.f32.vlgmr.msra.gmra.mrb[76].mxu1 %vm6666_vm3, %v11099_v22  ;;  %14249 = vmatprep.subr.bf16.mxu0 %v14248_v26 }
0x1a18   : > { %14251 = vmatpush3.bf16.msra.mxu0 %v14248_v26 }
0x1a19   : > { %14253 = vmatprep.subr.bf16.mxu0 %v14252_v63 }
0x1a1c   : > { %14255 = vmatpush3.bf16.msra.mxu0 %v14252_v63 }
0x1a1d   : > { %14257 = vmatprep.subr.bf16.mxu0 %v14256_v61 }
0x1a20   : > { %14259 = vmatpush3.bf16.msra.mxu0 %v14256_v61 }
0x1a21   : > { %14261 = vmatprep.subr.bf16.mxu0 %v14260_v44 }
0x1a24   : > { %14263 = vmatpush3.bf16.msra.mxu0 %v14260_v44  ;;  %v11901_v44 = vld [vmem:[%s17286_s19 + $0x38] sm:$0xff] }
0x1a25   : > { %14265 = vmatprep.subr.bf16.mxu0 %v14264_v36  ;;  %v14288_v2 = vpack.c.bf16 %v11901_v44, %v11900_v17 }
0x1a28   : > { %14267 = vmatpush3.bf16.msra.mxu0 %v14264_v36  ;;  %v11903_v36 = vld [vmem:[%s17286_s19 + $0x48] sm:$0xff] }
0x1a29   : > { %14269 = vmatprep.subr.bf16.mxu0 %v14268_v39  ;;  %v14292_v59 = vpack.c.bf16 %v11903_v36, %v11902_v27 }
0x1a2c   : > { %14271 = vmatpush3.bf16.msra.mxu0 %v14268_v39  ;;  %v11905_v39 = vld [vmem:[%s17286_s19 + $0x58] sm:$0xff] }
0x1a2d   : > { %14273 = vmatprep.subr.bf16.mxu0 %v14272_v51  ;;  %v14296_v20 = vpack.c.bf16 %v11905_v39, %v11904_v38 }
0x1a30   : > { %14275 = vmatpush3.bf16.msra.mxu0 %v14272_v51  ;;  %v11907_v51 = vld [vmem:[%s17286_s19 + $0x68] sm:$0xff] }
0x1acc   : > { %v11180_v4 = vpop.f32.mrb[42].mxu0 }
0x1acd   : > { %v13868_v23 = vpop.f32.mrb[43].mxu0 }
0x1ace   : > { %v11908_v23 = vld [vmem:[%s17286_s19 + $0x70] sm:$0xff] }
0x1ad0   : > { %v11332_v55 = vpop.f32.mrb[44].mxu0 }
0x1ad1   : > { %v13878_v1 = vpop.f32.mrb[45].mxu0 }
0x1ad4   : > { %v11484_v31 = vpop.f32.mrb[46].mxu0 }
0x1ad5   : > { %v13888_v25 = vpop.f32.mrb[47].mxu0 }
0x1ad8   : > { %v11636_v56 = vpop.f32.mrb[48].mxu0 }
0x1ad9   : > { %v13898_v24 = vpop.f32.mrb[49].mxu0 }
0x1ade   : > { %v11256_v10 = vpop.f32.mrb[70].mxu1 }
0x1adf   : > { %v11739_v35 = vcombine.low %v11180_v4, %v11256_v10  ;;  %v13873_v32 = vpop.f32.mrb[71].mxu1  ;;  %v14300_v4 = vpack.c.bf16 %v11907_v51, %v11906_v49 }
0x1ae1   : > { %v11747_v12 = vrot.slane %v11739_v35, %v16184_v7 }
0x1ae2   : > { %v11408_v47 = vpop.f32.mrb[72].mxu1 }
0x1ae3   : > { %v11740_v42 = vcombine.low %v11332_v55, %v11408_v47  ;;  %v13883_v30 = vpop.f32.mrb[73].mxu1  ;;  %v11909_v55 = vld [vmem:[%s17286_s19 + $0x78] sm:$0xff]  ;;  %v12696_v47 = vld [vmem:[%s17287_s17] ss:$0 sm:$0xff] }
0x1ae4   : > { %v14304_v1 = vpack.c.bf16 %v11909_v55, %v11908_v23 }
0x1ae5   : > { %v11754_v52 = vrot.slane %v11740_v42, %v16184_v7 }
0x1ae6   : > { %v11560_v5 = vpop.f32.mrb[74].mxu1 }
0x1ae7   : > { %v11756_v18 = vcombine.low %v11484_v31, %v11560_v5  ;;  %v13893_v46 = vpop.f32.mrb[75].mxu1  ;;  %v11755_v6 = vcombine.low %v11747_v12, %v11754_v52  ;;  %v12697_v5 = vld [vmem:[#allocation10] ss:$0 sm:$0xff] }
0x1ae9   : > { %13936 = vmatprep.mubr.f32.mxu0 %v11755_v6  ;;  %v11764_v57 = vrot.slane %v11756_v18, %v16184_v7 }
0x1aea   : > { %v11712_v48 = vpop.f32.mrb[76].mxu1 }
0x1aeb   : > { %v11757_v45 = vcombine.low %v11636_v56, %v11712_v48  ;;  %v13903_v14 = vpop.f32.mrb[77].mxu1  ;;  %v12046_v48 = vld [vmem:[#allocation12] sm:$0xff] }
0x1aed   : > { %v11771_v28 = vrot.slane %v11757_v45, %v16184_v7  ;;  %v11894_v7 = vld [vmem:[%s17286_s19] sm:$0xff]  ;;  %v12047_v45 = vld [vmem:[#allocation12 + $0x8] sm:$0xff] }
0x1aee   : > { %v14276_v22 = vpack.c.bf16 %v11895_v54, %v11894_v7  ;;  %v14308_v14 = vpack.c.bf16 %v12047_v45, %v12046_v48  ;;  %v12055_v7 = vld [vmem:[#allocation12 + $0x48] sm:$0xff] }
0x1aef   : > { %v11772_v53 = vcombine.low %v11764_v57, %v11771_v28  ;;  %v12048_v57 = vld [vmem:[#allocation12 + $0x10] sm:$0xff]  ;;  %v12049_v28 = vld [vmem:[#allocation12 + $0x18] sm:$0xff] }
0x1af0   : > { %14277 = vmatprep.subr.bf16.mxu1 %v14276_v22  ;;  %14309 = vmatprep.subr.bf16.mxu0 %v14308_v14 }
0x1af1   : > { %13937 = vmatmul.mubr.f32.vlgmr.msra.gmra.mrb[74].mxu0 %v11772_v53  ;;  %14279 = vmatpush3.bf16.msra.mxu1 %v14276_v22  ;;  %v14312_v53 = vpack.c.bf16 %v12049_v28, %v12048_v57  ;;  %v12057_v22 = vld [vmem:[#allocation12 + $0x58] sm:$0xff] }
0x1af2   : > { %14311 = vmatpush3.bf16.msra.mxu0 %v14308_v14 }
0x1af3   : > { %14313 = vmatprep.subr.bf16.mxu0 %v14312_v53 }
0x1af6   : > { %14315 = vmatpush3.bf16.msra.mxu0 %v14312_v53 }
0x1bc4   : > { %v13938_v15 = vpop.f32.mrb[74].mxu0 }
0x1bc5   : > { %v11847_v21 = vadd.f32 %v13938_v15, %v12695_v37  ;;  %v11841_v40 = vpop.f32.mrb[75].mxu0  ;;  %v12051_v15 = vld [vmem:[#allocation12 + $0x28] sm:$0xff] }
0x1bc6   : > { %v11842_v8 = vadd.f32 %v12695_v37, %v11841_v40  ;;  %v12050_v37 = vld [vmem:[#allocation12 + $0x20] sm:$0xff] }
0x1bc7   : > { %v11851_v41 = vadd.f32 %v16163_v58, %v11847_v21  ;;  %v11897_v58 = vld [vmem:[%s17286_s19 + $0x18] sm:$0xff]  ;;  %v14316_v40 = vpack.c.bf16 %v12051_v15, %v12050_v37  ;;  %v15126_v15 = vmov 1.0  }
0x1bc8   : > { %v11850_v16 = vadd.f32 %v11842_v8, %v16165_v60  ;;  %v14280_v60 = vpack.c.bf16 %v11897_v58, %v11896_v13  ;;  %v12052_v21 = vld [vmem:[#allocation12 + $0x30] sm:$0xff]  ;;  %v12053_v8 = vld [vmem:[#allocation12 + $0x38] sm:$0xff] }
0x1bc9   : > { %11854 = vadd.xlane.f32.xlu1 %v11851_v41  ;;  %14317 = vmatprep.subr.bf16.mxu0 %v14316_v40  ;;  %v12056_v13 = vld [vmem:[#allocation12 + $0x50] sm:$0xff] }
0x1bca   : > { %11852 = vadd.xlane.f32.xlu0 %v11850_v16  ;;  %14281 = vmatprep.subr.bf16.mxu1 %v14280_v60  ;;  %v14328_v58 = vpack.c.bf16 %v12057_v22, %v12056_v13 }
0x1bcb   : > { %14283 = vmatpush3.bf16.msra.mxu1 %v14280_v60  ;;  %14319 = vmatpush3.bf16.msra.mxu0 %v14316_v40  ;;  %v12058_v60 = vld [vmem:[#allocation12 + $0x60] sm:$0xff] }
0x1bcc   : > { %14285 = vmatprep.subr.bf16.mxu1 %v14284_v50  ;;  %v14332_v19 = vpack.c.bf16 %v12059_v9, %v12058_v60  ;;  %v12699_v9 = vld [vmem:[%s17289_s8] ss:$0 sm:$0xff] }
0x1bcf   : > { %14287 = vmatpush3.bf16.msra.mxu1 %v14284_v50  ;;  %v12060_v50 = vld [vmem:[#allocation12 + $0x70] sm:$0xff] }
0x1bd0   : > { %14289 = vmatprep.subr.bf16.mxu1 %v14288_v2 }
0x1bd3   : > { %14291 = vmatpush3.bf16.msra.mxu1 %v14288_v2 }
0x1bd4   : > { %14293 = vmatprep.subr.bf16.mxu1 %v14292_v59 }
0x1bd7   : > { %14295 = vmatpush3.bf16.msra.mxu1 %v14292_v59 }
0x1bd8   : > { %14297 = vmatprep.subr.bf16.mxu1 %v14296_v20 }
0x1bdb   : > { %14299 = vmatpush3.bf16.msra.mxu1 %v14296_v20 }
0x1bdc   : > { %14301 = vmatprep.subr.bf16.mxu1 %v14300_v4 }
0x1bdf   : > { %14303 = vmatpush3.bf16.msra.mxu1 %v14300_v4 }
0x1be0   : > { %14305 = vmatprep.subr.bf16.mxu1 %v14304_v1 }
0x1be3   : > { %14307 = vmatpush3.bf16.msra.mxu1 %v14304_v1 }
0x1c56   : > { %v11855_v29 = vpop.xlane.xlu1 %11854 }
0x1c57   : > { %v11857_v0 = vmul.f32 0.025, %v11855_v29  ;;  %v11853_v26 = vpop.xlane.xlu0 %11852  ;;  %v12061_v29 = vld [vmem:[#allocation12 + $0x78] sm:$0xff] }
0x1c58   : > { %v11856_v3 = vmul.f32 0.025, %v11853_v26  ;;  %v12698_v26 = vld [vmem:[%s17288_s10] ss:$0 sm:$0xff] }
0x1c59   : > { %v11859_v62 = vsub.f32 %v11851_v41, %v11857_v0  ;;  %v14320_v41 = vpack.c.bf16 %v12053_v8, %v12052_v21  ;;  %v14336_v0 = vpack.c.bf16 %v12061_v29, %v12060_v50 }
0x1c5a   : > { %v11858_v34 = vsub.f32 %v11850_v16, %v11856_v3  ;;  %v12054_v16 = vld [vmem:[#allocation12 + $0x40] sm:$0xff] }
0x1c5b   : > { %v11861_v63 = vmul.f32 %v16109_v33, %v11859_v62  ;;  %14321 = vmatprep.subr.bf16.mxu0 %v14320_v41  ;;  %v14324_v54 = vpack.c.bf16 %v12055_v7, %v12054_v16 }
0x1c5c   : > { %v11860_v43 = vmul.f32 %v16109_v33, %v11858_v34  ;;  %14323 = vmatpush3.bf16.msra.mxu0 %v14320_v41 }
0x1c5d   : > { %v11863_v61 = vmul.f32 %v11861_v63, %v11861_v63  ;;  %14325 = vmatprep.subr.bf16.mxu0 %v14324_v54 }
0x1c5e   : > { %v11862_v11 = vmul.f32 %v11860_v43, %v11860_v43 }
0x1c5f   : > { %11866 = vadd.xlane.f32.xlu1 %v11863_v61 }
0x1c60   : > { %11864 = vadd.xlane.f32.xlu0 %v11862_v11  ;;  %14327 = vmatpush3.bf16.msra.mxu0 %v14324_v54 }
0x1c61   : > { %14329 = vmatprep.subr.bf16.mxu0 %v14328_v58 }
0x1c64   : > { %14331 = vmatpush3.bf16.msra.mxu0 %v14328_v58 }
0x1c65   : > { %14333 = vmatprep.subr.bf16.mxu0 %v14332_v19 }
0x1c68   : > { %14335 = vmatpush3.bf16.msra.mxu0 %v14332_v19 }
0x1c69   : > { %14337 = vmatprep.subr.bf16.mxu0 %v14336_v0 }
0x1c6c   : > { %14339 = vmatpush3.bf16.msra.mxu0 %v14336_v0 }
0x1cec   : > { %v11867_v31 = vpop.xlane.xlu1 %11866 }
0x1ced   : > { %v11869_v25 = vmul.f32 0.025, %v11867_v31  ;;  %v11865_v56 = vpop.xlane.xlu0 %11864 }
0x1cee   : > { %v11868_v24 = vmul.f32 0.025, %v11865_v56 }
0x1cef   : > { %v11871_v10 = vadd.f32 1e-05, %v11869_v25 }
0x1cf0   : > { %v11870_v35 = vadd.f32 1e-05, %v11868_v24 }
0x1cf1   : > { %14801 = vrsqrt.f32 %v11871_v10 }
0x1cf2   : > { %14803 = vrsqrt.f32 %v11870_v35 }
0x1cfb   : > { %v14802_v32 = vpop.eup %14801 }
0x1cfc   : > { %v14804_v42 = vpop.eup %14803  ;;  %v11875_v30 = vmul.f32 %v14802_v32, %v11861_v63 }
0x1cfd   : > { %v11874_v12 = vmul.f32 %v14804_v42, %v11860_v43 }
0x1cfe   : > { %v11884_v52 = vmul.f32 %v12696_v47, %v11875_v30 }
0x1cff   : > { %v11883_v18 = vmul.f32 %v12696_v47, %v11874_v12 }
0x1d00   : > { %v17116_v6 = vadd.f32 %v12697_v5, %v11884_v52 }
0x1d01   : > { %v17114_v46 = vadd.f32 %v12697_v5, %v11883_v18 }
0x1d03   : > { %13971 = vmatprep.mubr.f32.mxu1 %v17114_v46 }
0x1d04   : > { %13972 = vmatmul.mubr.f32.vlgmr.msra.gmra.mrb[102].mxu1 %v17116_v6 }
0x1dd7   : > { %v13973_v3 = vpop.f32.mrb[102].mxu1 }
0x1dd8   : > { %v11989_v62 = vadd.f32 %v13973_v3, %v12698_v26  ;;  %v11983_v34 = vpop.f32.mrb[103].mxu1 }
0x1dd9   : > { %v11984_v63 = vadd.f32 %v12698_v26, %v11983_v34 }
0x1dda   : > { %v11995_v43 = vmul.f32 0.70710677, %v11989_v62  ;;  %v11993_v22 = vmul.f32 0.5, %v11989_v62 }
0x1ddb   : > { %v11994_v61 = vmul.f32 0.70710677, %v11984_v63  ;;  %v11992_v54 = vmul.f32 0.5, %v11984_v63 }
0x1ddc   : > { %v12001_v11 = vand.u32 2147483647, %v11995_v43  ;;  %vm11997_vm0 = vcmp.lt.f32.partialorder %v11995_v43, 0.0 }
0x1ddd   : > { %v12000_v17 = vand.u32 2147483647, %v11994_v61  ;;  %vm11996_vm4 = vcmp.lt.f32.partialorder %v11994_v61, 0.0  ;;  %v11999_v21 = vsel %vm11997_vm0, -1.0, %v15126_v15 }
0x1dde   : > { %v12003_v44 = vmul.f32 0.3275911, %v12001_v11  ;;  %v12029_v59 = vsub.f32 0.0, %v12001_v11  ;;  %v11998_v41 = vsel %vm11996_vm4, -1.0, %v15126_v15 }
0x1ddf   : > { %v12002_v27 = vmul.f32 0.3275911, %v12000_v17  ;;  %v12028_v38 = vsub.f32 0.0, %v12000_v17 }
0x1de0   : > { %v12005_v2 = vadd.f32 1.0, %v12003_v44  ;;  %v12031_v20 = vmul.f32 %v12029_v59, %v12001_v11 }
0x1de1   : > { %v12004_v36 = vadd.f32 1.0, %v12002_v27  ;;  %v12030_v4 = vmul.f32 %v12028_v38, %v12000_v17 }
0x1de2   : > { %14805 = vrcp.f32 %v12005_v2  ;;  %v12034_v1 = vmul.f32 1.442695, %v12031_v20 }
0x1de3   : > { %14807 = vrcp.f32 %v12004_v36  ;;  %v12032_v56 = vmul.f32 1.442695, %v12030_v4 }
0x1de4   : > { %14809 = vpow2.f32 %v12034_v1 }
0x1de5   : > { %14811 = vpow2.f32 %v12032_v56 }
0x1dec   : > { %v14806_v39 = vpop.eup %14805 }
0x1ded   : > { %v14808_v49 = vpop.eup %14807  ;;  %v12011_v51 = vmul.f32 1.0614054, %v14806_v39 }
0x1dee   : > { %v12010_v23 = vmul.f32 1.0614054, %v14808_v49  ;;  %v14810_v45 = vpop.eup %14809 }
0x1def   : > { %v12013_v55 = vadd.f32 -1.4531521, %v12011_v51  ;;  %v14812_v57 = vpop.eup %14811 }
0x1df0   : > { %v12012_v31 = vadd.f32 -1.4531521, %v12010_v23  ;;  %v12701_v23 = vld [vmem:[#allocation13] ss:$0 sm:$0xff] }
0x1df1   : > { %v12015_v25 = vmul.f32 %v14806_v39, %v12013_v55 }
0x1df2   : > { %v12014_v24 = vmul.f32 %v14808_v49, %v12012_v31 }
0x1df3   : > { %v12017_v10 = vadd.f32 1.4214138, %v12015_v25 }
0x1df4   : > { %v12016_v35 = vadd.f32 1.4214138, %v12014_v24 }
0x1df5   : > { %v12019_v32 = vmul.f32 %v14806_v39, %v12017_v10 }
0x1df6   : > { %v12018_v47 = vmul.f32 %v14808_v49, %v12016_v35 }
0x1df7   : > { %v12021_v42 = vadd.f32 -0.28449672, %v12019_v32 }
0x1df8   : > { %v12020_v30 = vadd.f32 -0.28449672, %v12018_v47 }
0x1df9   : > { %v12023_v12 = vmul.f32 %v14806_v39, %v12021_v42 }
0x1dfa   : > { %v12022_v52 = vmul.f32 %v14808_v49, %v12020_v30 }
0x1dfb   : > { %v12025_v5 = vadd.f32 0.2548296, %v12023_v12 }
0x1dfc   : > { %v12024_v18 = vadd.f32 0.2548296, %v12022_v52 }
0x1dfd   : > { %v12027_v48 = vmul.f32 %v14806_v39, %v12025_v5 }
0x1dfe   : > { %v12026_v14 = vmul.f32 %v14808_v49, %v12024_v18  ;;  %v12700_v49 = vld [vmem:[%s17290_s5] ss:$0 sm:$0xff] }
0x1dff   : > { %v12037_v28 = vmul.f32 %v14810_v45, %v12027_v48  ;;  %v12230_v18 = vld [vmem:[%s17291_s27] sm:$0xff] }
0x1e00   : > { %v12036_v53 = vmul.f32 %v14812_v57, %v12026_v14  ;;  %14013 = vmatprep.mubr.msk.f32.mxu1 %vm4890_vm15, %v12230_v18 }
0x1e01   : > { %v12039_v37 = vsub.f32 1.0, %v12037_v28 }
0x1e02   : > { %v12038_v40 = vsub.f32 1.0, %v12036_v53 }
0x1e03   : > { %v12041_v8 = vmul.f32 %v12039_v37, %v11999_v21  ;;  %v12702_v37 = vld [vmem:[%s17293_s12] ss:$0 sm:$0xff] }
0x1e04   : > { %v12040_v16 = vmul.f32 %v12038_v40, %v11998_v41 }
0x1e05   : > { %v12043_v7 = vadd.f32 1.0, %v12041_v8  ;;  %v12703_v8 = vld [vmem:[%s17294_s2] ss:$0 sm:$0xff] }
0x1e06   : > { %v12042_v13 = vadd.f32 1.0, %v12040_v16 }
0x1e07   : > { %v12045_v60 = vmul.f32 %v12043_v7, %v11993_v22  ;;  %v12231_v22 = vld [vmem:[%s17292_s15 + $0x8] sm:$0xff] }
0x1e08   : > { %v12044_v58 = vmul.f32 %v12042_v13, %v11992_v54 }
0x1e0a   : > { %14006 = vmatprep.mubr.f32.mxu0 %v12044_v58 }
0x1e0b   : > { %14007 = vmatmul.mubr.f32.vlgmr.msra.gmra.mrb[76].mxu0 %v12045_v60 }
0x1ede   : > { %v14008_v19 = vpop.f32.mrb[76].mxu0 }
0x1edf   : > { %v12141_v50 = vadd.f32 %v14008_v19, %v12699_v9  ;;  %v12135_v29 = vpop.f32.mrb[77].mxu0 }
0x1ee0   : > { %v12136_v0 = vadd.f32 %v12699_v9, %v12135_v29 }
0x1ee1   : > { %v12145_v26 = vadd.f32 %v12141_v50, %v17116_v6 }
0x1ee2   : > { %v12144_v3 = vadd.f32 %v12136_v0, %v17114_v46 }
0x1ee3   : > { %12148 = vadd.xlane.f32.xlu1 %v12145_v26 }
0x1ee4   : > { %12146 = vadd.xlane.f32.xlu0 %v12144_v3 }
0x1f70   : > { %v12149_v34 = vpop.xlane.xlu1 %12148 }
0x1f71   : > { %v12151_v62 = vmul.f32 0.025, %v12149_v34  ;;  %v12147_v63 = vpop.xlane.xlu0 %12146 }
0x1f72   : > { %v12150_v43 = vmul.f32 0.025, %v12147_v63 }
0x1f73   : > { %v12153_v61 = vsub.f32 %v12145_v26, %v12151_v62 }
0x1f74   : > { %v12152_v11 = vsub.f32 %v12144_v3, %v12150_v43 }
0x1f75   : > { %v12155_v17 = vmul.f32 %v16109_v33, %v12153_v61 }
0x1f76   : > { %v12154_v44 = vmul.f32 %v16109_v33, %v12152_v11 }
0x1f77   : > { %v12157_v27 = vmul.f32 %v12155_v17, %v12155_v17 }
0x1f78   : > { %v12156_v2 = vmul.f32 %v12154_v44, %v12154_v44 }
0x1f79   : > { %12160 = vadd.xlane.f32.xlu1 %v12157_v27 }
0x1f7a   : > { %12158 = vadd.xlane.f32.xlu0 %v12156_v2 }
0x2006   : > { %v12161_v36 = vpop.xlane.xlu1 %12160 }
0x2007   : > { %v12163_v6 = vmul.f32 0.025, %v12161_v36  ;;  %v12159_v59 = vpop.xlane.xlu0 %12158 }
0x2008   : > { %v12162_v46 = vmul.f32 0.025, %v12159_v59 }
0x2009   : > { %v12165_v38 = vadd.f32 1e-05, %v12163_v6 }
0x200a   : > { %v12164_v39 = vadd.f32 1e-05, %v12162_v46 }
0x200b   : > { %14813 = vrsqrt.f32 %v12165_v38 }
0x200c   : > { %14815 = vrsqrt.f32 %v12164_v39 }
0x2015   : > { %v14814_v20 = vpop.eup %14813 }
0x2016   : > { %v14816_v51 = vpop.eup %14815  ;;  %v12169_v4 = vmul.f32 %v14814_v20, %v12155_v17 }
0x2017   : > { %v12168_v55 = vmul.f32 %v14816_v51, %v12154_v44 }
0x2018   : > { %v12178_v1 = vmul.f32 %v12700_v49, %v12169_v4 }
0x2019   : > { %v12177_v31 = vmul.f32 %v12700_v49, %v12168_v55 }
0x201a   : > { %v12187_v25 = vadd.f32 %v12701_v23, %v12178_v1 }
0x201b   : > { %v12186_v56 = vadd.f32 %v12701_v23, %v12177_v31 }
0x201c   : > { %12190 = vadd.xlane.f32.xlu1 %v12187_v25 }
0x201d   : > { %12188 = vadd.xlane.f32.xlu0 %v12186_v56 }
0x20a9   : > { %v12191_v24 = vpop.xlane.xlu1 %12190 }
0x20aa   : > { %v12193_v10 = vmul.f32 0.025, %v12191_v24  ;;  %v12189_v35 = vpop.xlane.xlu0 %12188 }
0x20ab   : > { %v12192_v32 = vmul.f32 0.025, %v12189_v35 }
0x20ac   : > { %v12195_v47 = vsub.f32 %v12187_v25, %v12193_v10 }
0x20ad   : > { %v12194_v42 = vsub.f32 %v12186_v56, %v12192_v32 }
0x20ae   : > { %v12197_v30 = vmul.f32 %v16109_v33, %v12195_v47 }
0x20af   : > { %v12196_v12 = vmul.f32 %v16109_v33, %v12194_v42 }
0x20b0   : > { %v12199_v52 = vmul.f32 %v12197_v30, %v12197_v30 }
0x20b1   : > { %v12198_v5 = vmul.f32 %v12196_v12, %v12196_v12 }
0x20b2   : > { %12202 = vadd.xlane.f32.xlu1 %v12199_v52 }
0x20b3   : > { %12200 = vadd.xlane.f32.xlu0 %v12198_v5 }
0x213f   : > { %v12203_v48 = vpop.xlane.xlu1 %12202 }
0x2140   : > { %v12205_v45 = vmul.f32 0.025, %v12203_v48  ;;  %v12201_v14 = vpop.xlane.xlu0 %12200 }
0x2141   : > { %v12204_v57 = vmul.f32 0.025, %v12201_v14 }
0x2142   : > { %v12207_v28 = vadd.f32 1e-05, %v12205_v45 }
0x2143   : > { %v12206_v53 = vadd.f32 1e-05, %v12204_v57 }
0x2144   : > { %14817 = vrsqrt.f32 %v12207_v28 }
0x2145   : > { %14819 = vrsqrt.f32 %v12206_v53 }
0x214e   : > { %v14818_v33 = vpop.eup %14817 }
0x214f   : > { %v14820_v15 = vpop.eup %14819  ;;  %v12211_v21 = vmul.f32 %v14818_v33, %v12197_v30 }
0x2150   : > { %v12210_v40 = vmul.f32 %v14820_v15, %v12196_v12 }
0x2151   : > { %v12220_v41 = vmul.f32 %v12702_v37, %v12211_v21 }
0x2152   : > { %v12219_v16 = vmul.f32 %v12702_v37, %v12210_v40 }
0x2153   : > { %v12229_v7 = vadd.f32 %v12703_v8, %v12220_v41 }
0x2154   : > { %v12228_v54 = vadd.f32 %v12703_v8, %v12219_v16 }
0x2156   : > { %v14340_v13 = vpack.c.bf16 %v12229_v7, %v12228_v54 }
0x2158   : > { %14341 = vmatprep.subr.bf16.mxu1 %v14340_v13 }
0x2159   : > { %14343 = vmatpush3.bf16.msra.mxu1 %v14340_v13 }
0x215c   : > { %14014 = vmatmul.mubr.msk.f32.vlgmr.msra.gmra.mrb[104].mxu1 %vm4890_vm15, %v12231_v22 }
0x222f   : > { %v14015_v58 = vpop.f32.mrb[104].mxu1 }
0x2230   : > { %12314 = vst [vmem:[%s1087_s13 + $0x8] sm:$0xff] %v14015_v58  ;;  %v12304_v60 = vpop.f32.mrb[105].mxu1 }
0x2231   : > { %12313 = vst [vmem:[%s1087_s13] sm:$0xff] %v12304_v60 }
0x2232 PF: > { %s17296_s28 = sld [smem:[#allocation22_spill]]  ;;  %s17297_s8 = sld [smem:[#allocation21_spill]] }
0x2233   : > { %s17298_s7 = sld [smem:[#allocation23_spill]]  ;;  %s17299_s27 = smov %s15101_s3 }
0x2238   : > { %p44_p12 = scmp.ge.s32.totalorder %s17296_s28, 5   ;;  %s17300_s3 = smov %s17297_s8 }
0x223a   :  { %46 = sbr.rel (!%p44_p12) target bundleno = 33 (0x21), region = 235 }
0x2241   :  { %12336 = vsyncpa [#allocation3], 1 }
0x2242   :  { %12338 = vsyncpa [#allocation3 + $0x1], 1 }
0x2243   :  { %12339 = vsyncpa [#allocation5], 1 }
0x2244   :  { %12341 = vsyncpa [#allocation5 + $0x1], 1 }
0x2245   :  { %12342 = vsyncpa [#allocation8], 1 }
0x2246   :  { %12344 = vsyncpa [#allocation8 + $0x1], 1 }
0x2247   :  { %12345 = vsyncpa [#allocation11], 1 }
0x2248   :  { %12346 = vsyncpa [#allocation14], 1 }

</bundles_post_ra>
